<compile_context>
chip_gen: v7x
topology: tpu7x:2x2x1
jax: 0.10.0
libtpu: 0.0.40
codegen_flags: <defaults>
</compile_context>

<pallas_src>
import functools

import numpy as np
import jax
import jax.numpy as jnp
from jax.experimental import pallas as pl
from jax.experimental.pallas import tpu as pltpu


def _round_up(x, m):
    return ((x + m - 1) // m) * m


# ----------------------------------------------------------------------------
# Fused forward kernel builder.  All sequence structure (time steps, packed
# row count) is compile-time static, so the time loop is unrolled and every
# slice below is static and lane/sublane aligned.
# ----------------------------------------------------------------------------
def _build_fused_kernel(*, T, Bp, Hp, Vp, num_layers, n_valid, n_pad, eps=1e-5):

    def kernel(feat_ref, cap_ref, emb_ref, *refs):
        lstm = refs[:3 * num_layers]
        (pack_sel_ref, wfc_ref, bfc_ref, gamma_ref, beta_ref) = \
            refs[3 * num_layers:3 * num_layers + 5]
        out_ref = refs[3 * num_layers + 5]

        # ---- batched embedding lookup: one bf16 one-hot matmul over all
        #      (T-1)*Bp tokens (exact row selection, single MXU push).
        if T > 1:
            num_vocab = emb_ref.shape[0]
            ids = cap_ref[...]                                  # ((T-1)*Bp, 1)
            iota_v = jax.lax.broadcasted_iota(
                jnp.int32, ((T - 1) * Bp, num_vocab), 1)
            onehot = (ids == iota_v).astype(jnp.bfloat16)
            emb_rows = jnp.dot(onehot, emb_ref[...],
                               preferred_element_type=jnp.float32)
            x_seq = jnp.concatenate([feat_ref[...], emb_rows], axis=0)
        else:
            x_seq = feat_ref[...]
        x_seq = x_seq.astype(jnp.bfloat16)                      # (T*Bp, E)

        # ---- layer-major stacked LSTM.  Gate blocks are (i, f, o, g), each
        #      Hp = 128 lanes wide (lane-aligned slices, zero-padded lanes stay
        #      exactly zero through the recurrence).
        for l in range(num_layers):
            wih = lstm[3 * l][...]                              # (in, 4Hp) bf16
            whh = lstm[3 * l + 1][...]                          # (Hp, 4Hp) bf16
            bias = lstm[3 * l + 2][...]                         # (1, 4Hp)  f32

            # Batched input-hidden projection across all T steps: one push.
            xi = jnp.dot(x_seq, wih,
                         preferred_element_type=jnp.float32) + bias  # (T*Bp,4Hp)

            h = jnp.zeros((Bp, Hp), jnp.float32)
            c = jnp.zeros((Bp, Hp), jnp.float32)
            outs = []
            for t in range(T):
                gates = xi[t * Bp:(t + 1) * Bp, :] + jnp.dot(
                    h.astype(jnp.bfloat16), whh,
                    preferred_element_type=jnp.float32)          # (Bp, 4Hp)
                sig = jax.nn.sigmoid(gates[:, :3 * Hp])          # i, f, o only
                i_g = sig[:, 0 * Hp:1 * Hp]
                f_g = sig[:, 1 * Hp:2 * Hp]
                o_g = sig[:, 2 * Hp:3 * Hp]
                g_g = jnp.tanh(gates[:, 3 * Hp:4 * Hp])
                c = f_g * c + i_g * g_g
                h = o_g * jnp.tanh(c)
                outs.append(h)
            x_seq = jnp.concatenate(outs, axis=0).astype(jnp.bfloat16)  # (T*Bp,Hp)

        # ---- pack_padded_sequence gather as ONE static selection matmul.
        packed_h = jnp.dot(pack_sel_ref[...], x_seq,
                           preferred_element_type=jnp.float32)   # (n_pad, Hp)

        # ---- batched FC (Linear) over all packed rows, lane-dense output.
        logits = jnp.dot(packed_h.astype(jnp.bfloat16), wfc_ref[...],
                         preferred_element_type=jnp.float32) + bfc_ref[...]

        # ---- two-pass BatchNorm1d (train mode, biased variance) over the
        #      valid packed rows only (static row mask).
        row_ok = jax.lax.broadcasted_iota(jnp.int32, (n_pad, 1), 0) < n_valid
        inv_n = 1.0 / float(n_valid)
        mean = jnp.sum(jnp.where(row_ok, logits, 0.0),
                       axis=0, keepdims=True) * inv_n
        cen = logits - mean
        var = jnp.sum(jnp.where(row_ok, cen * cen, 0.0),
                      axis=0, keepdims=True) * inv_n
        scale = gamma_ref[...] * jax.lax.rsqrt(var + eps)

        out_ref[...] = cen * scale + beta_ref[...]               # one dense store

    return kernel


# ----------------------------------------------------------------------------
# Wrapper: pads / reorders params to TPU-friendly layouts (one-time parameter
# prep, amortizable across calls), builds and launches the single fused kernel.
# ----------------------------------------------------------------------------
@functools.partial(jax.jit, static_argnames=("lengths",))
def _decoder_rnn_forward_impl(params, features, captions, lengths):
    B, Tc = captions.shape
    V, E = params["embed"].shape
    H = params["lstm"][0]["w_hh_t"].shape[0]
    num_layers = len(params["lstm"])

    T = max(lengths)                            # packed LSTM runs this many steps
    assert T <= Tc + 1

    bs_per_t = tuple(sum(1 for ln in lengths if ln > t) for t in range(T))
    n_valid = sum(bs_per_t)                     # == sum(lengths) packed rows
    Bp = _round_up(B, 8)                        # sublane-pad batch
    Hp = _round_up(H, 128)                      # lane-pad hidden (per gate block)
    Vp = _round_up(V, 128)                      # lane-pad vocab
    n_pad = _round_up(n_valid, 8)               # sublane-pad packed rows

    # --- inputs: padded features, time-major caption ids.
    feat_p = jnp.zeros((Bp, E), jnp.float32).at[:B, :].set(
        features.astype(jnp.float32))
    Tm1 = max(T - 1, 1)
    if T > 1:
        cap_tm = jnp.zeros((Tm1, Bp), jnp.int32).at[:, :B].set(
            captions[:, :T - 1].T.astype(jnp.int32))
    else:
        cap_tm = jnp.zeros((Tm1, Bp), jnp.int32)
    cap_col = cap_tm.reshape((Tm1 * Bp, 1))

    emb_bf = params["embed"].astype(jnp.bfloat16)

    # --- LSTM weights: reorder gate columns (i,f,g,o) -> (i,f,o,g), pad each
    #     gate block to Hp lanes, pad the hidden input rows to Hp.
    def pack_cols(w, rows, rows_pad):
        blocks = (w[:, 0 * H:1 * H], w[:, 1 * H:2 * H],     # i, f
                  w[:, 3 * H:4 * H], w[:, 2 * H:3 * H])     # o, g
        out = jnp.zeros((rows_pad, 4 * Hp), jnp.float32)
        for k, blk in enumerate(blocks):
            out = out.at[:rows, k * Hp:k * Hp + H].set(blk)
        return out

    lstm_inputs = []
    for l, lp in enumerate(params["lstm"]):
        in_rows = E if l == 0 else H
        in_pad = E if l == 0 else Hp
        lstm_inputs += [
            pack_cols(lp["w_ih_t"], in_rows, in_pad).astype(jnp.bfloat16),
            pack_cols(lp["w_hh_t"], H, Hp).astype(jnp.bfloat16),
            pack_cols(lp["bias"], 1, 1),                    # f32
        ]

    # --- FC / BN params padded to (Hp, Vp) lanes.
    wfc = jnp.zeros((Hp, Vp), jnp.float32).at[:H, :V].set(
        params["fc_w_t"]).astype(jnp.bfloat16)
    bfc = jnp.zeros((1, Vp), jnp.float32).at[:, :V].set(params["fc_b"])
    gamma = jnp.zeros((1, Vp), jnp.float32).at[:, :V].set(params["bn_gamma"])
    beta = jnp.zeros((1, Vp), jnp.float32).at[:, :V].set(params["bn_beta"])

    # --- static pack_padded_sequence selection matrix (gather-as-matmul).
    sel = np.zeros((n_pad, T * Bp), np.float32)
    r = 0
    for t in range(T):
        for b in range(bs_per_t[t]):
            sel[r, t * Bp + b] = 1.0
            r += 1
    pack_sel = jnp.asarray(sel, jnp.bfloat16)

    kernel = _build_fused_kernel(T=T, Bp=Bp, Hp=Hp, Vp=Vp,
                                 num_layers=num_layers,
                                 n_valid=n_valid, n_pad=n_pad)

    inputs = [feat_p, cap_col, emb_bf] + lstm_inputs + \
             [pack_sel, wfc, bfc, gamma, beta]

    approx_bytes = sum(int(np.prod(x.shape)) * x.dtype.itemsize for x in inputs)
    approx_bytes += n_pad * Vp * 4                       # output tile
    vmem_limit = int(min(64 * 2**20, max(16 * 2**20, 4 * approx_bytes)))

    vmem = pl.BlockSpec(memory_space=pltpu.MemorySpace.VMEM)
    out_padded = pl.pallas_call(
        kernel,
        out_shape=jax.ShapeDtypeStruct((n_pad, Vp), jnp.float32),
        in_specs=[vmem] * len(inputs),
        out_specs=vmem,
        compiler_params=pltpu.CompilerParams(vmem_limit_bytes=vmem_limit),
    )(*inputs)

    return out_padded[:n_valid, :V]


def decoder_rnn_forward(params, features, captions, lengths):
    """features: (B, E) f32; captions: (B, Tc) int32; lengths: python ints,
    sorted descending with max(lengths) <= Tc + 1.  Returns (sum(lengths), V)."""
    lengths = tuple(int(x) for x in lengths)
    assert len(lengths) == captions.shape[0]
    assert all(lengths[i] >= lengths[i + 1] for i in range(len(lengths) - 1)), \
        "pack_padded_sequence requires lengths sorted in decreasing order"
    assert 0 < min(lengths) and max(lengths) <= captions.shape[1] + 1
    return _decoder_rnn_forward_impl(params, features, captions, lengths)


# ----------------------------------------------------------------------------
# Pure-JAX reference (mirrors the kernel numerics: bf16 matmul inputs, f32
# accumulate/elementwise) used only to validate the Pallas implementation.
# ----------------------------------------------------------------------------
def decoder_rnn_reference(params, features, captions, lengths):
    B, Tc = captions.shape
    T = Tc + 1
    H = params["lstm"][0]["w_hh_t"].shape[0]

    emb = params["embed"][captions]                               # (B, Tc, E)
    x = jnp.concatenate([features[:, None, :], emb], axis=1)      # (B, T, E)
    seq = jnp.transpose(x, (1, 0, 2)).astype(jnp.float32)         # (T, B, E)

    for lp in params["lstm"]:
        wih = lp["w_ih_t"].astype(jnp.bfloat16)
        whh = lp["w_hh_t"].astype(jnp.bfloat16)
        b = lp["bias"]
        h = jnp.zeros((B, H), jnp.float32)
        c = jnp.zeros((B, H), jnp.float32)
        outs = []
        for t in range(T):
            gates = (jnp.dot(seq[t].astype(jnp.bfloat16), wih,
                             preferred_element_type=jnp.float32)
                     + jnp.dot(h.astype(jnp.bfloat16), whh,
                               preferred_element_type=jnp.float32) + b)
            i = jax.nn.sigmoid(gates[:, :H])
            f = jax.nn.sigmoid(gates[:, H:2 * H])
            g = jnp.tanh(gates[:, 2 * H:3 * H])
            o = jax.nn.sigmoid(gates[:, 3 * H:])
            c = f * c + i * g
            h = o * jnp.tanh(c)
            outs.append(h)
        seq = jnp.stack(outs, axis=0)

    lengths_np = np.asarray(lengths)
    t_idx, b_idx = [], []
    for t in range(int(lengths_np.max())):
        bs = int(np.sum(lengths_np > t))
        t_idx += [t] * bs
        b_idx += list(range(bs))
    packed = seq[jnp.asarray(t_idx, jnp.int32), jnp.asarray(b_idx, jnp.int32)]

    logits = (jnp.dot(packed.astype(jnp.bfloat16),
                      params["fc_w_t"].astype(jnp.bfloat16),
                      preferred_element_type=jnp.float32) + params["fc_b"])
    mean = jnp.mean(logits, axis=0, keepdims=True)
    var = jnp.mean((logits - mean) ** 2, axis=0, keepdims=True)
    return ((logits - mean) * jax.lax.rsqrt(var + 1e-5)
            * params["bn_gamma"] + params["bn_beta"])


# ----------------------------------------------------------------------------
# Deterministic parameter construction (shapes from DecoderRNN.__init__).
# ----------------------------------------------------------------------------
def make_params(key, embed_size, hidden_size, num_vocab, num_layers):
    ks = jax.random.split(key, 2 + 4 * num_layers + 2)
    ki = iter(ks)
    scale = 1.0 / np.sqrt(hidden_size)

    params = {"embed": jax.random.normal(next(ki), (num_vocab, embed_size),
                                         jnp.float32)}
    lstm_layers = []
    for l in range(num_layers):
        in_size = embed_size if l == 0 else hidden_size
        w_ih = jax.random.uniform(next(ki), (4 * hidden_size, in_size),
                                  jnp.float32, -scale, scale)
        w_hh = jax.random.uniform(next(ki), (4 * hidden_size, hidden_size),
                                  jnp.float32, -scale, scale)
        b_ih = jax.random.uniform(next(ki), (4 * hidden_size,),
                                  jnp.float32, -scale, scale)
        b_hh = jax.random.uniform(next(ki), (4 * hidden_size,),
                                  jnp.float32, -scale, scale)
        lstm_layers.append({
            "w_ih_t": w_ih.T,                               # (in, 4H)
            "w_hh_t": w_hh.T,                               # (H, 4H)
            "bias": (b_ih + b_hh)[None, :],                 # (1, 4H)
        })
    params["lstm"] = lstm_layers

    fc_w = jax.random.uniform(next(ki), (num_vocab, hidden_size),
                              jnp.float32, -scale, scale)
    fc_b = jax.random.uniform(next(ki), (num_vocab,),
                              jnp.float32, -scale, scale)
    params["fc_w_t"] = fc_w.T                               # (H, V)
    params["fc_b"] = fc_b[None, :]                          # (1, V)
    params["bn_gamma"] = jnp.ones((1, num_vocab), jnp.float32)
    params["bn_beta"] = jnp.zeros((1, num_vocab), jnp.float32)
    return params


if __name__ == "__main__":
    embed_size, hidden_size, num_vocab, num_layers = 32, 32, 64, 2
    B, Tc = 4, 7                                            # captions (B, Tc)
    lengths = [8, 6, 5, 3]                                  # sorted descending

    key = jax.random.PRNGKey(0)
    kp, kf, kc = jax.random.split(key, 3)
    params = make_params(kp, embed_size, hidden_size, num_vocab, num_layers)

    features = jax.random.normal(kf, (B, embed_size), jnp.float32)
    captions = jax.random.randint(kc, (B, Tc), 0, num_vocab, jnp.int32)

    out = decoder_rnn_forward(params, features, captions, lengths)
    out = jax.block_until_ready(out)
    assert out.shape == (sum(lengths), num_vocab)
    assert bool(jnp.all(jnp.isfinite(out)))

    ref = decoder_rnn_reference(params, features, captions, lengths)
    np.testing.assert_allclose(np.asarray(out), np.asarray(ref),
                               rtol=5e-2, atol=5e-2)
    print("KERNEL_OK")
</pallas_src>

<mosaic_0001>
module attributes {stable_mosaic.version = 11 : i64} {
  func.func @kernel(%arg0: memref<8x32xf32, #tpu.memory_space<vmem>>, %arg1: memref<56x1xi32, #tpu.memory_space<vmem>>, %arg2: memref<64x32xbf16, #tpu.memory_space<vmem>>, %arg3: memref<32x512xbf16, #tpu.memory_space<vmem>>, %arg4: memref<128x512xbf16, #tpu.memory_space<vmem>>, %arg5: memref<1x512xf32, #tpu.memory_space<vmem>>, %arg6: memref<128x512xbf16, #tpu.memory_space<vmem>>, %arg7: memref<128x512xbf16, #tpu.memory_space<vmem>>, %arg8: memref<1x512xf32, #tpu.memory_space<vmem>>, %arg9: memref<24x64xbf16, #tpu.memory_space<vmem>>, %arg10: memref<128x128xbf16, #tpu.memory_space<vmem>>, %arg11: memref<1x128xf32, #tpu.memory_space<vmem>>, %arg12: memref<1x128xf32, #tpu.memory_space<vmem>>, %arg13: memref<1x128xf32, #tpu.memory_space<vmem>>, %arg14: memref<24x128xf32, #tpu.memory_space<vmem>>) attributes {dimension_semantics = [], scalar_prefetch = 0 : i64, scratch_operands = 0 : i64, tpu.core_type = #tpu.core_type<tc>} {
    %c0 = arith.constant 0 : index
    %c0_0 = arith.constant 0 : index
    %0 = vector.load %arg1[%c0, %c0_0] : memref<56x1xi32, #tpu.memory_space<vmem>>, vector<56x1xi32>
    %1 = tpu.iota {dimensions = array<i32: 1>} : vector<56x64xi32>
    %2 = vector.broadcast %0 : vector<56x1xi32> to vector<56x64xi32>
    %3 = arith.cmpi eq, %2, %1 : vector<56x64xi32>
    %4 = arith.extui %3 : vector<56x64xi1> to vector<56x64xi32>
    %5 = arith.sitofp %4 : vector<56x64xi32> to vector<56x64xf32>
    %6 = arith.truncf %5 : vector<56x64xf32> to vector<56x64xbf16>
    %c0_1 = arith.constant 0 : index
    %c0_2 = arith.constant 0 : index
    %7 = vector.load %arg2[%c0_1, %c0_2] : memref<64x32xbf16, #tpu.memory_space<vmem>>, vector<64x32xbf16>
    %cst = arith.constant dense<0.000000e+00> : vector<56x32xf32>
    %8 = tpu.matmul %6, %7, %cst {dimension_numbers = #tpu.dot_dimension_numbers<[1], [0], [0], [1], [0, 0, 1, 1], [], []>} : vector<56x64xbf16>, vector<64x32xbf16>, vector<56x32xf32> -> vector<56x32xf32>
    %c0_3 = arith.constant 0 : index
    %c0_4 = arith.constant 0 : index
    %9 = vector.load %arg0[%c0_3, %c0_4] : memref<8x32xf32, #tpu.memory_space<vmem>>, vector<8x32xf32>
    %10 = tpu.concatenate %9, %8 in 0 : vector<8x32xf32>, vector<56x32xf32> -> vector<64x32xf32>
    %11 = arith.truncf %10 : vector<64x32xf32> to vector<64x32xbf16>
    %c0_5 = arith.constant 0 : index
    %c0_6 = arith.constant 0 : index
    %12 = vector.load %arg3[%c0_5, %c0_6] : memref<32x512xbf16, #tpu.memory_space<vmem>>, vector<32x512xbf16>
    %c0_7 = arith.constant 0 : index
    %c0_8 = arith.constant 0 : index
    %13 = vector.load %arg4[%c0_7, %c0_8] : memref<128x512xbf16, #tpu.memory_space<vmem>>, vector<128x512xbf16>
    %c0_9 = arith.constant 0 : index
    %c0_10 = arith.constant 0 : index
    %14 = vector.load %arg5[%c0_9, %c0_10] : memref<1x512xf32, #tpu.memory_space<vmem>>, vector<1x512xf32>
    %cst_11 = arith.constant dense<0.000000e+00> : vector<64x512xf32>
    %15 = tpu.matmul %11, %12, %cst_11 {dimension_numbers = #tpu.dot_dimension_numbers<[1], [0], [0], [1], [0, 0, 1, 1], [], []>} : vector<64x32xbf16>, vector<32x512xbf16>, vector<64x512xf32> -> vector<64x512xf32>
    %16 = vector.broadcast %14 : vector<1x512xf32> to vector<64x512xf32>
    %17 = arith.addf %15, %16 : vector<64x512xf32>
    %cst_12 = arith.constant 0.000000e+00 : f32
    %18 = vector.broadcast %cst_12 : f32 to vector<8x128xf32>
    %cst_13 = arith.constant 0.000000e+00 : f32
    %19 = vector.broadcast %cst_13 : f32 to vector<8x128xf32>
    %20 = vector.extract_strided_slice %17 {offsets = [0, 0], sizes = [8, 512], strides = [1, 1]} : vector<64x512xf32> to vector<8x512xf32>
    %21 = arith.truncf %18 : vector<8x128xf32> to vector<8x128xbf16>
    %cst_14 = arith.constant dense<0.000000e+00> : vector<8x512xf32>
    %22 = tpu.matmul %21, %13, %cst_14 {dimension_numbers = #tpu.dot_dimension_numbers<[1], [0], [0], [1], [0, 0, 1, 1], [], []>} : vector<8x128xbf16>, vector<128x512xbf16>, vector<8x512xf32> -> vector<8x512xf32>
    %23 = arith.addf %20, %22 : vector<8x512xf32>
    %24 = vector.extract_strided_slice %23 {offsets = [0, 0], sizes = [8, 384], strides = [1, 1]} : vector<8x512xf32> to vector<8x384xf32>
    %25 = arith.negf %24 : vector<8x384xf32>
    %26 = math.exp %25 : vector<8x384xf32>
    %cst_15 = arith.constant 1.000000e+00 : f32
    %27 = vector.broadcast %cst_15 : f32 to vector<8x384xf32>
    %28 = arith.addf %27, %26 : vector<8x384xf32>
    %29 = arith.divf %27, %28 : vector<8x384xf32>
    %30 = vector.extract_strided_slice %29 {offsets = [0, 0], sizes = [8, 128], strides = [1, 1]} : vector<8x384xf32> to vector<8x128xf32>
    %31 = vector.extract_strided_slice %29 {offsets = [0, 128], sizes = [8, 128], strides = [1, 1]} : vector<8x384xf32> to vector<8x128xf32>
    %32 = vector.extract_strided_slice %29 {offsets = [0, 256], sizes = [8, 128], strides = [1, 1]} : vector<8x384xf32> to vector<8x128xf32>
    %33 = vector.extract_strided_slice %23 {offsets = [0, 384], sizes = [8, 128], strides = [1, 1]} : vector<8x512xf32> to vector<8x128xf32>
    %34 = math.tanh %33 : vector<8x128xf32>
    %35 = arith.mulf %31, %19 : vector<8x128xf32>
    %36 = arith.mulf %30, %34 : vector<8x128xf32>
    %37 = arith.addf %35, %36 : vector<8x128xf32>
    %38 = math.tanh %37 : vector<8x128xf32>
    %39 = arith.mulf %32, %38 : vector<8x128xf32>
    %40 = vector.extract_strided_slice %17 {offsets = [8, 0], sizes = [8, 512], strides = [1, 1]} : vector<64x512xf32> to vector<8x512xf32>
    %41 = arith.truncf %39 : vector<8x128xf32> to vector<8x128xbf16>
    %cst_16 = arith.constant dense<0.000000e+00> : vector<8x512xf32>
    %42 = tpu.matmul %41, %13, %cst_16 {dimension_numbers = #tpu.dot_dimension_numbers<[1], [0], [0], [1], [0, 0, 1, 1], [], []>} : vector<8x128xbf16>, vector<128x512xbf16>, vector<8x512xf32> -> vector<8x512xf32>
    %43 = arith.addf %40, %42 : vector<8x512xf32>
    %44 = vector.extract_strided_slice %43 {offsets = [0, 0], sizes = [8, 384], strides = [1, 1]} : vector<8x512xf32> to vector<8x384xf32>
    %45 = arith.negf %44 : vector<8x384xf32>
    %46 = math.exp %45 : vector<8x384xf32>
    %cst_17 = arith.constant 1.000000e+00 : f32
    %47 = vector.broadcast %cst_17 : f32 to vector<8x384xf32>
    %48 = arith.addf %47, %46 : vector<8x384xf32>
    %49 = arith.divf %47, %48 : vector<8x384xf32>
    %50 = vector.extract_strided_slice %49 {offsets = [0, 0], sizes = [8, 128], strides = [1, 1]} : vector<8x384xf32> to vector<8x128xf32>
    %51 = vector.extract_strided_slice %49 {offsets = [0, 128], sizes = [8, 128], strides = [1, 1]} : vector<8x384xf32> to vector<8x128xf32>
    %52 = vector.extract_strided_slice %49 {offsets = [0, 256], sizes = [8, 128], strides = [1, 1]} : vector<8x384xf32> to vector<8x128xf32>
    %53 = vector.extract_strided_slice %43 {offsets = [0, 384], sizes = [8, 128], strides = [1, 1]} : vector<8x512xf32> to vector<8x128xf32>
    %54 = math.tanh %53 : vector<8x128xf32>
    %55 = arith.mulf %51, %37 : vector<8x128xf32>
    %56 = arith.mulf %50, %54 : vector<8x128xf32>
    %57 = arith.addf %55, %56 : vector<8x128xf32>
    %58 = math.tanh %57 : vector<8x128xf32>
    %59 = arith.mulf %52, %58 : vector<8x128xf32>
    %60 = vector.extract_strided_slice %17 {offsets = [16, 0], sizes = [8, 512], strides = [1, 1]} : vector<64x512xf32> to vector<8x512xf32>
    %61 = arith.truncf %59 : vector<8x128xf32> to vector<8x128xbf16>
    %cst_18 = arith.constant dense<0.000000e+00> : vector<8x512xf32>
    %62 = tpu.matmul %61, %13, %cst_18 {dimension_numbers = #tpu.dot_dimension_numbers<[1], [0], [0], [1], [0, 0, 1, 1], [], []>} : vector<8x128xbf16>, vector<128x512xbf16>, vector<8x512xf32> -> vector<8x512xf32>
    %63 = arith.addf %60, %62 : vector<8x512xf32>
    %64 = vector.extract_strided_slice %63 {offsets = [0, 0], sizes = [8, 384], strides = [1, 1]} : vector<8x512xf32> to vector<8x384xf32>
    %65 = arith.negf %64 : vector<8x384xf32>
    %66 = math.exp %65 : vector<8x384xf32>
    %cst_19 = arith.constant 1.000000e+00 : f32
    %67 = vector.broadcast %cst_19 : f32 to vector<8x384xf32>
    %68 = arith.addf %67, %66 : vector<8x384xf32>
    %69 = arith.divf %67, %68 : vector<8x384xf32>
    %70 = vector.extract_strided_slice %69 {offsets = [0, 0], sizes = [8, 128], strides = [1, 1]} : vector<8x384xf32> to vector<8x128xf32>
    %71 = vector.extract_strided_slice %69 {offsets = [0, 128], sizes = [8, 128], strides = [1, 1]} : vector<8x384xf32> to vector<8x128xf32>
    %72 = vector.extract_strided_slice %69 {offsets = [0, 256], sizes = [8, 128], strides = [1, 1]} : vector<8x384xf32> to vector<8x128xf32>
    %73 = vector.extract_strided_slice %63 {offsets = [0, 384], sizes = [8, 128], strides = [1, 1]} : vector<8x512xf32> to vector<8x128xf32>
    %74 = math.tanh %73 : vector<8x128xf32>
    %75 = arith.mulf %71, %57 : vector<8x128xf32>
    %76 = arith.mulf %70, %74 : vector<8x128xf32>
    %77 = arith.addf %75, %76 : vector<8x128xf32>
    %78 = math.tanh %77 : vector<8x128xf32>
    %79 = arith.mulf %72, %78 : vector<8x128xf32>
    %80 = vector.extract_strided_slice %17 {offsets = [24, 0], sizes = [8, 512], strides = [1, 1]} : vector<64x512xf32> to vector<8x512xf32>
    %81 = arith.truncf %79 : vector<8x128xf32> to vector<8x128xbf16>
    %cst_20 = arith.constant dense<0.000000e+00> : vector<8x512xf32>
    %82 = tpu.matmul %81, %13, %cst_20 {dimension_numbers = #tpu.dot_dimension_numbers<[1], [0], [0], [1], [0, 0, 1, 1], [], []>} : vector<8x128xbf16>, vector<128x512xbf16>, vector<8x512xf32> -> vector<8x512xf32>
    %83 = arith.addf %80, %82 : vector<8x512xf32>
    %84 = vector.extract_strided_slice %83 {offsets = [0, 0], sizes = [8, 384], strides = [1, 1]} : vector<8x512xf32> to vector<8x384xf32>
    %85 = arith.negf %84 : vector<8x384xf32>
    %86 = math.exp %85 : vector<8x384xf32>
    %cst_21 = arith.constant 1.000000e+00 : f32
    %87 = vector.broadcast %cst_21 : f32 to vector<8x384xf32>
    %88 = arith.addf %87, %86 : vector<8x384xf32>
    %89 = arith.divf %87, %88 : vector<8x384xf32>
    %90 = vector.extract_strided_slice %89 {offsets = [0, 0], sizes = [8, 128], strides = [1, 1]} : vector<8x384xf32> to vector<8x128xf32>
    %91 = vector.extract_strided_slice %89 {offsets = [0, 128], sizes = [8, 128], strides = [1, 1]} : vector<8x384xf32> to vector<8x128xf32>
    %92 = vector.extract_strided_slice %89 {offsets = [0, 256], sizes = [8, 128], strides = [1, 1]} : vector<8x384xf32> to vector<8x128xf32>
    %93 = vector.extract_strided_slice %83 {offsets = [0, 384], sizes = [8, 128], strides = [1, 1]} : vector<8x512xf32> to vector<8x128xf32>
    %94 = math.tanh %93 : vector<8x128xf32>
    %95 = arith.mulf %91, %77 : vector<8x128xf32>
    %96 = arith.mulf %90, %94 : vector<8x128xf32>
    %97 = arith.addf %95, %96 : vector<8x128xf32>
    %98 = math.tanh %97 : vector<8x128xf32>
    %99 = arith.mulf %92, %98 : vector<8x128xf32>
    %100 = vector.extract_strided_slice %17 {offsets = [32, 0], sizes = [8, 512], strides = [1, 1]} : vector<64x512xf32> to vector<8x512xf32>
    %101 = arith.truncf %99 : vector<8x128xf32> to vector<8x128xbf16>
    %cst_22 = arith.constant dense<0.000000e+00> : vector<8x512xf32>
    %102 = tpu.matmul %101, %13, %cst_22 {dimension_numbers = #tpu.dot_dimension_numbers<[1], [0], [0], [1], [0, 0, 1, 1], [], []>} : vector<8x128xbf16>, vector<128x512xbf16>, vector<8x512xf32> -> vector<8x512xf32>
    %103 = arith.addf %100, %102 : vector<8x512xf32>
    %104 = vector.extract_strided_slice %103 {offsets = [0, 0], sizes = [8, 384], strides = [1, 1]} : vector<8x512xf32> to vector<8x384xf32>
    %105 = arith.negf %104 : vector<8x384xf32>
    %106 = math.exp %105 : vector<8x384xf32>
    %cst_23 = arith.constant 1.000000e+00 : f32
    %107 = vector.broadcast %cst_23 : f32 to vector<8x384xf32>
    %108 = arith.addf %107, %106 : vector<8x384xf32>
    %109 = arith.divf %107, %108 : vector<8x384xf32>
    %110 = vector.extract_strided_slice %109 {offsets = [0, 0], sizes = [8, 128], strides = [1, 1]} : vector<8x384xf32> to vector<8x128xf32>
    %111 = vector.extract_strided_slice %109 {offsets = [0, 128], sizes = [8, 128], strides = [1, 1]} : vector<8x384xf32> to vector<8x128xf32>
    %112 = vector.extract_strided_slice %109 {offsets = [0, 256], sizes = [8, 128], strides = [1, 1]} : vector<8x384xf32> to vector<8x128xf32>
    %113 = vector.extract_strided_slice %103 {offsets = [0, 384], sizes = [8, 128], strides = [1, 1]} : vector<8x512xf32> to vector<8x128xf32>
    %114 = math.tanh %113 : vector<8x128xf32>
    %115 = arith.mulf %111, %97 : vector<8x128xf32>
    %116 = arith.mulf %110, %114 : vector<8x128xf32>
    %117 = arith.addf %115, %116 : vector<8x128xf32>
    %118 = math.tanh %117 : vector<8x128xf32>
    %119 = arith.mulf %112, %118 : vector<8x128xf32>
    %120 = vector.extract_strided_slice %17 {offsets = [40, 0], sizes = [8, 512], strides = [1, 1]} : vector<64x512xf32> to vector<8x512xf32>
    %121 = arith.truncf %119 : vector<8x128xf32> to vector<8x128xbf16>
    %cst_24 = arith.constant dense<0.000000e+00> : vector<8x512xf32>
    %122 = tpu.matmul %121, %13, %cst_24 {dimension_numbers = #tpu.dot_dimension_numbers<[1], [0], [0], [1], [0, 0, 1, 1], [], []>} : vector<8x128xbf16>, vector<128x512xbf16>, vector<8x512xf32> -> vector<8x512xf32>
    %123 = arith.addf %120, %122 : vector<8x512xf32>
    %124 = vector.extract_strided_slice %123 {offsets = [0, 0], sizes = [8, 384], strides = [1, 1]} : vector<8x512xf32> to vector<8x384xf32>
    %125 = arith.negf %124 : vector<8x384xf32>
    %126 = math.exp %125 : vector<8x384xf32>
    %cst_25 = arith.constant 1.000000e+00 : f32
    %127 = vector.broadcast %cst_25 : f32 to vector<8x384xf32>
    %128 = arith.addf %127, %126 : vector<8x384xf32>
    %129 = arith.divf %127, %128 : vector<8x384xf32>
    %130 = vector.extract_strided_slice %129 {offsets = [0, 0], sizes = [8, 128], strides = [1, 1]} : vector<8x384xf32> to vector<8x128xf32>
    %131 = vector.extract_strided_slice %129 {offsets = [0, 128], sizes = [8, 128], strides = [1, 1]} : vector<8x384xf32> to vector<8x128xf32>
    %132 = vector.extract_strided_slice %129 {offsets = [0, 256], sizes = [8, 128], strides = [1, 1]} : vector<8x384xf32> to vector<8x128xf32>
    %133 = vector.extract_strided_slice %123 {offsets = [0, 384], sizes = [8, 128], strides = [1, 1]} : vector<8x512xf32> to vector<8x128xf32>
    %134 = math.tanh %133 : vector<8x128xf32>
    %135 = arith.mulf %131, %117 : vector<8x128xf32>
    %136 = arith.mulf %130, %134 : vector<8x128xf32>
    %137 = arith.addf %135, %136 : vector<8x128xf32>
    %138 = math.tanh %137 : vector<8x128xf32>
    %139 = arith.mulf %132, %138 : vector<8x128xf32>
    %140 = vector.extract_strided_slice %17 {offsets = [48, 0], sizes = [8, 512], strides = [1, 1]} : vector<64x512xf32> to vector<8x512xf32>
    %141 = arith.truncf %139 : vector<8x128xf32> to vector<8x128xbf16>
    %cst_26 = arith.constant dense<0.000000e+00> : vector<8x512xf32>
    %142 = tpu.matmul %141, %13, %cst_26 {dimension_numbers = #tpu.dot_dimension_numbers<[1], [0], [0], [1], [0, 0, 1, 1], [], []>} : vector<8x128xbf16>, vector<128x512xbf16>, vector<8x512xf32> -> vector<8x512xf32>
    %143 = arith.addf %140, %142 : vector<8x512xf32>
    %144 = vector.extract_strided_slice %143 {offsets = [0, 0], sizes = [8, 384], strides = [1, 1]} : vector<8x512xf32> to vector<8x384xf32>
    %145 = arith.negf %144 : vector<8x384xf32>
    %146 = math.exp %145 : vector<8x384xf32>
    %cst_27 = arith.constant 1.000000e+00 : f32
    %147 = vector.broadcast %cst_27 : f32 to vector<8x384xf32>
    %148 = arith.addf %147, %146 : vector<8x384xf32>
    %149 = arith.divf %147, %148 : vector<8x384xf32>
    %150 = vector.extract_strided_slice %149 {offsets = [0, 0], sizes = [8, 128], strides = [1, 1]} : vector<8x384xf32> to vector<8x128xf32>
    %151 = vector.extract_strided_slice %149 {offsets = [0, 128], sizes = [8, 128], strides = [1, 1]} : vector<8x384xf32> to vector<8x128xf32>
    %152 = vector.extract_strided_slice %149 {offsets = [0, 256], sizes = [8, 128], strides = [1, 1]} : vector<8x384xf32> to vector<8x128xf32>
    %153 = vector.extract_strided_slice %143 {offsets = [0, 384], sizes = [8, 128], strides = [1, 1]} : vector<8x512xf32> to vector<8x128xf32>
    %154 = math.tanh %153 : vector<8x128xf32>
    %155 = arith.mulf %151, %137 : vector<8x128xf32>
    %156 = arith.mulf %150, %154 : vector<8x128xf32>
    %157 = arith.addf %155, %156 : vector<8x128xf32>
    %158 = math.tanh %157 : vector<8x128xf32>
    %159 = arith.mulf %152, %158 : vector<8x128xf32>
    %160 = vector.extract_strided_slice %17 {offsets = [56, 0], sizes = [8, 512], strides = [1, 1]} : vector<64x512xf32> to vector<8x512xf32>
    %161 = arith.truncf %159 : vector<8x128xf32> to vector<8x128xbf16>
    %cst_28 = arith.constant dense<0.000000e+00> : vector<8x512xf32>
    %162 = tpu.matmul %161, %13, %cst_28 {dimension_numbers = #tpu.dot_dimension_numbers<[1], [0], [0], [1], [0, 0, 1, 1], [], []>} : vector<8x128xbf16>, vector<128x512xbf16>, vector<8x512xf32> -> vector<8x512xf32>
    %163 = arith.addf %160, %162 : vector<8x512xf32>
    %164 = vector.extract_strided_slice %163 {offsets = [0, 0], sizes = [8, 384], strides = [1, 1]} : vector<8x512xf32> to vector<8x384xf32>
    %165 = arith.negf %164 : vector<8x384xf32>
    %166 = math.exp %165 : vector<8x384xf32>
    %cst_29 = arith.constant 1.000000e+00 : f32
    %167 = vector.broadcast %cst_29 : f32 to vector<8x384xf32>
    %168 = arith.addf %167, %166 : vector<8x384xf32>
    %169 = arith.divf %167, %168 : vector<8x384xf32>
    %170 = vector.extract_strided_slice %169 {offsets = [0, 0], sizes = [8, 128], strides = [1, 1]} : vector<8x384xf32> to vector<8x128xf32>
    %171 = vector.extract_strided_slice %169 {offsets = [0, 128], sizes = [8, 128], strides = [1, 1]} : vector<8x384xf32> to vector<8x128xf32>
    %172 = vector.extract_strided_slice %169 {offsets = [0, 256], sizes = [8, 128], strides = [1, 1]} : vector<8x384xf32> to vector<8x128xf32>
    %173 = vector.extract_strided_slice %163 {offsets = [0, 384], sizes = [8, 128], strides = [1, 1]} : vector<8x512xf32> to vector<8x128xf32>
    %174 = math.tanh %173 : vector<8x128xf32>
    %175 = arith.mulf %171, %157 : vector<8x128xf32>
    %176 = arith.mulf %170, %174 : vector<8x128xf32>
    %177 = arith.addf %175, %176 : vector<8x128xf32>
    %178 = math.tanh %177 : vector<8x128xf32>
    %179 = arith.mulf %172, %178 : vector<8x128xf32>
    %180 = tpu.concatenate %39, %59, %79, %99, %119, %139, %159, %179 in 0 : vector<8x128xf32>, vector<8x128xf32>, vector<8x128xf32>, vector<8x128xf32>, vector<8x128xf32>, vector<8x128xf32>, vector<8x128xf32>, vector<8x128xf32> -> vector<64x128xf32>
    %181 = arith.truncf %180 : vector<64x128xf32> to vector<64x128xbf16>
    %c0_30 = arith.constant 0 : index
    %c0_31 = arith.constant 0 : index
    %182 = vector.load %arg6[%c0_30, %c0_31] : memref<128x512xbf16, #tpu.memory_space<vmem>>, vector<128x512xbf16>
    %c0_32 = arith.constant 0 : index
    %c0_33 = arith.constant 0 : index
    %183 = vector.load %arg7[%c0_32, %c0_33] : memref<128x512xbf16, #tpu.memory_space<vmem>>, vector<128x512xbf16>
    %c0_34 = arith.constant 0 : index
    %c0_35 = arith.constant 0 : index
    %184 = vector.load %arg8[%c0_34, %c0_35] : memref<1x512xf32, #tpu.memory_space<vmem>>, vector<1x512xf32>
    %cst_36 = arith.constant dense<0.000000e+00> : vector<64x512xf32>
    %185 = tpu.matmul %181, %182, %cst_36 {dimension_numbers = #tpu.dot_dimension_numbers<[1], [0], [0], [1], [0, 0, 1, 1], [], []>} : vector<64x128xbf16>, vector<128x512xbf16>, vector<64x512xf32> -> vector<64x512xf32>
    %186 = vector.broadcast %184 : vector<1x512xf32> to vector<64x512xf32>
    %187 = arith.addf %185, %186 : vector<64x512xf32>
    %cst_37 = arith.constant 0.000000e+00 : f32
    %188 = vector.broadcast %cst_37 : f32 to vector<8x128xf32>
    %cst_38 = arith.constant 0.000000e+00 : f32
    %189 = vector.broadcast %cst_38 : f32 to vector<8x128xf32>
    %190 = vector.extract_strided_slice %187 {offsets = [0, 0], sizes = [8, 512], strides = [1, 1]} : vector<64x512xf32> to vector<8x512xf32>
    %191 = arith.truncf %188 : vector<8x128xf32> to vector<8x128xbf16>
    %cst_39 = arith.constant dense<0.000000e+00> : vector<8x512xf32>
    %192 = tpu.matmul %191, %183, %cst_39 {dimension_numbers = #tpu.dot_dimension_numbers<[1], [0], [0], [1], [0, 0, 1, 1], [], []>} : vector<8x128xbf16>, vector<128x512xbf16>, vector<8x512xf32> -> vector<8x512xf32>
    %193 = arith.addf %190, %192 : vector<8x512xf32>
    %194 = vector.extract_strided_slice %193 {offsets = [0, 0], sizes = [8, 384], strides = [1, 1]} : vector<8x512xf32> to vector<8x384xf32>
    %195 = arith.negf %194 : vector<8x384xf32>
    %196 = math.exp %195 : vector<8x384xf32>
    %cst_40 = arith.constant 1.000000e+00 : f32
    %197 = vector.broadcast %cst_40 : f32 to vector<8x384xf32>
    %198 = arith.addf %197, %196 : vector<8x384xf32>
    %199 = arith.divf %197, %198 : vector<8x384xf32>
    %200 = vector.extract_strided_slice %199 {offsets = [0, 0], sizes = [8, 128], strides = [1, 1]} : vector<8x384xf32> to vector<8x128xf32>
    %201 = vector.extract_strided_slice %199 {offsets = [0, 128], sizes = [8, 128], strides = [1, 1]} : vector<8x384xf32> to vector<8x128xf32>
    %202 = vector.extract_strided_slice %199 {offsets = [0, 256], sizes = [8, 128], strides = [1, 1]} : vector<8x384xf32> to vector<8x128xf32>
    %203 = vector.extract_strided_slice %193 {offsets = [0, 384], sizes = [8, 128], strides = [1, 1]} : vector<8x512xf32> to vector<8x128xf32>
    %204 = math.tanh %203 : vector<8x128xf32>
    %205 = arith.mulf %201, %189 : vector<8x128xf32>
    %206 = arith.mulf %200, %204 : vector<8x128xf32>
    %207 = arith.addf %205, %206 : vector<8x128xf32>
    %208 = math.tanh %207 : vector<8x128xf32>
    %209 = arith.mulf %202, %208 : vector<8x128xf32>
    %210 = vector.extract_strided_slice %187 {offsets = [8, 0], sizes = [8, 512], strides = [1, 1]} : vector<64x512xf32> to vector<8x512xf32>
    %211 = arith.truncf %209 : vector<8x128xf32> to vector<8x128xbf16>
    %cst_41 = arith.constant dense<0.000000e+00> : vector<8x512xf32>
    %212 = tpu.matmul %211, %183, %cst_41 {dimension_numbers = #tpu.dot_dimension_numbers<[1], [0], [0], [1], [0, 0, 1, 1], [], []>} : vector<8x128xbf16>, vector<128x512xbf16>, vector<8x512xf32> -> vector<8x512xf32>
    %213 = arith.addf %210, %212 : vector<8x512xf32>
    %214 = vector.extract_strided_slice %213 {offsets = [0, 0], sizes = [8, 384], strides = [1, 1]} : vector<8x512xf32> to vector<8x384xf32>
    %215 = arith.negf %214 : vector<8x384xf32>
    %216 = math.exp %215 : vector<8x384xf32>
    %cst_42 = arith.constant 1.000000e+00 : f32
    %217 = vector.broadcast %cst_42 : f32 to vector<8x384xf32>
    %218 = arith.addf %217, %216 : vector<8x384xf32>
    %219 = arith.divf %217, %218 : vector<8x384xf32>
    %220 = vector.extract_strided_slice %219 {offsets = [0, 0], sizes = [8, 128], strides = [1, 1]} : vector<8x384xf32> to vector<8x128xf32>
    %221 = vector.extract_strided_slice %219 {offsets = [0, 128], sizes = [8, 128], strides = [1, 1]} : vector<8x384xf32> to vector<8x128xf32>
    %222 = vector.extract_strided_slice %219 {offsets = [0, 256], sizes = [8, 128], strides = [1, 1]} : vector<8x384xf32> to vector<8x128xf32>
    %223 = vector.extract_strided_slice %213 {offsets = [0, 384], sizes = [8, 128], strides = [1, 1]} : vector<8x512xf32> to vector<8x128xf32>
    %224 = math.tanh %223 : vector<8x128xf32>
    %225 = arith.mulf %221, %207 : vector<8x128xf32>
    %226 = arith.mulf %220, %224 : vector<8x128xf32>
    %227 = arith.addf %225, %226 : vector<8x128xf32>
    %228 = math.tanh %227 : vector<8x128xf32>
    %229 = arith.mulf %222, %228 : vector<8x128xf32>
    %230 = vector.extract_strided_slice %187 {offsets = [16, 0], sizes = [8, 512], strides = [1, 1]} : vector<64x512xf32> to vector<8x512xf32>
    %231 = arith.truncf %229 : vector<8x128xf32> to vector<8x128xbf16>
    %cst_43 = arith.constant dense<0.000000e+00> : vector<8x512xf32>
    %232 = tpu.matmul %231, %183, %cst_43 {dimension_numbers = #tpu.dot_dimension_numbers<[1], [0], [0], [1], [0, 0, 1, 1], [], []>} : vector<8x128xbf16>, vector<128x512xbf16>, vector<8x512xf32> -> vector<8x512xf32>
    %233 = arith.addf %230, %232 : vector<8x512xf32>
    %234 = vector.extract_strided_slice %233 {offsets = [0, 0], sizes = [8, 384], strides = [1, 1]} : vector<8x512xf32> to vector<8x384xf32>
    %235 = arith.negf %234 : vector<8x384xf32>
    %236 = math.exp %235 : vector<8x384xf32>
    %cst_44 = arith.constant 1.000000e+00 : f32
    %237 = vector.broadcast %cst_44 : f32 to vector<8x384xf32>
    %238 = arith.addf %237, %236 : vector<8x384xf32>
    %239 = arith.divf %237, %238 : vector<8x384xf32>
    %240 = vector.extract_strided_slice %239 {offsets = [0, 0], sizes = [8, 128], strides = [1, 1]} : vector<8x384xf32> to vector<8x128xf32>
    %241 = vector.extract_strided_slice %239 {offsets = [0, 128], sizes = [8, 128], strides = [1, 1]} : vector<8x384xf32> to vector<8x128xf32>
    %242 = vector.extract_strided_slice %239 {offsets = [0, 256], sizes = [8, 128], strides = [1, 1]} : vector<8x384xf32> to vector<8x128xf32>
    %243 = vector.extract_strided_slice %233 {offsets = [0, 384], sizes = [8, 128], strides = [1, 1]} : vector<8x512xf32> to vector<8x128xf32>
    %244 = math.tanh %243 : vector<8x128xf32>
    %245 = arith.mulf %241, %227 : vector<8x128xf32>
    %246 = arith.mulf %240, %244 : vector<8x128xf32>
    %247 = arith.addf %245, %246 : vector<8x128xf32>
    %248 = math.tanh %247 : vector<8x128xf32>
    %249 = arith.mulf %242, %248 : vector<8x128xf32>
    %250 = vector.extract_strided_slice %187 {offsets = [24, 0], sizes = [8, 512], strides = [1, 1]} : vector<64x512xf32> to vector<8x512xf32>
    %251 = arith.truncf %249 : vector<8x128xf32> to vector<8x128xbf16>
    %cst_45 = arith.constant dense<0.000000e+00> : vector<8x512xf32>
    %252 = tpu.matmul %251, %183, %cst_45 {dimension_numbers = #tpu.dot_dimension_numbers<[1], [0], [0], [1], [0, 0, 1, 1], [], []>} : vector<8x128xbf16>, vector<128x512xbf16>, vector<8x512xf32> -> vector<8x512xf32>
    %253 = arith.addf %250, %252 : vector<8x512xf32>
    %254 = vector.extract_strided_slice %253 {offsets = [0, 0], sizes = [8, 384], strides = [1, 1]} : vector<8x512xf32> to vector<8x384xf32>
    %255 = arith.negf %254 : vector<8x384xf32>
    %256 = math.exp %255 : vector<8x384xf32>
    %cst_46 = arith.constant 1.000000e+00 : f32
    %257 = vector.broadcast %cst_46 : f32 to vector<8x384xf32>
    %258 = arith.addf %257, %256 : vector<8x384xf32>
    %259 = arith.divf %257, %258 : vector<8x384xf32>
    %260 = vector.extract_strided_slice %259 {offsets = [0, 0], sizes = [8, 128], strides = [1, 1]} : vector<8x384xf32> to vector<8x128xf32>
    %261 = vector.extract_strided_slice %259 {offsets = [0, 128], sizes = [8, 128], strides = [1, 1]} : vector<8x384xf32> to vector<8x128xf32>
    %262 = vector.extract_strided_slice %259 {offsets = [0, 256], sizes = [8, 128], strides = [1, 1]} : vector<8x384xf32> to vector<8x128xf32>
    %263 = vector.extract_strided_slice %253 {offsets = [0, 384], sizes = [8, 128], strides = [1, 1]} : vector<8x512xf32> to vector<8x128xf32>
    %264 = math.tanh %263 : vector<8x128xf32>
    %265 = arith.mulf %261, %247 : vector<8x128xf32>
    %266 = arith.mulf %260, %264 : vector<8x128xf32>
    %267 = arith.addf %265, %266 : vector<8x128xf32>
    %268 = math.tanh %267 : vector<8x128xf32>
    %269 = arith.mulf %262, %268 : vector<8x128xf32>
    %270 = vector.extract_strided_slice %187 {offsets = [32, 0], sizes = [8, 512], strides = [1, 1]} : vector<64x512xf32> to vector<8x512xf32>
    %271 = arith.truncf %269 : vector<8x128xf32> to vector<8x128xbf16>
    %cst_47 = arith.constant dense<0.000000e+00> : vector<8x512xf32>
    %272 = tpu.matmul %271, %183, %cst_47 {dimension_numbers = #tpu.dot_dimension_numbers<[1], [0], [0], [1], [0, 0, 1, 1], [], []>} : vector<8x128xbf16>, vector<128x512xbf16>, vector<8x512xf32> -> vector<8x512xf32>
    %273 = arith.addf %270, %272 : vector<8x512xf32>
    %274 = vector.extract_strided_slice %273 {offsets = [0, 0], sizes = [8, 384], strides = [1, 1]} : vector<8x512xf32> to vector<8x384xf32>
    %275 = arith.negf %274 : vector<8x384xf32>
    %276 = math.exp %275 : vector<8x384xf32>
    %cst_48 = arith.constant 1.000000e+00 : f32
    %277 = vector.broadcast %cst_48 : f32 to vector<8x384xf32>
    %278 = arith.addf %277, %276 : vector<8x384xf32>
    %279 = arith.divf %277, %278 : vector<8x384xf32>
    %280 = vector.extract_strided_slice %279 {offsets = [0, 0], sizes = [8, 128], strides = [1, 1]} : vector<8x384xf32> to vector<8x128xf32>
    %281 = vector.extract_strided_slice %279 {offsets = [0, 128], sizes = [8, 128], strides = [1, 1]} : vector<8x384xf32> to vector<8x128xf32>
    %282 = vector.extract_strided_slice %279 {offsets = [0, 256], sizes = [8, 128], strides = [1, 1]} : vector<8x384xf32> to vector<8x128xf32>
    %283 = vector.extract_strided_slice %273 {offsets = [0, 384], sizes = [8, 128], strides = [1, 1]} : vector<8x512xf32> to vector<8x128xf32>
    %284 = math.tanh %283 : vector<8x128xf32>
    %285 = arith.mulf %281, %267 : vector<8x128xf32>
    %286 = arith.mulf %280, %284 : vector<8x128xf32>
    %287 = arith.addf %285, %286 : vector<8x128xf32>
    %288 = math.tanh %287 : vector<8x128xf32>
    %289 = arith.mulf %282, %288 : vector<8x128xf32>
    %290 = vector.extract_strided_slice %187 {offsets = [40, 0], sizes = [8, 512], strides = [1, 1]} : vector<64x512xf32> to vector<8x512xf32>
    %291 = arith.truncf %289 : vector<8x128xf32> to vector<8x128xbf16>
    %cst_49 = arith.constant dense<0.000000e+00> : vector<8x512xf32>
    %292 = tpu.matmul %291, %183, %cst_49 {dimension_numbers = #tpu.dot_dimension_numbers<[1], [0], [0], [1], [0, 0, 1, 1], [], []>} : vector<8x128xbf16>, vector<128x512xbf16>, vector<8x512xf32> -> vector<8x512xf32>
    %293 = arith.addf %290, %292 : vector<8x512xf32>
    %294 = vector.extract_strided_slice %293 {offsets = [0, 0], sizes = [8, 384], strides = [1, 1]} : vector<8x512xf32> to vector<8x384xf32>
    %295 = arith.negf %294 : vector<8x384xf32>
    %296 = math.exp %295 : vector<8x384xf32>
    %cst_50 = arith.constant 1.000000e+00 : f32
    %297 = vector.broadcast %cst_50 : f32 to vector<8x384xf32>
    %298 = arith.addf %297, %296 : vector<8x384xf32>
    %299 = arith.divf %297, %298 : vector<8x384xf32>
    %300 = vector.extract_strided_slice %299 {offsets = [0, 0], sizes = [8, 128], strides = [1, 1]} : vector<8x384xf32> to vector<8x128xf32>
    %301 = vector.extract_strided_slice %299 {offsets = [0, 128], sizes = [8, 128], strides = [1, 1]} : vector<8x384xf32> to vector<8x128xf32>
    %302 = vector.extract_strided_slice %299 {offsets = [0, 256], sizes = [8, 128], strides = [1, 1]} : vector<8x384xf32> to vector<8x128xf32>
    %303 = vector.extract_strided_slice %293 {offsets = [0, 384], sizes = [8, 128], strides = [1, 1]} : vector<8x512xf32> to vector<8x128xf32>
    %304 = math.tanh %303 : vector<8x128xf32>
    %305 = arith.mulf %301, %287 : vector<8x128xf32>
    %306 = arith.mulf %300, %304 : vector<8x128xf32>
    %307 = arith.addf %305, %306 : vector<8x128xf32>
    %308 = math.tanh %307 : vector<8x128xf32>
    %309 = arith.mulf %302, %308 : vector<8x128xf32>
    %310 = vector.extract_strided_slice %187 {offsets = [48, 0], sizes = [8, 512], strides = [1, 1]} : vector<64x512xf32> to vector<8x512xf32>
    %311 = arith.truncf %309 : vector<8x128xf32> to vector<8x128xbf16>
    %cst_51 = arith.constant dense<0.000000e+00> : vector<8x512xf32>
    %312 = tpu.matmul %311, %183, %cst_51 {dimension_numbers = #tpu.dot_dimension_numbers<[1], [0], [0], [1], [0, 0, 1, 1], [], []>} : vector<8x128xbf16>, vector<128x512xbf16>, vector<8x512xf32> -> vector<8x512xf32>
    %313 = arith.addf %310, %312 : vector<8x512xf32>
    %314 = vector.extract_strided_slice %313 {offsets = [0, 0], sizes = [8, 384], strides = [1, 1]} : vector<8x512xf32> to vector<8x384xf32>
    %315 = arith.negf %314 : vector<8x384xf32>
    %316 = math.exp %315 : vector<8x384xf32>
    %cst_52 = arith.constant 1.000000e+00 : f32
    %317 = vector.broadcast %cst_52 : f32 to vector<8x384xf32>
    %318 = arith.addf %317, %316 : vector<8x384xf32>
    %319 = arith.divf %317, %318 : vector<8x384xf32>
    %320 = vector.extract_strided_slice %319 {offsets = [0, 0], sizes = [8, 128], strides = [1, 1]} : vector<8x384xf32> to vector<8x128xf32>
    %321 = vector.extract_strided_slice %319 {offsets = [0, 128], sizes = [8, 128], strides = [1, 1]} : vector<8x384xf32> to vector<8x128xf32>
    %322 = vector.extract_strided_slice %319 {offsets = [0, 256], sizes = [8, 128], strides = [1, 1]} : vector<8x384xf32> to vector<8x128xf32>
    %323 = vector.extract_strided_slice %313 {offsets = [0, 384], sizes = [8, 128], strides = [1, 1]} : vector<8x512xf32> to vector<8x128xf32>
    %324 = math.tanh %323 : vector<8x128xf32>
    %325 = arith.mulf %321, %307 : vector<8x128xf32>
    %326 = arith.mulf %320, %324 : vector<8x128xf32>
    %327 = arith.addf %325, %326 : vector<8x128xf32>
    %328 = math.tanh %327 : vector<8x128xf32>
    %329 = arith.mulf %322, %328 : vector<8x128xf32>
    %330 = vector.extract_strided_slice %187 {offsets = [56, 0], sizes = [8, 512], strides = [1, 1]} : vector<64x512xf32> to vector<8x512xf32>
    %331 = arith.truncf %329 : vector<8x128xf32> to vector<8x128xbf16>
    %cst_53 = arith.constant dense<0.000000e+00> : vector<8x512xf32>
    %332 = tpu.matmul %331, %183, %cst_53 {dimension_numbers = #tpu.dot_dimension_numbers<[1], [0], [0], [1], [0, 0, 1, 1], [], []>} : vector<8x128xbf16>, vector<128x512xbf16>, vector<8x512xf32> -> vector<8x512xf32>
    %333 = arith.addf %330, %332 : vector<8x512xf32>
    %334 = vector.extract_strided_slice %333 {offsets = [0, 0], sizes = [8, 384], strides = [1, 1]} : vector<8x512xf32> to vector<8x384xf32>
    %335 = arith.negf %334 : vector<8x384xf32>
    %336 = math.exp %335 : vector<8x384xf32>
    %cst_54 = arith.constant 1.000000e+00 : f32
    %337 = vector.broadcast %cst_54 : f32 to vector<8x384xf32>
    %338 = arith.addf %337, %336 : vector<8x384xf32>
    %339 = arith.divf %337, %338 : vector<8x384xf32>
    %340 = vector.extract_strided_slice %339 {offsets = [0, 0], sizes = [8, 128], strides = [1, 1]} : vector<8x384xf32> to vector<8x128xf32>
    %341 = vector.extract_strided_slice %339 {offsets = [0, 128], sizes = [8, 128], strides = [1, 1]} : vector<8x384xf32> to vector<8x128xf32>
    %342 = vector.extract_strided_slice %339 {offsets = [0, 256], sizes = [8, 128], strides = [1, 1]} : vector<8x384xf32> to vector<8x128xf32>
    %343 = vector.extract_strided_slice %333 {offsets = [0, 384], sizes = [8, 128], strides = [1, 1]} : vector<8x512xf32> to vector<8x128xf32>
    %344 = math.tanh %343 : vector<8x128xf32>
    %345 = arith.mulf %341, %327 : vector<8x128xf32>
    %346 = arith.mulf %340, %344 : vector<8x128xf32>
    %347 = arith.addf %345, %346 : vector<8x128xf32>
    %348 = math.tanh %347 : vector<8x128xf32>
    %349 = arith.mulf %342, %348 : vector<8x128xf32>
    %350 = tpu.concatenate %209, %229, %249, %269, %289, %309, %329, %349 in 0 : vector<8x128xf32>, vector<8x128xf32>, vector<8x128xf32>, vector<8x128xf32>, vector<8x128xf32>, vector<8x128xf32>, vector<8x128xf32>, vector<8x128xf32> -> vector<64x128xf32>
    %351 = arith.truncf %350 : vector<64x128xf32> to vector<64x128xbf16>
    %c0_55 = arith.constant 0 : index
    %c0_56 = arith.constant 0 : index
    %352 = vector.load %arg9[%c0_55, %c0_56] : memref<24x64xbf16, #tpu.memory_space<vmem>>, vector<24x64xbf16>
    %cst_57 = arith.constant dense<0.000000e+00> : vector<24x128xf32>
    %353 = tpu.matmul %352, %351, %cst_57 {dimension_numbers = #tpu.dot_dimension_numbers<[1], [0], [0], [1], [0, 0, 1, 1], [], []>} : vector<24x64xbf16>, vector<64x128xbf16>, vector<24x128xf32> -> vector<24x128xf32>
    %354 = arith.truncf %353 : vector<24x128xf32> to vector<24x128xbf16>
    %c0_58 = arith.constant 0 : index
    %c0_59 = arith.constant 0 : index
    %355 = vector.load %arg10[%c0_58, %c0_59] : memref<128x128xbf16, #tpu.memory_space<vmem>>, vector<128x128xbf16>
    %cst_60 = arith.constant dense<0.000000e+00> : vector<24x128xf32>
    %356 = tpu.matmul %354, %355, %cst_60 {dimension_numbers = #tpu.dot_dimension_numbers<[1], [0], [0], [1], [0, 0, 1, 1], [], []>} : vector<24x128xbf16>, vector<128x128xbf16>, vector<24x128xf32> -> vector<24x128xf32>
    %c0_61 = arith.constant 0 : index
    %c0_62 = arith.constant 0 : index
    %357 = vector.load %arg11[%c0_61, %c0_62] : memref<1x128xf32, #tpu.memory_space<vmem>>, vector<1x128xf32>
    %358 = vector.broadcast %357 : vector<1x128xf32> to vector<24x128xf32>
    %359 = arith.addf %356, %358 : vector<24x128xf32>
    %360 = tpu.iota {dimensions = array<i32: 0>} : vector<24x1xi32>
    %c22_i32 = arith.constant 22 : i32
    %361 = vector.broadcast %c22_i32 : i32 to vector<24x1xi32>
    %362 = arith.cmpi slt, %360, %361 : vector<24x1xi32>
    %cst_63 = arith.constant 0.000000e+00 : f32
    %363 = vector.shape_cast %362 : vector<24x1xi1> to vector<24x1xi1>
    %364 = vector.broadcast %363 : vector<24x1xi1> to vector<24x128xi1>
    %365 = vector.broadcast %cst_63 : f32 to vector<24x128xf32>
    %366 = arith.select %364, %359, %365 : vector<24x128xi1>, vector<24x128xf32>
    %cst_64 = arith.constant dense<0.000000e+00> : vector<128xf32>
    %367 = vector.multi_reduction <add>, %366, %cst_64 [0] : vector<24x128xf32> to vector<128xf32>
    %368 = vector.shape_cast %367 : vector<128xf32> to vector<1x128xf32>
    %cst_65 = arith.constant 0.0454545468 : f32
    %369 = vector.broadcast %cst_65 : f32 to vector<1x128xf32>
    %370 = arith.mulf %368, %369 : vector<1x128xf32>
    %371 = vector.broadcast %370 : vector<1x128xf32> to vector<24x128xf32>
    %372 = arith.subf %359, %371 : vector<24x128xf32>
    %373 = arith.mulf %372, %372 : vector<24x128xf32>
    %cst_66 = arith.constant 0.000000e+00 : f32
    %374 = vector.shape_cast %362 : vector<24x1xi1> to vector<24x1xi1>
    %375 = vector.broadcast %374 : vector<24x1xi1> to vector<24x128xi1>
    %376 = vector.broadcast %cst_66 : f32 to vector<24x128xf32>
    %377 = arith.select %375, %373, %376 : vector<24x128xi1>, vector<24x128xf32>
    %cst_67 = arith.constant dense<0.000000e+00> : vector<128xf32>
    %378 = vector.multi_reduction <add>, %377, %cst_67 [0] : vector<24x128xf32> to vector<128xf32>
    %379 = vector.shape_cast %378 : vector<128xf32> to vector<1x128xf32>
    %cst_68 = arith.constant 0.0454545468 : f32
    %380 = vector.broadcast %cst_68 : f32 to vector<1x128xf32>
    %381 = arith.mulf %379, %380 : vector<1x128xf32>
    %c0_69 = arith.constant 0 : index
    %c0_70 = arith.constant 0 : index
    %382 = vector.load %arg12[%c0_69, %c0_70] : memref<1x128xf32, #tpu.memory_space<vmem>>, vector<1x128xf32>
    %cst_71 = arith.constant 9.99999974E-6 : f32
    %383 = vector.broadcast %cst_71 : f32 to vector<1x128xf32>
    %384 = arith.addf %381, %383 : vector<1x128xf32>
    %385 = math.rsqrt %384 : vector<1x128xf32>
    %386 = arith.mulf %382, %385 : vector<1x128xf32>
    %387 = vector.broadcast %386 : vector<1x128xf32> to vector<24x128xf32>
    %388 = arith.mulf %372, %387 : vector<24x128xf32>
    %c0_72 = arith.constant 0 : index
    %c0_73 = arith.constant 0 : index
    %389 = vector.load %arg13[%c0_72, %c0_73] : memref<1x128xf32, #tpu.memory_space<vmem>>, vector<1x128xf32>
    %390 = vector.broadcast %389 : vector<1x128xf32> to vector<24x128xf32>
    %391 = arith.addf %388, %390 : vector<24x128xf32>
    %c0_74 = arith.constant 0 : index
    %c0_75 = arith.constant 0 : index
    %392 = vector.load %arg14[%c0_74, %c0_75] : memref<24x128xf32, #tpu.memory_space<vmem>>, vector<24x128xf32>
    tpu.vector_store %arg14[%c0_74, %c0_75], %391 {strides = array<i32>} : memref<24x128xf32, #tpu.memory_space<vmem>>, vector<24x128xf32>,
    return
  }
}

</mosaic_0001>

<bundles_post_ra>
// kernel: _decoder_rnn_forward_impl.1
= control target key start
LH: loop header
LB: loop body
LE: loop exit
PB: predicated region body
PF: predicated region fallthrough
CT: control target
= control target key end

     0   :  { %v5885_v2 = vmov 0   ;;  %s5867_s0 = inlined_call_operand.vmem [shape: f32[8,32], index: 0, kind: input, shape index: {}]   ;;  %s5868_s1 = inlined_call_operand.vmem [shape: s32[56,1], index: 1, kind: input, shape index: {}]   ;;  %s5869_s2 = inlined_call_operand.vmem [shape: bf16[64,32], index: 2, kind: input, shape index: {}]   ;;  %s5870_s3 = inlined_call_operand.vmem [shape: bf16[32,512], index: 3, kind: input, shape index: {}]   ;;  %s5871_s4 = inlined_call_operand.vmem [shape: bf16[128,512], index: 4, kind: input, shape index: {}]   ;;  %s5872_s5 = inlined_call_operand.vmem [shape: f32[1,512], index: 5, kind: input, shape index: {}]   ;;  %s5873_s6 = inlined_call_operand.vmem [shape: bf16[128,512], index: 6, kind: input, shape index: {}]   ;;  %s5874_s7 = inlined_call_operand.vmem [shape: bf16[128,512], index: 7, kind: input, shape index: {}]   ;;  %s5875_s8 = inlined_call_operand.vmem [shape: f32[1,512], index: 8, kind: input, shape index: {}]   ;;  %s5876_s9 = inlined_call_operand.vmem [shape: bf16[24,64], index: 9, kind: input, shape index: {}]   ;;  %s5877_s10 = inlined_call_operand.vmem [shape: bf16[128,128], index: 10, kind: input, shape index: {}]   ;;  %s5878_s11 = inlined_call_operand.vmem [shape: f32[1,128], index: 11, kind: input, shape index: {}]   ;;  %s5879_s12 = inlined_call_operand.vmem [shape: f32[1,128], index: 12, kind: input, shape index: {}]   ;;  %s5880_s13 = inlined_call_operand.vmem [shape: f32[1,128], index: 13, kind: input, shape index: {}]   ;;  %s5881_s14 = inlined_call_operand.hbm [shape: f32[24,128], index: 14, kind: output, shape index: {}]  }
   0x1   :  { %v51_v0 = vld [vmem:[%s5868_s1 + $0x10] sm:$0xff]  ;;  %v49_v1 = vld [vmem:[%s5868_s1] sm:$0xff]  ;;  %3511 = vset.pattern.permute.xlu1 %v5885_v2  ;;  %3510 = vset.pattern.permute.xlu0 %v5885_v2  ;;  %v52_v3 = vld [vmem:[%s5868_s1 + $0x18] sm:$0xff] }
   0x2   :  { %65 = vperm.xlu1 %3511, %v51_v0   ;;  %59 = vperm.xlu0 %3510, %v49_v1   ;;  %v50_v4 = vld [vmem:[%s5868_s1 + $0x8] sm:$0xff]  ;;  %v3512_v5 = vld [vmem:[%s5869_s2] sm:$0xff]   ;;  %v3514_v9 = vld [vmem:[%s5869_s2 + $0x10] sm:$0xff]  }
   0x3   :  { %365 = vmatprep.mubr.bf16.mxu1 %v5885_v2  ;;  %v3513_v6 = vld [vmem:[%s5869_s2 + $0x8] sm:$0xff]   ;;  %v53_v8 = vld [vmem:[%s5868_s1 + $0x20] sm:$0xff]  ;;  %3457 = vmatprep.subr.bf16.mxu0 %v3512_v5  ;;  %v55_v10 = vld [vmem:[%s5868_s1 + $0x30] sm:$0xff] }
   0x4   :  { %v54_v7 = vld [vmem:[%s5868_s1 + $0x28] sm:$0xff]  ;;  %3458 = vmatpush3.bf16.msra.mxu0 %v3512_v5  ;;  %v3515_v11 = vld [vmem:[%s5869_s2 + $0x18] sm:$0xff]   ;;  %v3516_v12 = vld [vmem:[%s5870_s3 + $0x4] ss:$16 sps:$4 sm:$0xff]  }
   0x5   :  { %3459 = vmatprep.subr.bf16.mxu0 %v3513_v6  ;;  %v3518_v13 = vld [vmem:[%s5870_s3] ss:$16 sps:$4 sm:$0xff]   ;;  %v3521_v14 = vld [vmem:[%s5870_s3 + $0xc] ss:$16 sps:$4 sm:$0xff]   ;;  %v3522_v15 = vld [vmem:[%s5870_s3 + $0x24] ss:$16 sps:$4 sm:$0xff]   ;;  %333 = vmatprep.subr.bf16.mxu1 %v3516_v12 }
   0x6   :  { %68 = vperm.xlu1 %3511, %v52_v3   ;;  %62 = vperm.xlu0 %3510, %v50_v4  }
   0x7   :  { %334 = vmatpush1.bf16.msra.mxu1 %v3518_v13 }
   0x8   :  { %3460 = vmatpush3.bf16.msra.mxu0 %v3513_v6  ;;  %335 = vmatprep.subr.bf16.mxu1 %v3522_v15 }
   0x9   :  { %3461 = vmatprep.subr.bf16.mxu0 %v3514_v9 }
   0xa   :  { %74 = vperm.xlu1 %3511, %v54_v7   ;;  %71 = vperm.xlu0 %3510, %v53_v8  }
   0xc   :  { %3462 = vmatpush3.bf16.msra.mxu0 %v3514_v9 }
   0xd   :  { %3463 = vmatprep.subr.bf16.mxu0 %v3515_v11 }
   0xe   :  { %77 = vperm.xlu0 %3510, %v55_v10  }
  0x10   :  { %3464 = vmatpush3.bf16.msra.mxu0 %v3515_v11 }
  0x11   :  { %406 = vmatprep.subr.bf16.mxu0 %v3521_v14 }
  0x12   :  { %19 = vsyncpa [#allocation3], 0  ;;  %v56_v16 = vlaneseq  ;;  %vm136_vm4 = vcmask 523264   ;;  %v4029_v22 = vmov 0.0   ;;  %v3519_v29 = vld [vmem:[%s5870_s3 + $0x8] ss:$16 sps:$4 sm:$0xff]  }
  0x13   :  { %v3527_v38 = vld [vmem:[%s5870_s3 + $0x2c] ss:$16 sps:$4 sm:$0xff]   ;;  %v3524_v39 = vld [vmem:[%s5870_s3 + $0x20] ss:$16 sps:$4 sm:$0xff]   ;;  %v3525_v40 = vld [vmem:[%s5870_s3 + $0x28] ss:$16 sps:$4 sm:$0xff]  }
  0x14   :  { %v57_v17 = vand.u32 127, %v56_v16  ;;  %336 = vmatpush1.bf16.msra.mxu1 %v3524_v39  ;;  %v4177_v41 = vld [vmem:[%s5871_s4 + $0x4] ss:$16 sps:$4 sm:$0xff]   ;;  %v4182_v42 = vld [vmem:[%s5871_s4 + $0xc] ss:$16 sps:$4 sm:$0xff]   ;;  %vm320_vm8 = vcmask 261120  }
  0x15   :  { %639 = vmatprep.subr.bf16.mxu1 %v4177_v41  ;;  %v213_v43 = vld [vmem:[%s5867_s0] sm:$0xff]  ;;  %v4197_v47 = vld [vmem:[%s5871_s4 + $0x8] ss:$16 sps:$4 sm:$0xff]   ;;  %v4207_v51 = vld [vmem:[%s5871_s4 + $0x2c] ss:$16 sps:$4 sm:$0xff]   ;;  %s4030_s0 = smov [#allocation2]  }
  0x16   :  { %v4192_v46 = vld [vmem:[%s5871_s4] ss:$16 sps:$4 sm:$0xff]   ;;  %v4202_v50 = vld [vmem:[%s5871_s4 + $0x24] ss:$16 sps:$4 sm:$0xff]   ;;  %v4221_v55 = vld [vmem:[%s5871_s4 + $0x28] ss:$16 sps:$4 sm:$0xff]  }
  0x17   :  { %v4216_v54 = vld [vmem:[%s5871_s4 + $0x20] ss:$16 sps:$4 sm:$0xff]   ;;  %v4228_v56 = vld [vmem:[%s5871_s4 + $0x44] ss:$16 sps:$4 sm:$0xff]   ;;  %v4233_v57 = vld [vmem:[%s5871_s4 + $0x4c] ss:$16 sps:$4 sm:$0xff]  }
  0x18   :  { %v4242_v60 = vld [vmem:[%s5871_s4 + $0x40] ss:$16 sps:$4 sm:$0xff]   ;;  %v4247_v61 = vld [vmem:[%s5871_s4 + $0x48] ss:$16 sps:$4 sm:$0xff]   ;;  %v4254_v0 = vld [vmem:[%s5871_s4 + $0x64] ss:$16 sps:$4 sm:$0xff]  }
  0x19   :  { %v4259_v1 = vld [vmem:[%s5871_s4 + $0x6c] ss:$16 sps:$4 sm:$0xff]   ;;  %v4268_v5 = vld [vmem:[%s5871_s4 + $0x60] ss:$16 sps:$4 sm:$0xff]   ;;  %v4273_v6 = vld [vmem:[%s5871_s4 + $0x68] ss:$16 sps:$4 sm:$0xff]  }
  0x1a   :  { %v4280_v7 = vld [vmem:[%s5871_s4 + $0x84] ss:$16 sps:$4 sm:$0xff]   ;;  %v4285_v8 = vld [vmem:[%s5871_s4 + $0x8c] ss:$16 sps:$4 sm:$0xff]   ;;  %v4294_v9 = vld [vmem:[%s5871_s4 + $0x80] ss:$16 sps:$4 sm:$0xff]  }
  0x1b   :  { %v4299_v10 = vld [vmem:[%s5871_s4 + $0x88] ss:$16 sps:$4 sm:$0xff]   ;;  %v4306_v11 = vld [vmem:[%s5871_s4 + $0xa4] ss:$16 sps:$4 sm:$0xff]   ;;  %v4311_v12 = vld [vmem:[%s5871_s4 + $0xac] ss:$16 sps:$4 sm:$0xff]  }
  0x1c   :  { %v4320_v13 = vld [vmem:[%s5871_s4 + $0xa0] ss:$16 sps:$4 sm:$0xff]   ;;  %v4325_v14 = vld [vmem:[%s5871_s4 + $0xa8] ss:$16 sps:$4 sm:$0xff]   ;;  %v4332_v15 = vld [vmem:[%s5871_s4 + $0xc4] ss:$16 sps:$4 sm:$0xff]  }
  0x1d   :  { %s3233_s26 = sshll.u32 %s4030_s0, 4  ;;  %s3234_s26 = int_to_ptr.vmem [resolvable:$true] %s3233_s26 }
  0x1e   :  { %p4009_p1 = scmp.lt.s32.totalorder %s3234_s26, %s3234_s26 }
  0x81   :  { %v66_v18 = vpop.permute.xlu1 %65  ;;  %v60_v19 = vpop.permute.xlu0 %59 }
  0x82   :  { %vm81_vm0 = vcmp.eq.s32.totalorder %v66_v18, %v57_v17  ;;  %vm79_vm1 = vcmp.eq.s32.totalorder %v60_v19, %v57_v17  ;;  %v4346_v18 = vld [vmem:[%s5871_s4 + $0xc0] ss:$16 sps:$4 sm:$0xff]   ;;  %v4351_v19 = vld [vmem:[%s5871_s4 + $0xc8] ss:$16 sps:$4 sm:$0xff]  }
  0x83   :  { %v3246_v23 = vsel %vm81_vm0, 1.0, %v4029_v22  ;;  %v3244_v24 = vsel %vm79_vm1, 1.0, %v4029_v22 }
  0x85   :  { %v69_v20 = vpop.permute.xlu1 %68  ;;  %v63_v21 = vpop.permute.xlu0 %62 }
  0x86   :  { %vm82_vm2 = vcmp.eq.s32.totalorder %v69_v20, %v57_v17  ;;  %vm80_vm3 = vcmp.eq.s32.totalorder %v63_v21, %v57_v17  ;;  %v4358_v20 = vld [vmem:[%s5871_s4 + $0xe4] ss:$16 sps:$4 sm:$0xff]   ;;  %v4363_v21 = vld [vmem:[%s5871_s4 + $0xec] ss:$16 sps:$4 sm:$0xff]  }
  0x87   :  { %v3247_v25 = vsel %vm82_vm2, 1.0, %v4029_v22  ;;  %v3245_v26 = vsel %vm80_vm3, 1.0, %v4029_v22 }
  0x88   :  { %v101_v27 = vpack.c.bf16 %v3247_v25, %v3246_v23  ;;  %v100_v28 = vpack.c.bf16 %v3245_v26, %v3244_v24  ;;  %v4377_v23 = vld [vmem:[%s5871_s4 + $0xe8] ss:$16 sps:$4 sm:$0xff]   ;;  %v4424_v24 = vshrl.u32 %v56_v16, 7 }
  0x89   :  { %v75_v30 = vpop.permute.xlu1 %74  ;;  %v72_v31 = vpop.permute.xlu0 %71 }
  0x8a   :  { %vm84_vm5 = vcmp.eq.s32.totalorder %v75_v30, %v57_v17  ;;  %vm83_vm6 = vcmp.eq.s32.totalorder %v72_v31, %v57_v17  ;;  %3465 = vmatprep.mubr.msk.bf16.mxu0 %vm136_vm4, %v100_v28  ;;  %5892 = vst [vmem:[#allocation5_spill] sm:$0xff] %v4424_v24  ;;  %v4427_v25 = vsub.s32 0, %v4424_v24  ;;  %v5884_v26 = vsub.s32 2, %v4424_v24 }
  0x8b   :  { %v3249_v32 = vsel %vm84_vm5, 1.0, %v4029_v22  ;;  %v3248_v33 = vsel %vm83_vm6, 1.0, %v4029_v22  ;;  %3466 = vmatmul.mubr.msk.bf16.vlgmr.msra.gmra.mrb[0].mxu0 %vm136_vm4, %v101_v27  ;;  %v258_v27 = vld [vmem:[%s5872_s5] sm:$0xf]  ;;  %v5883_v28 = vsub.s32 1, %v4424_v24 }
  0x8c   :  { %v102_v34 = vpack.c.bf16 %v3249_v32, %v3248_v33  ;;  %407 = vmatpush1.bf16.msra.mxu0 %v3519_v29  ;;  %5893 = vst [vmem:[#allocation6_spill] sm:$0xff] %v4427_v25  ;;  %v5882_v29 = vsub.s32 3, %v4424_v24  ;;  %v263_v16 = vrot.slane %v258_v27, %v4427_v25  ;;  %v271_v32 = vrot.slane %v258_v27, %v5884_v26 }
  0x8d   :  { %v78_v35 = vpop.permute.xlu0 %77  ;;  %408 = vmatprep.subr.bf16.mxu0 %v3527_v38 }
  0x8e   :  { %vm85_vm7 = vcmp.eq.s32.totalorder %v78_v35, %v57_v17  ;;  %3469 = vmatprep.mubr.msk.bf16.mxu0 %vm136_vm4, %v102_v34  ;;  %v4337_v17 = vld [vmem:[%s5871_s4 + $0xcc] ss:$16 sps:$4 sm:$0xff]   ;;  %v267_v35 = vrot.slane %v258_v27, %v5883_v28 }
  0x8f   :  { %v3250_v36 = vsel %vm85_vm7, 1.0, %v4029_v22  ;;  %v4372_v22 = vld [vmem:[%s5871_s4 + $0xe0] ss:$16 sps:$4 sm:$0xff]  }
  0x90   :  { %v103_v37 = vpack.c.bf16 %v3250_v36, %v3250_v36  ;;  %409 = vmatpush1.bf16.msra.mxu0 %v3525_v40  ;;  %v275_v36 = vrot.slane %v258_v27, %v5882_v29 }
  0x91   :  { %680 = vmatprep.subr.bf16.mxu0 %v4182_v42 }
  0x93   :  { %3470 = vmatmul.mubr.msk.bf16.gmra.mrb[4].mxu0 %vm136_vm4, %v103_v37 }
  0x94   :  { %438 = vmatprep.mubr.bf16.mxu0 %v5885_v2 }
 0x15e   :  { %v3467_v44 = vpop.f32.mrb[0].mxu0 }
 0x15f   :  { %v183_v45 = vpop.f32.mrb[1].mxu0 }
 0x160   :  { %v214_v48 = vpack.c.bf16 %v183_v45, %v213_v43  ;;  %v3468_v49 = vpop.f32.mrb[2].mxu0 }
 0x161   :  { %v186_v52 = vpop.f32.mrb[3].mxu0 }
 0x162   :  { %v215_v53 = vpack.c.bf16 %v3467_v44, %v186_v52  ;;  %3267 = vmatmul.mubr.msk.bf16.vlgmr.msra.gmra.mrb[0].mxu1 %vm320_vm8, %v214_v48  ;;  %3271 = vmatmul.mubr.msk.bf16.vlgmr.msra.gmra.mrb[8].mxu0 %vm320_vm8, %v214_v48 }
 0x163   :  { %640 = vmatpush1.bf16.msra.mxu1 %v4192_v46  ;;  %681 = vmatpush1.bf16.msra.mxu0 %v4197_v47 }
 0x164   :  { %641 = vmatprep.subr.bf16.mxu1 %v4202_v50  ;;  %682 = vmatprep.subr.bf16.mxu0 %v4207_v51 }
 0x165   :  { %375 = vmatprep.mubr.bf16.mxu1 %v5885_v2  ;;  %448 = vmatprep.mubr.bf16.mxu0 %v5885_v2 }
 0x166   :  { %v3471_v58 = vpop.f32.mrb[4].mxu0 }
 0x167   :  { %642 = vmatpush1.bf16.msra.mxu1 %v4216_v54  ;;  %v199_v59 = vpop.f32.mrb[5].mxu0  ;;  %683 = vmatpush1.bf16.msra.mxu0 %v4221_v55 }
 0x168   :  { %v216_v62 = vpack.c.bf16 %v199_v59, %v3468_v49  ;;  %v3472_v63 = vpop.f32.mrb[6].mxu0  ;;  %643 = vmatprep.subr.bf16.mxu1 %v4228_v56  ;;  %684 = vmatprep.subr.bf16.mxu0 %v4233_v57 }
 0x169   :  { %v202_v3 = vpop.f32.mrb[7].mxu0 }
 0x16a   :  { %v217_v4 = vpack.c.bf16 %v3471_v58, %v202_v3  ;;  %3268 = vmatmul.mubr.msk.bf16.gmra.mrb[4].mxu1 %vm320_vm8, %v215_v53  ;;  %3272 = vmatmul.mubr.msk.bf16.gmra.mrb[12].mxu0 %vm320_vm8, %v215_v53 }
 0x16b   :  { %644 = vmatpush1.bf16.msra.mxu1 %v4242_v60  ;;  %685 = vmatpush1.bf16.msra.mxu0 %v4247_v61 }
 0x16c   :  { %645 = vmatprep.subr.bf16.mxu1 %v4254_v0  ;;  %686 = vmatprep.subr.bf16.mxu0 %v4259_v1 }
 0x16d   :  { %385 = vmatprep.mubr.bf16.mxu1 %v5885_v2  ;;  %458 = vmatprep.mubr.bf16.mxu0 %v5885_v2 }
 0x16f   :  { %646 = vmatpush1.bf16.msra.mxu1 %v4268_v5  ;;  %687 = vmatpush1.bf16.msra.mxu0 %v4273_v6 }
 0x170   :  { %647 = vmatprep.subr.bf16.mxu1 %v4280_v7  ;;  %688 = vmatprep.subr.bf16.mxu0 %v4285_v8 }
 0x172   :  { %3269 = vmatmul.mubr.msk.bf16.gmra.mrb[8].mxu1 %vm320_vm8, %v216_v62  ;;  %3273 = vmatmul.mubr.msk.bf16.gmra.mrb[16].mxu0 %vm320_vm8, %v216_v62 }
 0x173   :  { %648 = vmatpush1.bf16.msra.mxu1 %v4294_v9  ;;  %689 = vmatpush1.bf16.msra.mxu0 %v4299_v10 }
 0x174   :  { %649 = vmatprep.subr.bf16.mxu1 %v4306_v11  ;;  %690 = vmatprep.subr.bf16.mxu0 %v4311_v12 }
 0x175   :  { %395 = vmatprep.mubr.bf16.mxu1 %v5885_v2  ;;  %468 = vmatprep.mubr.bf16.mxu0 %v5885_v2 }
 0x177   :  { %650 = vmatpush1.bf16.msra.mxu1 %v4320_v13  ;;  %691 = vmatpush1.bf16.msra.mxu0 %v4325_v14 }
 0x178   :  { %651 = vmatprep.subr.bf16.mxu1 %v4332_v15  ;;  %692 = vmatprep.subr.bf16.mxu0 %v4337_v17 }
 0x17a   :  { %3270 = vmatmul.mubr.msk.bf16.gmra.mrb[12].mxu1 %vm320_vm8, %v217_v4  ;;  %3274 = vmatmul.mubr.msk.bf16.gmra.mrb[20].mxu0 %vm320_vm8, %v217_v4 }
 0x17b   :  { %652 = vmatpush1.bf16.msra.mxu1 %v4346_v18  ;;  %693 = vmatpush1.bf16.msra.mxu0 %v4351_v19 }
 0x17c   :  { %653 = vmatprep.subr.bf16.mxu1 %v4358_v20  ;;  %694 = vmatprep.subr.bf16.mxu0 %v4363_v21 }
 0x17d   :  { %671 = vmatprep.mubr.bf16.mxu1 %v5885_v2  ;;  %712 = vmatprep.mubr.bf16.mxu0 %v5885_v2 }
 0x17f   :  { %654 = vmatpush1.bf16.msra.mxu1 %v4372_v22  ;;  %695 = vmatpush1.bf16.msra.mxu0 %v4377_v23 }
 0x180   :  { %750 = vmatprep.subr.bf16.mxu1 %v4177_v41  ;;  %791 = vmatprep.subr.bf16.mxu0 %v4182_v42 }
 0x182   :  { %672 = vmatmul.mubr.bf16.vlgmr.msra.gmra.mrb[16].mxu1 %v5885_v2  ;;  %713 = vmatmul.mubr.bf16.vlgmr.msra.gmra.mrb[24].mxu0 %v5885_v2 }
 0x183   :  { %751 = vmatpush1.bf16.msra.mxu1 %v4192_v46  ;;  %792 = vmatpush1.bf16.msra.mxu0 %v4197_v47 }
 0x184   :  { %752 = vmatprep.subr.bf16.mxu1 %v4202_v50  ;;  %793 = vmatprep.subr.bf16.mxu0 %v4207_v51 }
 0x185   :  { %782 = vmatprep.mubr.bf16.mxu1 %v5885_v2  ;;  %823 = vmatprep.mubr.bf16.mxu0 %v5885_v2 }
 0x187   :  { %753 = vmatpush1.bf16.msra.mxu1 %v4216_v54  ;;  %794 = vmatpush1.bf16.msra.mxu0 %v4221_v55 }
 0x188   :  { %754 = vmatprep.subr.bf16.mxu1 %v4228_v56  ;;  %795 = vmatprep.subr.bf16.mxu0 %v4233_v57 }
 0x18b   :  { %755 = vmatpush1.bf16.msra.mxu1 %v4242_v60  ;;  %796 = vmatpush1.bf16.msra.mxu0 %v4247_v61 }
 0x18c   :  { %756 = vmatprep.subr.bf16.mxu1 %v4254_v0  ;;  %797 = vmatprep.subr.bf16.mxu0 %v4259_v1 }
 0x18f   :  { %757 = vmatpush1.bf16.msra.mxu1 %v4268_v5  ;;  %798 = vmatpush1.bf16.msra.mxu0 %v4273_v6 }
 0x190   :  { %758 = vmatprep.subr.bf16.mxu1 %v4280_v7  ;;  %799 = vmatprep.subr.bf16.mxu0 %v4285_v8 }
 0x193   :  { %759 = vmatpush1.bf16.msra.mxu1 %v4294_v9  ;;  %800 = vmatpush1.bf16.msra.mxu0 %v4299_v10 }
 0x194   :  { %760 = vmatprep.subr.bf16.mxu1 %v4306_v11  ;;  %801 = vmatprep.subr.bf16.mxu0 %v4311_v12 }
 0x197   :  { %761 = vmatpush1.bf16.msra.mxu1 %v4320_v13  ;;  %802 = vmatpush1.bf16.msra.mxu0 %v4325_v14 }
 0x198   :  { %762 = vmatprep.subr.bf16.mxu1 %v4332_v15  ;;  %803 = vmatprep.subr.bf16.mxu0 %v4337_v17 }
 0x19b   :  { %763 = vmatpush1.bf16.msra.mxu1 %v4346_v18  ;;  %804 = vmatpush1.bf16.msra.mxu0 %v4351_v19 }
 0x19c   :  { %764 = vmatprep.subr.bf16.mxu1 %v4358_v20  ;;  %805 = vmatprep.subr.bf16.mxu0 %v4363_v21 }
 0x19f   :  { %765 = vmatpush1.bf16.msra.mxu1 %v4372_v22  ;;  %806 = vmatpush1.bf16.msra.mxu0 %v4377_v23 }
 0x1a0   :  { %861 = vmatprep.subr.bf16.mxu1 %v4177_v41  ;;  %902 = vmatprep.subr.bf16.mxu0 %v4182_v42 }
 0x235   :  { %v4435_v30 = vpop.f32.mrb[0].mxu1  ;;  %v4437_v31 = vpop.f32.mrb[8].mxu0 }
 0x236   :  { %v369_v33 = vpop.f32.mrb[1].mxu1  ;;  %v442_v34 = vpop.f32.mrb[9].mxu0 }
 0x237   :  { %v371_v37 = vpop.f32.mrb[2].mxu1  ;;  %v444_v38 = vpop.f32.mrb[10].mxu0 }
 0x238   :  { %v4446_v39 = vadd.f32 %v371_v37, %v263_v16  ;;  %v4448_v40 = vadd.f32 %v444_v38, %v271_v32  ;;  %v373_v43 = vpop.f32.mrb[3].mxu1  ;;  %v446_v44 = vpop.f32.mrb[11].mxu0 }
 0x239   :  { %v4450_v45 = vadd.f32 %v373_v43, %v267_v35  ;;  %v4452_v48 = vadd.f32 %v446_v44, %v275_v36 }
 0x23d   :  { %v377_v49 = vpop.f32.mrb[4].mxu1  ;;  %v450_v52 = vpop.f32.mrb[12].mxu0 }
 0x23e   :  { %v4454_v53 = vadd.f32 %v377_v49, %v263_v16  ;;  %v4456_v58 = vadd.f32 %v450_v52, %v271_v32  ;;  %v379_v59 = vpop.f32.mrb[5].mxu1  ;;  %v452_v62 = vpop.f32.mrb[13].mxu0 }
 0x23f   :  { %v4458_v63 = vadd.f32 %v379_v59, %v267_v35  ;;  %v4460_v3 = vadd.f32 %v452_v62, %v275_v36  ;;  %v381_v4 = vpop.f32.mrb[6].mxu1  ;;  %v454_v27 = vpop.f32.mrb[14].mxu0 }
 0x240   :  { %v4462_v37 = vadd.f32 %v381_v4, %v263_v16  ;;  %v4464_v38 = vadd.f32 %v454_v27, %v271_v32  ;;  %v383_v43 = vpop.f32.mrb[7].mxu1  ;;  %v456_v44 = vpop.f32.mrb[15].mxu0 }
 0x241   :  { %5894 = vst [vmem:[#allocation7_spill] sm:$0xff] %v4458_v63  ;;  %5895 = vst [vmem:[#allocation8_spill] sm:$0xff] %v4460_v3  ;;  %v4466_v29 = vadd.f32 %v383_v43, %v267_v35  ;;  %v4468_v49 = vadd.f32 %v456_v44, %v275_v36 }
 0x242   :  { %5896 = vst [vmem:[#allocation9_spill] sm:$0xff] %v4462_v37  ;;  %5897 = vst [vmem:[#allocation10_spill] sm:$0xff] %v4464_v38 }
 0x243   :  { %5898 = vst [vmem:[#allocation11_spill] sm:$0xff] %v4466_v29  ;;  %5899 = vst [vmem:[#allocation12_spill] sm:$0xff] %v4468_v49 }
 0x245   :  { %v387_v52 = vpop.f32.mrb[8].mxu1  ;;  %v460_v28 = vpop.f32.mrb[16].mxu0 }
 0x246   :  { %v4470_v26 = vadd.f32 %v387_v52, %v263_v16  ;;  %v4472_v59 = vadd.f32 %v460_v28, %v271_v32  ;;  %v389_v62 = vpop.f32.mrb[9].mxu1  ;;  %v462_v2 = vpop.f32.mrb[17].mxu0 }
 0x247   :  { %v4474_v24 = vadd.f32 %v389_v62, %v267_v35  ;;  %v4476_v4 = vadd.f32 %v462_v2, %v275_v36  ;;  %v391_v27 = vpop.f32.mrb[10].mxu1  ;;  %v464_v25 = vpop.f32.mrb[18].mxu0 }
 0x248   :  { %5900 = vst [vmem:[#allocation13_spill] sm:$0xff] %v4470_v26  ;;  %5901 = vst [vmem:[#allocation14_spill] sm:$0xff] %v4472_v59  ;;  %v4478_v38 = vadd.f32 %v391_v27, %v263_v16  ;;  %v4480_v43 = vadd.f32 %v464_v25, %v271_v32  ;;  %v393_v44 = vpop.f32.mrb[11].mxu1  ;;  %v466_v49 = vpop.f32.mrb[19].mxu0 }
 0x249   :  { %5902 = vst [vmem:[#allocation15_spill] sm:$0xff] %v4474_v24  ;;  %5903 = vst [vmem:[#allocation16_spill] sm:$0xff] %v4476_v4  ;;  %v4482_v29 = vadd.f32 %v393_v44, %v267_v35  ;;  %v4484_v52 = vadd.f32 %v466_v49, %v275_v36 }
 0x24a   :  { %5904 = vst [vmem:[#allocation17_spill] sm:$0xff] %v4478_v38  ;;  %5905 = vst [vmem:[#allocation18_spill] sm:$0xff] %v4480_v43 }
 0x24b   :  { %5906 = vst [vmem:[#allocation19_spill] sm:$0xff] %v4482_v29  ;;  %5907 = vst [vmem:[#allocation20_spill] sm:$0xff] %v4484_v52 }
 0x24d   :  { %v397_v28 = vpop.f32.mrb[12].mxu1  ;;  %v470_v59 = vpop.f32.mrb[20].mxu0 }
 0x24e   :  { %v4486_v26 = vadd.f32 %v397_v28, %v263_v16  ;;  %v4488_v62 = vadd.f32 %v470_v59, %v271_v32  ;;  %v399_v2 = vpop.f32.mrb[13].mxu1  ;;  %v472_v4 = vpop.f32.mrb[21].mxu0  ;;  %v368_v59 = vadd.f32 %v4435_v30, %v263_v16 }
 0x24f   :  { %v4490_v24 = vadd.f32 %v399_v2, %v267_v35  ;;  %v4492_v27 = vadd.f32 %v472_v4, %v275_v36  ;;  %v401_v25 = vpop.f32.mrb[14].mxu1  ;;  %v474_v43 = vpop.f32.mrb[22].mxu0  ;;  %v370_v2 = vadd.f32 %v369_v33, %v267_v35 }
 0x250   :  { %5908 = vst [vmem:[#allocation21_spill] sm:$0xff] %v4486_v26  ;;  %5909 = vst [vmem:[#allocation22_spill] sm:$0xff] %v4488_v62  ;;  %v4494_v38 = vadd.f32 %v401_v25, %v263_v16  ;;  %v4496_v44 = vadd.f32 %v474_v43, %v271_v32  ;;  %v403_v49 = vpop.f32.mrb[15].mxu1  ;;  %v476_v52 = vpop.f32.mrb[23].mxu0  ;;  %v441_v62 = vadd.f32 %v4437_v31, %v271_v32 }
 0x251   :  { %5910 = vst [vmem:[#allocation23_spill] sm:$0xff] %v4490_v24  ;;  %5911 = vst [vmem:[#allocation24_spill] sm:$0xff] %v4492_v27  ;;  %v4498_v29 = vadd.f32 %v403_v49, %v267_v35  ;;  %v4500_v28 = vadd.f32 %v476_v52, %v275_v36  ;;  %v443_v24 = vadd.f32 %v442_v34, %v275_v36 }
 0x252   :  { %5912 = vst [vmem:[#allocation25_spill] sm:$0xff] %v4494_v38  ;;  %5913 = vst [vmem:[#allocation26_spill] sm:$0xff] %v4496_v44 }
 0x253   :  { %5914 = vst [vmem:[#allocation27_spill] sm:$0xff] %v4498_v29  ;;  %5915 = vst [vmem:[#allocation28_spill] sm:$0xff] %v4500_v28 }
 0x255   :  { %v673_v4 = vpop.f32.mrb[16].mxu1  ;;  %v714_v27 = vpop.f32.mrb[24].mxu0 }
 0x256   :  { %v721_v26 = vadd.f32 %v673_v4, %v368_v59  ;;  %v723_v37 = vadd.f32 %v714_v27, %v441_v62  ;;  %v675_v25 = vpop.f32.mrb[17].mxu1  ;;  %v716_v38 = vpop.f32.mrb[25].mxu0 }
 0x257   :  { %v722_v43 = vadd.f32 %v675_v25, %v370_v2  ;;  %v724_v44 = vadd.f32 %v716_v38, %v443_v24  ;;  %v677_v3 = vpop.f32.mrb[18].mxu1  ;;  %v718_v63 = vpop.f32.mrb[26].mxu0 }
 0x258   :  { %v3307_v49 = vmul.f32 -1.442695, %v721_v26  ;;  %v678_v29 = vpop.f32.mrb[19].mxu1  ;;  %v719_v52 = vpop.f32.mrb[27].mxu0  ;;  %v3309_v30 = vmul.f32 -1.442695, %v723_v37 }
 0x259   :  { %v3308_v28 = vmul.f32 -1.442695, %v722_v43 }
 0x25a   :  { %3682 = vpow2.f32 %v3307_v49 }
 0x25b   :  { %3684 = vpow2.f32 %v3308_v28 }
 0x25c   :  { %3686 = vtanh.f32 %v724_v44  ;;  %v5916_v44 = vmov 0  }
 0x25d   :  { %3688 = vpow2.f32 %v3309_v30 }
 0x264   :  { %v3683_v31 = vpop.eup %3682 }
 0x265   :  { %v734_v16 = vadd.f32 1.0, %v3683_v31  ;;  %v3685_v32 = vpop.eup %3684 }
 0x266   :  { %v735_v33 = vadd.f32 1.0, %v3685_v32  ;;  %v3687_v34 = vpop.eup %3686 }
 0x267   :  { %3690 = vrcp.f32 %v734_v16  ;;  %v3689_v35 = vpop.eup %3688 }
 0x268   :  { %3692 = vrcp.f32 %v735_v33  ;;  %v736_v26 = vadd.f32 1.0, %v3689_v35 }
 0x26a   :  { %3694 = vrcp.f32 %v736_v26 }
 0x271   :  { %v3691_v24 = vpop.eup %3690 }
 0x272   :  { %v745_v36 = vmul.f32 %v3691_v24, %v3687_v34  ;;  %v3693_v63 = vpop.eup %3692 }
 0x273   :  { %v744_v29 = vmul.f32 0.0, %v3693_v63 }
 0x274   :  { %v3695_v37 = vpop.eup %3694 }
 0x275   :  { %v4504_v3 = vadd.f32 %v745_v36, %v744_v29 }
 0x277   :  { %3696 = vtanh.f32 %v4504_v3 }
 0x281   :  { %v3697_v38 = vpop.eup %3696 }
 0x282   :  { %v4507_v62 = vmul.f32 %v3697_v38, %v3695_v37 }
 0x284   :  { %v749_v27 = vpack.c.bf16 %v4507_v62, %v4507_v62 }
 0x286   :  { %783 = vmatmul.mubr.bf16.vlgmr.msra.gmra.mrb[20].mxu1 %v749_v27  ;;  %824 = vmatmul.mubr.bf16.vlgmr.msra.gmra.mrb[28].mxu0 %v749_v27 }
 0x287   :  { %862 = vmatpush1.bf16.msra.mxu1 %v4192_v46  ;;  %903 = vmatpush1.bf16.msra.mxu0 %v4197_v47 }
 0x288   :  { %863 = vmatprep.subr.bf16.mxu1 %v4202_v50  ;;  %904 = vmatprep.subr.bf16.mxu0 %v4207_v51 }
 0x289   :  { %893 = vmatprep.mubr.bf16.mxu1 %v5916_v44  ;;  %934 = vmatprep.mubr.bf16.mxu0 %v5916_v44 }
 0x28b   :  { %864 = vmatpush1.bf16.msra.mxu1 %v4216_v54  ;;  %905 = vmatpush1.bf16.msra.mxu0 %v4221_v55 }
 0x28c   :  { %865 = vmatprep.subr.bf16.mxu1 %v4228_v56  ;;  %906 = vmatprep.subr.bf16.mxu0 %v4233_v57 }
 0x28f   :  { %866 = vmatpush1.bf16.msra.mxu1 %v4242_v60  ;;  %907 = vmatpush1.bf16.msra.mxu0 %v4247_v61 }
 0x290   :  { %867 = vmatprep.subr.bf16.mxu1 %v4254_v0  ;;  %908 = vmatprep.subr.bf16.mxu0 %v4259_v1 }
 0x293   :  { %868 = vmatpush1.bf16.msra.mxu1 %v4268_v5  ;;  %909 = vmatpush1.bf16.msra.mxu0 %v4273_v6 }
 0x294   :  { %869 = vmatprep.subr.bf16.mxu1 %v4280_v7  ;;  %910 = vmatprep.subr.bf16.mxu0 %v4285_v8 }
 0x297   :  { %870 = vmatpush1.bf16.msra.mxu1 %v4294_v9  ;;  %911 = vmatpush1.bf16.msra.mxu0 %v4299_v10 }
 0x298   :  { %871 = vmatprep.subr.bf16.mxu1 %v4306_v11  ;;  %912 = vmatprep.subr.bf16.mxu0 %v4311_v12 }
 0x29b   :  { %872 = vmatpush1.bf16.msra.mxu1 %v4320_v13  ;;  %913 = vmatpush1.bf16.msra.mxu0 %v4325_v14 }
 0x29c   :  { %873 = vmatprep.subr.bf16.mxu1 %v4332_v15  ;;  %914 = vmatprep.subr.bf16.mxu0 %v4337_v17 }
 0x29f   :  { %874 = vmatpush1.bf16.msra.mxu1 %v4346_v18  ;;  %915 = vmatpush1.bf16.msra.mxu0 %v4351_v19 }
 0x2a0   :  { %875 = vmatprep.subr.bf16.mxu1 %v4358_v20  ;;  %916 = vmatprep.subr.bf16.mxu0 %v4363_v21 }
 0x2a3   :  { %876 = vmatpush1.bf16.msra.mxu1 %v4372_v22  ;;  %917 = vmatpush1.bf16.msra.mxu0 %v4377_v23 }
 0x2a4   :  { %972 = vmatprep.subr.bf16.mxu1 %v4177_v41  ;;  %1013 = vmatprep.subr.bf16.mxu0 %v4182_v42 }
 0x359   :  { %v784_v28 = vpop.f32.mrb[20].mxu1  ;;  %v825_v59 = vpop.f32.mrb[28].mxu0 }
 0x35a   :  { %v832_v2 = vadd.f32 %v784_v28, %v4446_v39  ;;  %v834_v4 = vadd.f32 %v825_v59, %v4448_v40  ;;  %v786_v25 = vpop.f32.mrb[21].mxu1  ;;  %v827_v43 = vpop.f32.mrb[29].mxu0 }
 0x35b   :  { %v833_v49 = vadd.f32 %v786_v25, %v4450_v45  ;;  %v835_v52 = vadd.f32 %v827_v43, %v4452_v48  ;;  %v788_v30 = vpop.f32.mrb[22].mxu1  ;;  %v829_v31 = vpop.f32.mrb[30].mxu0 }
 0x35c   :  { %v3310_v16 = vmul.f32 -1.442695, %v832_v2  ;;  %v789_v32 = vpop.f32.mrb[23].mxu1  ;;  %v830_v33 = vpop.f32.mrb[31].mxu0  ;;  %v3312_v35 = vmul.f32 -1.442695, %v834_v4 }
 0x35d   :  { %v3311_v34 = vmul.f32 -1.442695, %v833_v49  ;;  %v5917_v31 = vld [vmem:[#allocation7_spill] sm:$0xff]  ;;  %v5918_v32 = vld [vmem:[#allocation8_spill] sm:$0xff] }
 0x35e   :  { %3698 = vpow2.f32 %v3310_v16 }
 0x35f   :  { %3700 = vpow2.f32 %v3311_v34 }
 0x360   :  { %3702 = vtanh.f32 %v835_v52 }
 0x361   :  { %3704 = vpow2.f32 %v3312_v35 }
 0x368   :  { %v3699_v24 = vpop.eup %3698 }
 0x369   :  { %v845_v36 = vadd.f32 1.0, %v3699_v24  ;;  %v3701_v39 = vpop.eup %3700 }
 0x36a   :  { %v846_v40 = vadd.f32 1.0, %v3701_v39  ;;  %v3703_v45 = vpop.eup %3702 }
 0x36b   :  { %3706 = vrcp.f32 %v845_v36  ;;  %v3705_v63 = vpop.eup %3704 }
 0x36c   :  { %3708 = vrcp.f32 %v846_v40  ;;  %v847_v37 = vadd.f32 1.0, %v3705_v63 }
 0x36e   :  { %3710 = vrcp.f32 %v847_v37 }
 0x375   :  { %v3707_v48 = vpop.eup %3706 }
 0x376   :  { %v856_v26 = vmul.f32 %v3707_v48, %v3703_v45  ;;  %v3709_v29 = vpop.eup %3708 }
 0x377   :  { %v855_v38 = vmul.f32 %v3709_v29, %v4504_v3 }
 0x378   :  { %v3711_v28 = vpop.eup %3710 }
 0x379   :  { %v4550_v27 = vadd.f32 %v856_v26, %v855_v38 }
 0x37b   :  { %3712 = vtanh.f32 %v4550_v27 }
 0x385   :  { %v3713_v59 = vpop.eup %3712 }
 0x386   :  { %v4553_v2 = vmul.f32 %v3713_v59, %v3711_v28 }
 0x388   :  { %v860_v4 = vpack.c.bf16 %v4553_v2, %v4553_v2 }
 0x38a   :  { %894 = vmatmul.mubr.bf16.vlgmr.msra.gmra.mrb[24].mxu1 %v860_v4  ;;  %935 = vmatmul.mubr.bf16.vlgmr.msra.gmra.mrb[32].mxu0 %v860_v4 }
 0x38b   :  { %973 = vmatpush1.bf16.msra.mxu1 %v4192_v46  ;;  %1014 = vmatpush1.bf16.msra.mxu0 %v4197_v47 }
 0x38c   :  { %974 = vmatprep.subr.bf16.mxu1 %v4202_v50  ;;  %1015 = vmatprep.subr.bf16.mxu0 %v4207_v51 }
 0x38d   :  { %1004 = vmatprep.mubr.bf16.mxu1 %v5916_v44  ;;  %1045 = vmatprep.mubr.bf16.mxu0 %v5916_v44 }
 0x38f   :  { %975 = vmatpush1.bf16.msra.mxu1 %v4216_v54  ;;  %1016 = vmatpush1.bf16.msra.mxu0 %v4221_v55 }
 0x390   :  { %976 = vmatprep.subr.bf16.mxu1 %v4228_v56  ;;  %1017 = vmatprep.subr.bf16.mxu0 %v4233_v57 }
 0x393   :  { %977 = vmatpush1.bf16.msra.mxu1 %v4242_v60  ;;  %1018 = vmatpush1.bf16.msra.mxu0 %v4247_v61 }
 0x394   :  { %978 = vmatprep.subr.bf16.mxu1 %v4254_v0  ;;  %1019 = vmatprep.subr.bf16.mxu0 %v4259_v1 }
 0x397   :  { %979 = vmatpush1.bf16.msra.mxu1 %v4268_v5  ;;  %1020 = vmatpush1.bf16.msra.mxu0 %v4273_v6 }
 0x398   :  { %980 = vmatprep.subr.bf16.mxu1 %v4280_v7  ;;  %1021 = vmatprep.subr.bf16.mxu0 %v4285_v8 }
 0x39b   :  { %981 = vmatpush1.bf16.msra.mxu1 %v4294_v9  ;;  %1022 = vmatpush1.bf16.msra.mxu0 %v4299_v10 }
 0x39c   :  { %982 = vmatprep.subr.bf16.mxu1 %v4306_v11  ;;  %1023 = vmatprep.subr.bf16.mxu0 %v4311_v12 }
 0x39f   :  { %983 = vmatpush1.bf16.msra.mxu1 %v4320_v13  ;;  %1024 = vmatpush1.bf16.msra.mxu0 %v4325_v14 }
 0x3a0   :  { %984 = vmatprep.subr.bf16.mxu1 %v4332_v15  ;;  %1025 = vmatprep.subr.bf16.mxu0 %v4337_v17 }
 0x3a3   :  { %985 = vmatpush1.bf16.msra.mxu1 %v4346_v18  ;;  %1026 = vmatpush1.bf16.msra.mxu0 %v4351_v19 }
 0x3a4   :  { %986 = vmatprep.subr.bf16.mxu1 %v4358_v20  ;;  %1027 = vmatprep.subr.bf16.mxu0 %v4363_v21 }
 0x3a7   :  { %987 = vmatpush1.bf16.msra.mxu1 %v4372_v22  ;;  %1028 = vmatpush1.bf16.msra.mxu0 %v4377_v23 }
 0x3a8   :  { %1083 = vmatprep.subr.bf16.mxu1 %v4177_v41  ;;  %1124 = vmatprep.subr.bf16.mxu0 %v4182_v42 }
 0x45d   :  { %v895_v3 = vpop.f32.mrb[24].mxu1  ;;  %v936_v25 = vpop.f32.mrb[32].mxu0 }
 0x45e   :  { %v943_v43 = vadd.f32 %v895_v3, %v4454_v53  ;;  %v945_v49 = vadd.f32 %v936_v25, %v4456_v58  ;;  %v897_v52 = vpop.f32.mrb[25].mxu1  ;;  %v938_v30 = vpop.f32.mrb[33].mxu0 }
 0x45f   :  { %v944_v16 = vadd.f32 %v897_v52, %v5917_v31  ;;  %v946_v33 = vadd.f32 %v938_v30, %v5918_v32  ;;  %v899_v34 = vpop.f32.mrb[26].mxu1  ;;  %v940_v35 = vpop.f32.mrb[34].mxu0  ;;  %v5919_v31 = vld [vmem:[#allocation9_spill] sm:$0xff]  ;;  %v5920_v32 = vld [vmem:[#allocation10_spill] sm:$0xff] }
 0x460   :  { %v3313_v24 = vmul.f32 -1.442695, %v943_v43  ;;  %v900_v36 = vpop.f32.mrb[27].mxu1  ;;  %v941_v39 = vpop.f32.mrb[35].mxu0  ;;  %v3315_v45 = vmul.f32 -1.442695, %v945_v49 }
 0x461   :  { %v3314_v40 = vmul.f32 -1.442695, %v944_v16  ;;  %v5922_v39 = vld [vmem:[#allocation12_spill] sm:$0xff] }
 0x462   :  { %3714 = vpow2.f32 %v3313_v24  ;;  %v5921_v24 = vld [vmem:[#allocation11_spill] sm:$0xff] }
 0x463   :  { %3716 = vpow2.f32 %v3314_v40 }
 0x464   :  { %3718 = vtanh.f32 %v946_v33 }
 0x465   :  { %3720 = vpow2.f32 %v3315_v45 }
 0x46c   :  { %v3715_v63 = vpop.eup %3714 }
 0x46d   :  { %v956_v48 = vadd.f32 1.0, %v3715_v63  ;;  %v3717_v53 = vpop.eup %3716 }
 0x46e   :  { %v957_v58 = vadd.f32 1.0, %v3717_v53  ;;  %v3719_v26 = vpop.eup %3718 }
 0x46f   :  { %3722 = vrcp.f32 %v956_v48  ;;  %v3721_v29 = vpop.eup %3720 }
 0x470   :  { %3724 = vrcp.f32 %v957_v58  ;;  %v958_v59 = vadd.f32 1.0, %v3721_v29 }
 0x472   :  { %3726 = vrcp.f32 %v958_v59 }
 0x479   :  { %v3723_v37 = vpop.eup %3722 }
 0x47a   :  { %v967_v38 = vmul.f32 %v3723_v37, %v3719_v26  ;;  %v3725_v28 = vpop.eup %3724 }
 0x47b   :  { %v966_v4 = vmul.f32 %v3725_v28, %v4550_v27 }
 0x47c   :  { %v3727_v25 = vpop.eup %3726 }
 0x47d   :  { %v4596_v3 = vadd.f32 %v967_v38, %v966_v4 }
 0x47f   :  { %3728 = vtanh.f32 %v4596_v3 }
 0x489   :  { %v3729_v43 = vpop.eup %3728 }
 0x48a   :  { %v4599_v49 = vmul.f32 %v3729_v43, %v3727_v25 }
 0x48c   :  { %v971_v52 = vpack.c.bf16 %v4599_v49, %v4599_v49 }
 0x48e   :  { %1005 = vmatmul.mubr.bf16.vlgmr.msra.gmra.mrb[28].mxu1 %v971_v52  ;;  %1046 = vmatmul.mubr.bf16.vlgmr.msra.gmra.mrb[36].mxu0 %v971_v52 }
 0x48f   :  { %1084 = vmatpush1.bf16.msra.mxu1 %v4192_v46  ;;  %1125 = vmatpush1.bf16.msra.mxu0 %v4197_v47 }
 0x490   :  { %1085 = vmatprep.subr.bf16.mxu1 %v4202_v50  ;;  %1126 = vmatprep.subr.bf16.mxu0 %v4207_v51 }
 0x491   :  { %1115 = vmatprep.mubr.bf16.mxu1 %v5916_v44  ;;  %1156 = vmatprep.mubr.bf16.mxu0 %v5916_v44 }
 0x493   :  { %1086 = vmatpush1.bf16.msra.mxu1 %v4216_v54  ;;  %1127 = vmatpush1.bf16.msra.mxu0 %v4221_v55 }
 0x494   :  { %1087 = vmatprep.subr.bf16.mxu1 %v4228_v56  ;;  %1128 = vmatprep.subr.bf16.mxu0 %v4233_v57 }
 0x497   :  { %1088 = vmatpush1.bf16.msra.mxu1 %v4242_v60  ;;  %1129 = vmatpush1.bf16.msra.mxu0 %v4247_v61 }
 0x498   :  { %1089 = vmatprep.subr.bf16.mxu1 %v4254_v0  ;;  %1130 = vmatprep.subr.bf16.mxu0 %v4259_v1 }
 0x49b   :  { %1090 = vmatpush1.bf16.msra.mxu1 %v4268_v5  ;;  %1131 = vmatpush1.bf16.msra.mxu0 %v4273_v6 }
 0x49c   :  { %1091 = vmatprep.subr.bf16.mxu1 %v4280_v7  ;;  %1132 = vmatprep.subr.bf16.mxu0 %v4285_v8 }
 0x49f   :  { %1092 = vmatpush1.bf16.msra.mxu1 %v4294_v9  ;;  %1133 = vmatpush1.bf16.msra.mxu0 %v4299_v10 }
 0x4a0   :  { %1093 = vmatprep.subr.bf16.mxu1 %v4306_v11  ;;  %1134 = vmatprep.subr.bf16.mxu0 %v4311_v12 }
 0x4a3   :  { %1094 = vmatpush1.bf16.msra.mxu1 %v4320_v13  ;;  %1135 = vmatpush1.bf16.msra.mxu0 %v4325_v14 }
 0x4a4   :  { %1095 = vmatprep.subr.bf16.mxu1 %v4332_v15  ;;  %1136 = vmatprep.subr.bf16.mxu0 %v4337_v17 }
 0x4a7   :  { %1096 = vmatpush1.bf16.msra.mxu1 %v4346_v18  ;;  %1137 = vmatpush1.bf16.msra.mxu0 %v4351_v19 }
 0x4a8   :  { %1097 = vmatprep.subr.bf16.mxu1 %v4358_v20  ;;  %1138 = vmatprep.subr.bf16.mxu0 %v4363_v21 }
 0x4ab   :  { %1098 = vmatpush1.bf16.msra.mxu1 %v4372_v22  ;;  %1139 = vmatpush1.bf16.msra.mxu0 %v4377_v23 }
 0x4ac   :  { %1194 = vmatprep.subr.bf16.mxu1 %v4177_v41  ;;  %1235 = vmatprep.subr.bf16.mxu0 %v4182_v42 }
 0x561   :  { %v1006_v27 = vpop.f32.mrb[28].mxu1  ;;  %v1047_v30 = vpop.f32.mrb[36].mxu0 }
 0x562   :  { %v1054_v16 = vadd.f32 %v1006_v27, %v5919_v31  ;;  %v1056_v33 = vadd.f32 %v1047_v30, %v5920_v32  ;;  %v1008_v34 = vpop.f32.mrb[29].mxu1  ;;  %v1049_v35 = vpop.f32.mrb[37].mxu0 }
 0x563   :  { %v1055_v36 = vadd.f32 %v1008_v34, %v5921_v24  ;;  %v1057_v40 = vadd.f32 %v1049_v35, %v5922_v39  ;;  %v1010_v45 = vpop.f32.mrb[30].mxu1  ;;  %v1051_v63 = vpop.f32.mrb[38].mxu0 }
 0x564   :  { %v3316_v48 = vmul.f32 -1.442695, %v1054_v16  ;;  %v1011_v53 = vpop.f32.mrb[31].mxu1  ;;  %v1052_v58 = vpop.f32.mrb[39].mxu0  ;;  %v3318_v29 = vmul.f32 -1.442695, %v1056_v33 }
 0x565   :  { %v3317_v26 = vmul.f32 -1.442695, %v1055_v36 }
 0x566   :  { %3730 = vpow2.f32 %v3316_v48 }
 0x567   :  { %3732 = vpow2.f32 %v3317_v26 }
 0x568   :  { %3734 = vtanh.f32 %v1057_v40 }
 0x569   :  { %3736 = vpow2.f32 %v3318_v29 }
 0x570   :  { %v3731_v37 = vpop.eup %3730 }
 0x571   :  { %v1067_v38 = vadd.f32 1.0, %v3731_v37  ;;  %v3733_v28 = vpop.eup %3732 }
 0x572   :  { %v1068_v59 = vadd.f32 1.0, %v3733_v28  ;;  %v3735_v4 = vpop.eup %3734 }
 0x573   :  { %3738 = vrcp.f32 %v1067_v38  ;;  %v3737_v25 = vpop.eup %3736 }
 0x574   :  { %3740 = vrcp.f32 %v1068_v59  ;;  %v1069_v30 = vadd.f32 1.0, %v3737_v25  ;;  %v4698_v25 = vld [vmem:[%s5871_s4] ss:$16 sps:$4 sm:$0xff]  }
 0x576   :  { %3742 = vrcp.f32 %v1069_v30  ;;  %v4724_v30 = vld [vmem:[%s5871_s4 + $0x20] ss:$16 sps:$4 sm:$0xff]  }
 0x57d   :  { %v3739_v43 = vpop.eup %3738 }
 0x57e   :  { %v1078_v52 = vmul.f32 %v3739_v43, %v3735_v4  ;;  %v3741_v27 = vpop.eup %3740  ;;  %v4704_v43 = vld [vmem:[%s5871_s4 + $0x8] ss:$16 sps:$4 sm:$0xff]  }
 0x57f   :  { %v1077_v31 = vmul.f32 %v3741_v27, %v4596_v3  ;;  %v4716_v27 = vld [vmem:[%s5871_s4 + $0x2c] ss:$16 sps:$4 sm:$0xff]  }
 0x580   :  { %v3743_v32 = vpop.eup %3742 }
 0x581   :  { %v4642_v16 = vadd.f32 %v1078_v52, %v1077_v31  ;;  %v4710_v52 = vld [vmem:[%s5871_s4 + $0x24] ss:$16 sps:$4 sm:$0xff]   ;;  %v4730_v31 = vld [vmem:[%s5871_s4 + $0x28] ss:$16 sps:$4 sm:$0xff]  }
 0x583   :  { %3744 = vtanh.f32 %v4642_v16 }
 0x58d   :  { %v3745_v33 = vpop.eup %3744 }
 0x58e   :  { %v4645_v34 = vmul.f32 %v3745_v33, %v3743_v32  ;;  %v4742_v32 = vld [vmem:[%s5871_s4 + $0x4c] ss:$16 sps:$4 sm:$0xff]   ;;  %v4748_v33 = vld [vmem:[%s5871_s4 + $0x40] ss:$16 sps:$4 sm:$0xff]  }
 0x590   :  { %v1082_v35 = vpack.c.bf16 %v4645_v34, %v4645_v34 }
 0x592   :  { %1116 = vmatmul.mubr.bf16.vlgmr.msra.gmra.mrb[32].mxu1 %v1082_v35  ;;  %1157 = vmatmul.mubr.bf16.vlgmr.msra.gmra.mrb[40].mxu0 %v1082_v35  ;;  %v4754_v35 = vld [vmem:[%s5871_s4 + $0x48] ss:$16 sps:$4 sm:$0xff]  }
 0x593   :  { %1195 = vmatpush1.bf16.msra.mxu1 %v4192_v46  ;;  %1236 = vmatpush1.bf16.msra.mxu0 %v4197_v47 }
 0x594   :  { %1196 = vmatprep.subr.bf16.mxu1 %v4202_v50  ;;  %1237 = vmatprep.subr.bf16.mxu0 %v4207_v51  ;;  %v5923_v50 = vld [vmem:[#allocation13_spill] sm:$0xff] }
 0x595   :  { %1226 = vmatprep.mubr.bf16.mxu1 %v5916_v44  ;;  %1267 = vmatprep.mubr.bf16.mxu0 %v5916_v44 }
 0x597   :  { %1197 = vmatpush1.bf16.msra.mxu1 %v4216_v54  ;;  %1238 = vmatpush1.bf16.msra.mxu0 %v4221_v55  ;;  %v5924_v54 = vld [vmem:[#allocation14_spill] sm:$0xff] }
 0x598   :  { %1198 = vmatprep.subr.bf16.mxu1 %v4228_v56  ;;  %1239 = vmatprep.subr.bf16.mxu0 %v4233_v57 }
 0x59b   :  { %1199 = vmatpush1.bf16.msra.mxu1 %v4242_v60  ;;  %1240 = vmatpush1.bf16.msra.mxu0 %v4247_v61  ;;  %v5925_v60 = vld [vmem:[#allocation15_spill] sm:$0xff] }
 0x59c   :  { %1200 = vmatprep.subr.bf16.mxu1 %v4254_v0  ;;  %1241 = vmatprep.subr.bf16.mxu0 %v4259_v1  ;;  %v5926_v0 = vld [vmem:[#allocation16_spill] sm:$0xff] }
 0x59f   :  { %1201 = vmatpush1.bf16.msra.mxu1 %v4268_v5  ;;  %1242 = vmatpush1.bf16.msra.mxu0 %v4273_v6 }
 0x5a0   :  { %1202 = vmatprep.subr.bf16.mxu1 %v4280_v7  ;;  %1243 = vmatprep.subr.bf16.mxu0 %v4285_v8 }
 0x5a3   :  { %1203 = vmatpush1.bf16.msra.mxu1 %v4294_v9  ;;  %1244 = vmatpush1.bf16.msra.mxu0 %v4299_v10 }
 0x5a4   :  { %1204 = vmatprep.subr.bf16.mxu1 %v4306_v11  ;;  %1245 = vmatprep.subr.bf16.mxu0 %v4311_v12 }
 0x5a7   :  { %1205 = vmatpush1.bf16.msra.mxu1 %v4320_v13  ;;  %1246 = vmatpush1.bf16.msra.mxu0 %v4325_v14 }
 0x5a8   :  { %1206 = vmatprep.subr.bf16.mxu1 %v4332_v15  ;;  %1247 = vmatprep.subr.bf16.mxu0 %v4337_v17 }
 0x5ab   :  { %1207 = vmatpush1.bf16.msra.mxu1 %v4346_v18  ;;  %1248 = vmatpush1.bf16.msra.mxu0 %v4351_v19 }
 0x5ac   :  { %1208 = vmatprep.subr.bf16.mxu1 %v4358_v20  ;;  %1249 = vmatprep.subr.bf16.mxu0 %v4363_v21 }
 0x5af   :  { %1209 = vmatpush1.bf16.msra.mxu1 %v4372_v22  ;;  %1250 = vmatpush1.bf16.msra.mxu0 %v4377_v23 }
 0x5b0   :  { %1305 = vmatprep.subr.bf16.mxu1 %v4177_v41  ;;  %1346 = vmatprep.subr.bf16.mxu0 %v4182_v42 }
 0x665   :  { %v1117_v46 = vpop.f32.mrb[32].mxu1  ;;  %v1158_v47 = vpop.f32.mrb[40].mxu0 }
 0x666   :  { %v1165_v51 = vadd.f32 %v1117_v46, %v5923_v50  ;;  %v1167_v55 = vadd.f32 %v1158_v47, %v5924_v54  ;;  %v1119_v56 = vpop.f32.mrb[33].mxu1  ;;  %v1160_v57 = vpop.f32.mrb[41].mxu0  ;;  %v4760_v46 = vld [vmem:[%s5871_s4 + $0x64] ss:$16 sps:$4 sm:$0xff]   ;;  %v4766_v47 = vld [vmem:[%s5871_s4 + $0x6c] ss:$16 sps:$4 sm:$0xff]  }
 0x667   :  { %v1166_v61 = vadd.f32 %v1119_v56, %v5925_v60  ;;  %v1168_v1 = vadd.f32 %v1160_v57, %v5926_v0  ;;  %v1121_v5 = vpop.f32.mrb[34].mxu1  ;;  %v1162_v6 = vpop.f32.mrb[42].mxu0  ;;  %v4772_v50 = vld [vmem:[%s5871_s4 + $0x60] ss:$16 sps:$4 sm:$0xff]   ;;  %v4784_v54 = vld [vmem:[%s5871_s4 + $0x84] ss:$16 sps:$4 sm:$0xff]  }
 0x668   :  { %v3319_v7 = vmul.f32 -1.442695, %v1165_v51  ;;  %v1122_v8 = vpop.f32.mrb[35].mxu1  ;;  %v1163_v3 = vpop.f32.mrb[43].mxu0  ;;  %v3321_v42 = vmul.f32 -1.442695, %v1167_v55 }
 0x669   :  { %v3320_v41 = vmul.f32 -1.442695, %v1166_v61  ;;  %v4778_v51 = vld [vmem:[%s5871_s4 + $0x68] ss:$16 sps:$4 sm:$0xff]   ;;  %v4790_v55 = vld [vmem:[%s5871_s4 + $0x8c] ss:$16 sps:$4 sm:$0xff]  }
 0x66a   :  { %3746 = vpow2.f32 %v3319_v7 }
 0x66b   :  { %3748 = vpow2.f32 %v3320_v41 }
 0x66c   :  { %3750 = vtanh.f32 %v1168_v1 }
 0x66d   :  { %3752 = vpow2.f32 %v3321_v42 }
 0x674   :  { %v3747_v24 = vpop.eup %3746 }
 0x675   :  { %v1178_v36 = vadd.f32 1.0, %v3747_v24  ;;  %v3749_v39 = vpop.eup %3748 }
 0x676   :  { %v1179_v40 = vadd.f32 1.0, %v3749_v39  ;;  %v3751_v45 = vpop.eup %3750 }
 0x677   :  { %3754 = vrcp.f32 %v1178_v36  ;;  %v3753_v63 = vpop.eup %3752 }
 0x678   :  { %3756 = vrcp.f32 %v1179_v40  ;;  %v1180_v26 = vadd.f32 1.0, %v3753_v63 }
 0x67a   :  { %3758 = vrcp.f32 %v1180_v26 }
 0x681   :  { %v3755_v48 = vpop.eup %3754 }
 0x682   :  { %v1189_v53 = vmul.f32 %v3755_v48, %v3751_v45  ;;  %v3757_v58 = vpop.eup %3756 }
 0x683   :  { %v1188_v29 = vmul.f32 %v3757_v58, %v4642_v16  ;;  %v4736_v16 = vld [vmem:[%s5871_s4 + $0x44] ss:$16 sps:$4 sm:$0xff]  }
 0x684   :  { %v3759_v38 = vpop.eup %3758 }
 0x685   :  { %v4688_v37 = vadd.f32 %v1189_v53, %v1188_v29  ;;  %v3958_v29 = vld [vmem:[%s5871_s4 + $0x80] ss:$16 sps:$4 sm:$0xff]  }
 0x687   :  { %3760 = vtanh.f32 %v4688_v37 }
 0x691   :  { %v3761_v28 = vpop.eup %3760 }
 0x692   :  { %v4691_v59 = vmul.f32 %v3761_v28, %v3759_v38  ;;  %v3960_v38 = vld [vmem:[%s5871_s4 + $0xa4] ss:$16 sps:$4 sm:$0xff]   ;;  %v3961_v28 = vld [vmem:[%s5871_s4 + $0xac] ss:$16 sps:$4 sm:$0xff]  }
 0x694   :  { %v1193_v4 = vpack.c.bf16 %v4691_v59, %v4691_v59 }
 0x696   :  { %1227 = vmatmul.mubr.bf16.vlgmr.msra.gmra.mrb[36].mxu1 %v1193_v4  ;;  %1268 = vmatmul.mubr.bf16.vlgmr.msra.gmra.mrb[44].mxu0 %v1193_v4  ;;  %v3962_v4 = vld [vmem:[%s5871_s4 + $0xa0] ss:$16 sps:$4 sm:$0xff]  }
 0x697   :  { %1306 = vmatpush1.bf16.msra.mxu1 %v4698_v25  ;;  %1347 = vmatpush1.bf16.msra.mxu0 %v4704_v43 }
 0x698   :  { %1307 = vmatprep.subr.bf16.mxu1 %v4710_v52  ;;  %1348 = vmatprep.subr.bf16.mxu0 %v4716_v27 }
 0x699   :  { %1337 = vmatprep.mubr.bf16.mxu1 %v5916_v44  ;;  %1378 = vmatprep.mubr.bf16.mxu0 %v5916_v44 }
 0x69b   :  { %1308 = vmatpush1.bf16.msra.mxu1 %v4724_v30  ;;  %1349 = vmatpush1.bf16.msra.mxu0 %v4730_v31 }
 0x69c   :  { %1309 = vmatprep.subr.bf16.mxu1 %v4736_v16  ;;  %1350 = vmatprep.subr.bf16.mxu0 %v4742_v32 }
 0x69f   :  { %1310 = vmatpush1.bf16.msra.mxu1 %v4748_v33  ;;  %1351 = vmatpush1.bf16.msra.mxu0 %v4754_v35 }
 0x6a0   :  { %1311 = vmatprep.subr.bf16.mxu1 %v4760_v46  ;;  %1352 = vmatprep.subr.bf16.mxu0 %v4766_v47 }
 0x6a3   :  { %1312 = vmatpush1.bf16.msra.mxu1 %v4772_v50  ;;  %1353 = vmatpush1.bf16.msra.mxu0 %v4778_v51 }
 0x6a4   :  { %1313 = vmatprep.subr.bf16.mxu1 %v4784_v54  ;;  %1354 = vmatprep.subr.bf16.mxu0 %v4790_v55 }
 0x6a7   :  { %1314 = vmatpush1.bf16.msra.mxu1 %v4294_v9  ;;  %1355 = vmatpush1.bf16.msra.mxu0 %v4299_v10  ;;  %v3956_v9 = vld [vmem:[%s5871_s4 + $0x4] ss:$16 sps:$4 sm:$0xff]   ;;  %v3957_v10 = vld [vmem:[%s5871_s4 + $0xc] ss:$16 sps:$4 sm:$0xff]  }
 0x6a8   :  { %1315 = vmatprep.subr.bf16.mxu1 %v4306_v11  ;;  %1356 = vmatprep.subr.bf16.mxu0 %v4311_v12 }
 0x6ab   :  { %1316 = vmatpush1.bf16.msra.mxu1 %v4320_v13  ;;  %1357 = vmatpush1.bf16.msra.mxu0 %v4325_v14  ;;  %v5927_v13 = vld [vmem:[#allocation17_spill] sm:$0xff] }
 0x6ac   :  { %1317 = vmatprep.subr.bf16.mxu1 %v4332_v15  ;;  %1358 = vmatprep.subr.bf16.mxu0 %v4337_v17  ;;  %v5928_v15 = vld [vmem:[#allocation18_spill] sm:$0xff] }
 0x6af   :  { %1318 = vmatpush1.bf16.msra.mxu1 %v4346_v18  ;;  %1359 = vmatpush1.bf16.msra.mxu0 %v4351_v19 }
 0x6b0   :  { %1319 = vmatprep.subr.bf16.mxu1 %v4358_v20  ;;  %1360 = vmatprep.subr.bf16.mxu0 %v4363_v21  ;;  %v5929_v20 = vld [vmem:[#allocation19_spill] sm:$0xff] }
 0x6b3   :  { %1320 = vmatpush1.bf16.msra.mxu1 %v4372_v22  ;;  %1361 = vmatpush1.bf16.msra.mxu0 %v4377_v23  ;;  %v5930_v22 = vld [vmem:[#allocation20_spill] sm:$0xff] }
 0x6b4   :  { %1416 = vmatprep.subr.bf16.mxu1 %v3956_v9  ;;  %1457 = vmatprep.subr.bf16.mxu0 %v3957_v10 }
 0x769   :  { %v1228_v11 = vpop.f32.mrb[36].mxu1  ;;  %v1269_v12 = vpop.f32.mrb[44].mxu0 }
 0x76a   :  { %v1276_v14 = vadd.f32 %v1228_v11, %v5927_v13  ;;  %v1278_v17 = vadd.f32 %v1269_v12, %v5928_v15  ;;  %v1230_v18 = vpop.f32.mrb[37].mxu1  ;;  %v1271_v19 = vpop.f32.mrb[45].mxu0  ;;  %v5933_v12 = vld [vmem:[#allocation23_spill] sm:$0xff] }
 0x76b   :  { %v1277_v21 = vadd.f32 %v1230_v18, %v5929_v20  ;;  %v1279_v23 = vadd.f32 %v1271_v19, %v5930_v22  ;;  %v1232_v56 = vpop.f32.mrb[38].mxu1  ;;  %v1273_v57 = vpop.f32.mrb[46].mxu0 }
 0x76c   :  { %v3322_v60 = vmul.f32 -1.442695, %v1276_v14  ;;  %v1233_v61 = vpop.f32.mrb[39].mxu1  ;;  %v1274_v0 = vpop.f32.mrb[47].mxu0  ;;  %v3324_v5 = vmul.f32 -1.442695, %v1278_v17 }
 0x76d   :  { %v3323_v1 = vmul.f32 -1.442695, %v1277_v21  ;;  %v5934_v14 = vld [vmem:[#allocation24_spill] sm:$0xff] }
 0x76e   :  { %3762 = vpow2.f32 %v3322_v60 }
 0x76f   :  { %3764 = vpow2.f32 %v3323_v1 }
 0x770   :  { %3766 = vtanh.f32 %v1279_v23 }
 0x771   :  { %3768 = vpow2.f32 %v3324_v5 }
 0x778   :  { %v3763_v6 = vpop.eup %3762 }
 0x779   :  { %v1289_v7 = vadd.f32 1.0, %v3763_v6  ;;  %v3765_v8 = vpop.eup %3764 }
 0x77a   :  { %v1290_v3 = vadd.f32 1.0, %v3765_v8  ;;  %v3767_v41 = vpop.eup %3766 }
 0x77b   :  { %3770 = vrcp.f32 %v1289_v7  ;;  %v3769_v42 = vpop.eup %3768 }
 0x77c   :  { %3772 = vrcp.f32 %v1290_v3  ;;  %v1291_v40 = vadd.f32 1.0, %v3769_v42 }
 0x77e   :  { %3774 = vrcp.f32 %v1291_v40  ;;  %v3579_v40 = vld [vmem:[%s5873_s6 + $0x8] ss:$16 sps:$4 sm:$0xff]  }
 0x785   :  { %v3771_v24 = vpop.eup %3770 }
 0x786   :  { %v1300_v36 = vmul.f32 %v3771_v24, %v3767_v41  ;;  %v3773_v39 = vpop.eup %3772 }
 0x787   :  { %v1299_v45 = vmul.f32 %v3773_v39, %v4688_v37  ;;  %v3959_v37 = vld [vmem:[%s5871_s4 + $0x88] ss:$16 sps:$4 sm:$0xff]   ;;  %v3576_v39 = vld [vmem:[%s5873_s6] ss:$16 sps:$4 sm:$0xff]  }
 0x788   :  { %v3775_v48 = vpop.eup %3774 }
 0x789   :  { %v4818_v63 = vadd.f32 %v1300_v36, %v1299_v45 }
 0x78b   :  { %3776 = vtanh.f32 %v4818_v63 }
 0x795   :  { %v3777_v53 = vpop.eup %3776 }
 0x796   :  { %v4821_v58 = vmul.f32 %v3777_v53, %v3775_v48  ;;  %v3587_v48 = vld [vmem:[%s5873_s6 + $0x2c] ss:$16 sps:$4 sm:$0xff]   ;;  %v3582_v53 = vld [vmem:[%s5873_s6 + $0x20] ss:$16 sps:$4 sm:$0xff]  }
 0x798   :  { %v1304_v26 = vpack.c.bf16 %v4821_v58, %v4821_v58 }
 0x79a   :  { %1338 = vmatmul.mubr.bf16.vlgmr.msra.gmra.mrb[40].mxu1 %v1304_v26  ;;  %1379 = vmatmul.mubr.bf16.vlgmr.msra.gmra.mrb[48].mxu0 %v1304_v26  ;;  %v3585_v26 = vld [vmem:[%s5873_s6 + $0x28] ss:$16 sps:$4 sm:$0xff]  }
 0x79b   :  { %1417 = vmatpush1.bf16.msra.mxu1 %v4698_v25  ;;  %1458 = vmatpush1.bf16.msra.mxu0 %v4704_v43  ;;  %v3963_v25 = vld [vmem:[%s5871_s4 + $0xa8] ss:$16 sps:$4 sm:$0xff]   ;;  %v3964_v43 = vld [vmem:[%s5871_s4 + $0xc4] ss:$16 sps:$4 sm:$0xff]  }
 0x79c   :  { %1418 = vmatprep.subr.bf16.mxu1 %v4710_v52  ;;  %1459 = vmatprep.subr.bf16.mxu0 %v4716_v27  ;;  %v3965_v52 = vld [vmem:[%s5871_s4 + $0xcc] ss:$16 sps:$4 sm:$0xff]   ;;  %v3966_v27 = vld [vmem:[%s5871_s4 + $0xc0] ss:$16 sps:$4 sm:$0xff]  }
 0x79d   :  { %1448 = vmatprep.mubr.bf16.mxu1 %v5916_v44  ;;  %1489 = vmatprep.mubr.bf16.mxu0 %v5916_v44 }
 0x79f   :  { %1419 = vmatpush1.bf16.msra.mxu1 %v4724_v30  ;;  %1460 = vmatpush1.bf16.msra.mxu0 %v4730_v31  ;;  %v3967_v30 = vld [vmem:[%s5871_s4 + $0xc8] ss:$16 sps:$4 sm:$0xff]   ;;  %v3968_v31 = vld [vmem:[%s5871_s4 + $0xe4] ss:$16 sps:$4 sm:$0xff]  }
 0x7a0   :  { %1420 = vmatprep.subr.bf16.mxu1 %v4736_v16  ;;  %1461 = vmatprep.subr.bf16.mxu0 %v4742_v32  ;;  %v3969_v16 = vld [vmem:[%s5871_s4 + $0xec] ss:$16 sps:$4 sm:$0xff]   ;;  %v3970_v32 = vld [vmem:[%s5871_s4 + $0xe0] ss:$16 sps:$4 sm:$0xff]  }
 0x7a3   :  { %1421 = vmatpush1.bf16.msra.mxu1 %v4748_v33  ;;  %1462 = vmatpush1.bf16.msra.mxu0 %v4754_v35  ;;  %v3971_v33 = vld [vmem:[%s5871_s4 + $0xe8] ss:$16 sps:$4 sm:$0xff]   ;;  %v3578_v35 = vld [vmem:[%s5873_s6 + $0x4] ss:$16 sps:$4 sm:$0xff]  }
 0x7a4   :  { %1422 = vmatprep.subr.bf16.mxu1 %v4760_v46  ;;  %1463 = vmatprep.subr.bf16.mxu0 %v4766_v47  ;;  %v3581_v46 = vld [vmem:[%s5873_s6 + $0xc] ss:$16 sps:$4 sm:$0xff]  }
 0x7a7   :  { %1423 = vmatpush1.bf16.msra.mxu1 %v4772_v50  ;;  %1464 = vmatpush1.bf16.msra.mxu0 %v4778_v51  ;;  %v5931_v51 = vld [vmem:[#allocation21_spill] sm:$0xff] }
 0x7a8   :  { %1424 = vmatprep.subr.bf16.mxu1 %v4784_v54  ;;  %1465 = vmatprep.subr.bf16.mxu0 %v4790_v55  ;;  %v5932_v55 = vld [vmem:[#allocation22_spill] sm:$0xff] }
 0x7ab   :  { %1425 = vmatpush1.bf16.msra.mxu1 %v3958_v29  ;;  %1466 = vmatpush1.bf16.msra.mxu0 %v3959_v37  ;;  %v3590_v29 = vld [vmem:[%s5873_s6 + $0x44] ss:$16 sps:$4 sm:$0xff]   ;;  %v3593_v37 = vld [vmem:[%s5873_s6 + $0x4c] ss:$16 sps:$4 sm:$0xff]  }
 0x7ac   :  { %1426 = vmatprep.subr.bf16.mxu1 %v3960_v38  ;;  %1467 = vmatprep.subr.bf16.mxu0 %v3961_v28  ;;  %v3588_v38 = vld [vmem:[%s5873_s6 + $0x40] ss:$16 sps:$4 sm:$0xff]   ;;  %v3591_v28 = vld [vmem:[%s5873_s6 + $0x48] ss:$16 sps:$4 sm:$0xff]  }
 0x7af   :  { %1427 = vmatpush1.bf16.msra.mxu1 %v3962_v4  ;;  %1468 = vmatpush1.bf16.msra.mxu0 %v3963_v25  ;;  %v3596_v4 = vld [vmem:[%s5873_s6 + $0x64] ss:$16 sps:$4 sm:$0xff]   ;;  %v3599_v25 = vld [vmem:[%s5873_s6 + $0x6c] ss:$16 sps:$4 sm:$0xff]  }
 0x7b0   :  { %1428 = vmatprep.subr.bf16.mxu1 %v3964_v43  ;;  %1469 = vmatprep.subr.bf16.mxu0 %v3965_v52  ;;  %v3594_v43 = vld [vmem:[%s5873_s6 + $0x60] ss:$16 sps:$4 sm:$0xff]   ;;  %v3597_v52 = vld [vmem:[%s5873_s6 + $0x68] ss:$16 sps:$4 sm:$0xff]  }
 0x7b3   :  { %1429 = vmatpush1.bf16.msra.mxu1 %v3966_v27  ;;  %1470 = vmatpush1.bf16.msra.mxu0 %v3967_v30  ;;  %v3602_v27 = vld [vmem:[%s5873_s6 + $0x84] ss:$16 sps:$4 sm:$0xff]   ;;  %v3605_v30 = vld [vmem:[%s5873_s6 + $0x8c] ss:$16 sps:$4 sm:$0xff]  }
 0x7b4   :  { %1430 = vmatprep.subr.bf16.mxu1 %v3968_v31  ;;  %1471 = vmatprep.subr.bf16.mxu0 %v3969_v16  ;;  %v3600_v31 = vld [vmem:[%s5873_s6 + $0x80] ss:$16 sps:$4 sm:$0xff]   ;;  %v3603_v16 = vld [vmem:[%s5873_s6 + $0x88] ss:$16 sps:$4 sm:$0xff]  }
 0x7b7   :  { %1431 = vmatpush1.bf16.msra.mxu1 %v3970_v32  ;;  %1472 = vmatpush1.bf16.msra.mxu0 %v3971_v33  ;;  %v3608_v32 = vld [vmem:[%s5873_s6 + $0xa4] ss:$16 sps:$4 sm:$0xff]   ;;  %v3611_v33 = vld [vmem:[%s5873_s6 + $0xac] ss:$16 sps:$4 sm:$0xff]  }
 0x7b8   :  { %1776 = vmatprep.subr.bf16.mxu1 %v3578_v35  ;;  %1849 = vmatprep.subr.bf16.mxu0 %v3581_v46  ;;  %v3606_v35 = vld [vmem:[%s5873_s6 + $0xa0] ss:$16 sps:$4 sm:$0xff]   ;;  %v3609_v46 = vld [vmem:[%s5873_s6 + $0xa8] ss:$16 sps:$4 sm:$0xff]  }
 0x86d   :  { %v1339_v47 = vpop.f32.mrb[40].mxu1  ;;  %v1380_v50 = vpop.f32.mrb[48].mxu0 }
 0x86e   :  { %v1387_v54 = vadd.f32 %v1339_v47, %v5931_v51  ;;  %v1389_v9 = vadd.f32 %v1380_v50, %v5932_v55  ;;  %v1341_v10 = vpop.f32.mrb[41].mxu1  ;;  %v1382_v11 = vpop.f32.mrb[49].mxu0  ;;  %v3614_v47 = vld [vmem:[%s5873_s6 + $0xc4] ss:$16 sps:$4 sm:$0xff]   ;;  %v3617_v50 = vld [vmem:[%s5873_s6 + $0xcc] ss:$16 sps:$4 sm:$0xff]  }
 0x86f   :  { %v1388_v13 = vadd.f32 %v1341_v10, %v5933_v12  ;;  %v1390_v15 = vadd.f32 %v1382_v11, %v5934_v14  ;;  %v1343_v17 = vpop.f32.mrb[42].mxu1  ;;  %v1384_v18 = vpop.f32.mrb[50].mxu0  ;;  %v3612_v51 = vld [vmem:[%s5873_s6 + $0xc0] ss:$16 sps:$4 sm:$0xff]   ;;  %v3620_v55 = vld [vmem:[%s5873_s6 + $0xe4] ss:$16 sps:$4 sm:$0xff]   ;;  %v1526_v12 = vpack.c.bf16 %v4553_v2, %v4507_v62  ;;  %v1528_v14 = vpack.c.bf16 %v4821_v58, %v4691_v59 }
 0x870   :  { %v3325_v19 = vmul.f32 -1.442695, %v1387_v54  ;;  %v1344_v20 = vpop.f32.mrb[43].mxu1  ;;  %v1385_v21 = vpop.f32.mrb[51].mxu0  ;;  %v3327_v23 = vmul.f32 -1.442695, %v1389_v9 }
 0x871   :  { %v3326_v22 = vmul.f32 -1.442695, %v1388_v13  ;;  %v3615_v54 = vld [vmem:[%s5873_s6 + $0xc8] ss:$16 sps:$4 sm:$0xff]   ;;  %v3623_v9 = vld [vmem:[%s5873_s6 + $0xec] ss:$16 sps:$4 sm:$0xff]   ;;  %v1527_v13 = vpack.c.bf16 %v4645_v34, %v4599_v49 }
 0x872   :  { %3778 = vpow2.f32 %v3325_v19  ;;  %v3618_v10 = vld [vmem:[%s5873_s6 + $0xe0] ss:$16 sps:$4 sm:$0xff]   ;;  %v3621_v11 = vld [vmem:[%s5873_s6 + $0xe8] ss:$16 sps:$4 sm:$0xff]   ;;  %v5010_v62 = vld [vmem:[%s5874_s7 + $0x4] ss:$16 sps:$4 sm:$0xff]  }
 0x873   :  { %3780 = vpow2.f32 %v3326_v22  ;;  %v5015_v2 = vld [vmem:[%s5874_s7 + $0xc] ss:$16 sps:$4 sm:$0xff]   ;;  %v5020_v49 = vld [vmem:[%s5874_s7] ss:$16 sps:$4 sm:$0xff]   ;;  %v5025_v34 = vld [vmem:[%s5874_s7 + $0x8] ss:$16 sps:$4 sm:$0xff]  }
 0x874   :  { %3782 = vtanh.f32 %v1390_v15  ;;  %v5034_v59 = vld [vmem:[%s5874_s7 + $0x24] ss:$16 sps:$4 sm:$0xff]   ;;  %v5039_v58 = vld [vmem:[%s5874_s7 + $0x2c] ss:$16 sps:$4 sm:$0xff]   ;;  %v5044_v15 = vld [vmem:[%s5874_s7 + $0x20] ss:$16 sps:$4 sm:$0xff]  }
 0x875   :  { %3784 = vpow2.f32 %v3327_v23  ;;  %v5049_v17 = vld [vmem:[%s5874_s7 + $0x28] ss:$16 sps:$4 sm:$0xff]   ;;  %v5058_v18 = vld [vmem:[%s5874_s7 + $0x44] ss:$16 sps:$4 sm:$0xff]   ;;  %v5063_v19 = vld [vmem:[%s5874_s7 + $0x4c] ss:$16 sps:$4 sm:$0xff]  }
 0x876   :  { %v5068_v20 = vld [vmem:[%s5874_s7 + $0x40] ss:$16 sps:$4 sm:$0xff]   ;;  %v5073_v21 = vld [vmem:[%s5874_s7 + $0x48] ss:$16 sps:$4 sm:$0xff]   ;;  %v5082_v22 = vld [vmem:[%s5874_s7 + $0x64] ss:$16 sps:$4 sm:$0xff]  }
 0x877   :  { %v5087_v23 = vld [vmem:[%s5874_s7 + $0x60] ss:$16 sps:$4 sm:$0xff]  }
 0x87c   :  { %v3779_v56 = vpop.eup %3778 }
 0x87d   :  { %v1400_v57 = vadd.f32 1.0, %v3779_v56  ;;  %v3781_v60 = vpop.eup %3780  ;;  %v5092_v56 = vld [vmem:[%s5874_s7 + $0x6c] ss:$16 sps:$4 sm:$0xff]  }
 0x87e   :  { %v1401_v61 = vadd.f32 1.0, %v3781_v60  ;;  %v3783_v0 = vpop.eup %3782  ;;  %v5106_v60 = vld [vmem:[%s5874_s7 + $0x84] ss:$16 sps:$4 sm:$0xff]  }
 0x87f   :  { %3786 = vrcp.f32 %v1400_v57  ;;  %v3785_v1 = vpop.eup %3784  ;;  %v5097_v57 = vld [vmem:[%s5874_s7 + $0x68] ss:$16 sps:$4 sm:$0xff]  }
 0x880   :  { %3788 = vrcp.f32 %v1401_v61  ;;  %v1402_v8 = vadd.f32 1.0, %v3785_v1  ;;  %v5111_v61 = vld [vmem:[%s5874_s7 + $0x8c] ss:$16 sps:$4 sm:$0xff]   ;;  %v5121_v1 = vld [vmem:[%s5874_s7 + $0x88] ss:$16 sps:$4 sm:$0xff]  }
 0x882   :  { %3790 = vrcp.f32 %v1402_v8  ;;  %v5145_v8 = vld [vmem:[%s5874_s7 + $0xa8] ss:$16 sps:$4 sm:$0xff]  }
 0x889   :  { %v3787_v5 = vpop.eup %3786 }
 0x88a   :  { %v1411_v6 = vmul.f32 %v3787_v5, %v3783_v0  ;;  %v3789_v7 = vpop.eup %3788  ;;  %v5116_v0 = vld [vmem:[%s5874_s7 + $0x80] ss:$16 sps:$4 sm:$0xff]   ;;  %v5130_v5 = vld [vmem:[%s5874_s7 + $0xa4] ss:$16 sps:$4 sm:$0xff]  }
 0x88b   :  { %v1410_v3 = vmul.f32 %v3789_v7, %v4818_v63  ;;  %v3584_v63 = vld [vmem:[%s5873_s6 + $0x24] ss:$16 sps:$4 sm:$0xff]   ;;  %v5140_v7 = vld [vmem:[%s5874_s7 + $0xac] ss:$16 sps:$4 sm:$0xff]  }
 0x88c   :  { %v3791_v42 = vpop.eup %3790 }
 0x88d   :  { %v4896_v41 = vadd.f32 %v1411_v6, %v1410_v3  ;;  %v5135_v6 = vld [vmem:[%s5874_s7 + $0xa0] ss:$16 sps:$4 sm:$0xff]   ;;  %v5154_v3 = vld [vmem:[%s5874_s7 + $0xc4] ss:$16 sps:$4 sm:$0xff]  }
 0x88f   :  { %3792 = vtanh.f32 %v4896_v41 }
 0x899   :  { %v3793_v24 = vpop.eup %3792 }
 0x89a   :  { %v4899_v36 = vmul.f32 %v3793_v24, %v3791_v42  ;;  %v5159_v42 = vld [vmem:[%s5874_s7 + $0xcc] ss:$16 sps:$4 sm:$0xff]   ;;  %v5164_v24 = vld [vmem:[%s5874_s7 + $0xc0] ss:$16 sps:$4 sm:$0xff]  }
 0x89c   :  { %v1415_v45 = vpack.c.bf16 %v4899_v36, %v4899_v36 }
 0x89e   :  { %1449 = vmatmul.mubr.bf16.vlgmr.msra.gmra.mrb[44].mxu1 %v1415_v45  ;;  %1490 = vmatmul.mubr.bf16.vlgmr.msra.gmra.mrb[52].mxu0 %v1415_v45  ;;  %v5183_v45 = vld [vmem:[%s5874_s7 + $0xe0] ss:$16 sps:$4 sm:$0xff]  }
 0x89f   :  { %1777 = vmatpush1.bf16.msra.mxu1 %v3576_v39  ;;  %1850 = vmatpush1.bf16.msra.mxu0 %v3579_v40  ;;  %v5169_v39 = vld [vmem:[%s5874_s7 + $0xc8] ss:$16 sps:$4 sm:$0xff]   ;;  %v5178_v40 = vld [vmem:[%s5874_s7 + $0xe4] ss:$16 sps:$4 sm:$0xff]  }
 0x8a0   :  { %1778 = vmatprep.subr.bf16.mxu1 %v3584_v63  ;;  %1851 = vmatprep.subr.bf16.mxu0 %v3587_v48  ;;  %v5188_v63 = vld [vmem:[%s5874_s7 + $0xec] ss:$16 sps:$4 sm:$0xff]   ;;  %v5193_v48 = vld [vmem:[%s5874_s7 + $0xe8] ss:$16 sps:$4 sm:$0xff]  }
 0x8a1   :  { %1808 = vmatprep.mubr.bf16.mxu1 %v5916_v44  ;;  %1881 = vmatprep.mubr.bf16.mxu0 %v5916_v44 }
 0x8a3   :  { %1779 = vmatpush1.bf16.msra.mxu1 %v3582_v53  ;;  %1852 = vmatpush1.bf16.msra.mxu0 %v3585_v26 }
 0x8a4   :  { %1780 = vmatprep.subr.bf16.mxu1 %v3590_v29  ;;  %1853 = vmatprep.subr.bf16.mxu0 %v3593_v37  ;;  %v5935_v29 = vld [vmem:[#allocation25_spill] sm:$0xff] }
 0x8a7   :  { %1781 = vmatpush1.bf16.msra.mxu1 %v3588_v38  ;;  %1854 = vmatpush1.bf16.msra.mxu0 %v3591_v28  ;;  %v5936_v38 = vld [vmem:[#allocation26_spill] sm:$0xff] }
 0x8a8   :  { %1782 = vmatprep.subr.bf16.mxu1 %v3596_v4  ;;  %1855 = vmatprep.subr.bf16.mxu0 %v3599_v25 }
 0x8ab   :  { %1783 = vmatpush1.bf16.msra.mxu1 %v3594_v43  ;;  %1856 = vmatpush1.bf16.msra.mxu0 %v3597_v52  ;;  %v5937_v43 = vld [vmem:[#allocation27_spill] sm:$0xff] }
 0x8ac   :  { %1784 = vmatprep.subr.bf16.mxu1 %v3602_v27  ;;  %1857 = vmatprep.subr.bf16.mxu0 %v3605_v30  ;;  %v5938_v27 = vld [vmem:[#allocation28_spill] sm:$0xff] }
 0x8af   :  { %1785 = vmatpush1.bf16.msra.mxu1 %v3600_v31  ;;  %1858 = vmatpush1.bf16.msra.mxu0 %v3603_v16 }
 0x8b0   :  { %1786 = vmatprep.subr.bf16.mxu1 %v3608_v32  ;;  %1859 = vmatprep.subr.bf16.mxu0 %v3611_v33 }
 0x8b3   :  { %1787 = vmatpush1.bf16.msra.mxu1 %v3606_v35  ;;  %1860 = vmatpush1.bf16.msra.mxu0 %v3609_v46 }
 0x8b4   :  { %1788 = vmatprep.subr.bf16.mxu1 %v3614_v47  ;;  %1861 = vmatprep.subr.bf16.mxu0 %v3617_v50 }
 0x8b7   :  { %1789 = vmatpush1.bf16.msra.mxu1 %v3612_v51  ;;  %1862 = vmatpush1.bf16.msra.mxu0 %v3615_v54 }
 0x8b8   :  { %1790 = vmatprep.subr.bf16.mxu1 %v3620_v55  ;;  %1863 = vmatprep.subr.bf16.mxu0 %v3623_v9 }
 0x8bb   :  { %1791 = vmatpush1.bf16.msra.mxu1 %v3618_v10  ;;  %1864 = vmatpush1.bf16.msra.mxu0 %v3621_v11 }
 0x8bc   :  { %2082 = vmatprep.subr.bf16.mxu1 %v5010_v62  ;;  %2123 = vmatprep.subr.bf16.mxu0 %v5015_v2 }
 0x8be   :  { %1809 = vmatmul.mubr.bf16.vlgmr.msra.gmra.mrb[48].mxu1 %v1526_v12  ;;  %1882 = vmatmul.mubr.bf16.vlgmr.msra.gmra.mrb[56].mxu0 %v1526_v12 }
 0x8bf   :  { %1818 = vmatprep.mubr.bf16.mxu1 %v5916_v44  ;;  %1891 = vmatprep.mubr.bf16.mxu0 %v5916_v44 }
 0x8c0   :  { %2083 = vmatpush1.bf16.msra.mxu1 %v5020_v49  ;;  %2124 = vmatpush1.bf16.msra.mxu0 %v5025_v34 }
 0x8c1   :  { %2084 = vmatprep.subr.bf16.mxu1 %v5034_v59  ;;  %2125 = vmatprep.subr.bf16.mxu0 %v5039_v58 }
 0x8c4   :  { %2085 = vmatpush1.bf16.msra.mxu1 %v5044_v15  ;;  %2126 = vmatpush1.bf16.msra.mxu0 %v5049_v17 }
 0x8c5   :  { %2086 = vmatprep.subr.bf16.mxu1 %v5058_v18  ;;  %2127 = vmatprep.subr.bf16.mxu0 %v5063_v19 }
 0x8c6   :  { %1819 = vmatmul.mubr.bf16.gmra.mrb[52].mxu1 %v1527_v13  ;;  %1892 = vmatmul.mubr.bf16.gmra.mrb[60].mxu0 %v1527_v13 }
 0x8c7   :  { %1828 = vmatprep.mubr.bf16.mxu1 %v5916_v44  ;;  %1901 = vmatprep.mubr.bf16.mxu0 %v5916_v44 }
 0x8c8   :  { %2087 = vmatpush1.bf16.msra.mxu1 %v5068_v20  ;;  %2128 = vmatpush1.bf16.msra.mxu0 %v5073_v21 }
 0x8c9   :  { %2088 = vmatprep.subr.bf16.mxu1 %v5082_v22  ;;  %2129 = vmatprep.subr.bf16.mxu0 %v5092_v56 }
 0x8cc   :  { %2089 = vmatpush1.bf16.msra.mxu1 %v5087_v23  ;;  %2130 = vmatpush1.bf16.msra.mxu0 %v5097_v57 }
 0x8cd   :  { %2090 = vmatprep.subr.bf16.mxu1 %v5106_v60  ;;  %2131 = vmatprep.subr.bf16.mxu0 %v5111_v61 }
 0x8ce   :  { %1829 = vmatmul.mubr.bf16.gmra.mrb[56].mxu1 %v1528_v14  ;;  %1902 = vmatmul.mubr.bf16.gmra.mrb[64].mxu0 %v1528_v14 }
 0x8cf   :  { %1838 = vmatprep.mubr.bf16.mxu1 %v5916_v44  ;;  %1911 = vmatprep.mubr.bf16.mxu0 %v5916_v44 }
 0x8d0   :  { %2091 = vmatpush1.bf16.msra.mxu1 %v5116_v0  ;;  %2132 = vmatpush1.bf16.msra.mxu0 %v5121_v1 }
 0x8d1   :  { %2092 = vmatprep.subr.bf16.mxu1 %v5130_v5  ;;  %2133 = vmatprep.subr.bf16.mxu0 %v5140_v7 }
 0x8d4   :  { %2093 = vmatpush1.bf16.msra.mxu1 %v5135_v6  ;;  %2134 = vmatpush1.bf16.msra.mxu0 %v5145_v8 }
 0x8d5   :  { %2094 = vmatprep.subr.bf16.mxu1 %v5154_v3  ;;  %2135 = vmatprep.subr.bf16.mxu0 %v5159_v42 }
 0x8d8   :  { %2095 = vmatpush1.bf16.msra.mxu1 %v5164_v24  ;;  %2136 = vmatpush1.bf16.msra.mxu0 %v5169_v39 }
 0x8d9   :  { %2096 = vmatprep.subr.bf16.mxu1 %v5178_v40  ;;  %2137 = vmatprep.subr.bf16.mxu0 %v5188_v63 }
 0x8dc   :  { %2097 = vmatpush1.bf16.msra.mxu1 %v5183_v45  ;;  %2138 = vmatpush1.bf16.msra.mxu0 %v5193_v48 }
 0x8dd   :  { %2193 = vmatprep.subr.bf16.mxu1 %v5010_v62  ;;  %2234 = vmatprep.subr.bf16.mxu0 %v5015_v2 }
 0x971   :  { %v1450_v53 = vpop.f32.mrb[44].mxu1  ;;  %v1491_v26 = vpop.f32.mrb[52].mxu0 }
 0x972   :  { %v1498_v37 = vadd.f32 %v1450_v53, %v5935_v29  ;;  %v1500_v28 = vadd.f32 %v1491_v26, %v5936_v38  ;;  %v1452_v4 = vpop.f32.mrb[45].mxu1  ;;  %v1493_v25 = vpop.f32.mrb[53].mxu0 }
 0x973   :  { %v1499_v52 = vadd.f32 %v1452_v4, %v5937_v43  ;;  %v1501_v30 = vadd.f32 %v1493_v25, %v5938_v27  ;;  %v1454_v31 = vpop.f32.mrb[46].mxu1  ;;  %v1495_v16 = vpop.f32.mrb[54].mxu0 }
 0x974   :  { %v3328_v32 = vmul.f32 -1.442695, %v1498_v37  ;;  %v1455_v33 = vpop.f32.mrb[47].mxu1  ;;  %v1496_v35 = vpop.f32.mrb[55].mxu0  ;;  %v3330_v47 = vmul.f32 -1.442695, %v1500_v28 }
 0x975   :  { %v3329_v46 = vmul.f32 -1.442695, %v1499_v52 }
 0x976   :  { %3794 = vpow2.f32 %v3328_v32 }
 0x977   :  { %3796 = vpow2.f32 %v3329_v46 }
 0x978   :  { %3798 = vtanh.f32 %v1501_v30 }
 0x979   :  { %3800 = vpow2.f32 %v3330_v47 }
 0x980   :  { %v3795_v50 = vpop.eup %3794 }
 0x981   :  { %v1511_v51 = vadd.f32 1.0, %v3795_v50  ;;  %v3797_v54 = vpop.eup %3796 }
 0x982   :  { %v1512_v55 = vadd.f32 1.0, %v3797_v54  ;;  %v3799_v9 = vpop.eup %3798 }
 0x983   :  { %3802 = vrcp.f32 %v1511_v51  ;;  %v3801_v10 = vpop.eup %3800 }
 0x984   :  { %3804 = vrcp.f32 %v1512_v55  ;;  %v1513_v14 = vadd.f32 1.0, %v3801_v10 }
 0x986   :  { %3806 = vrcp.f32 %v1513_v14 }
 0x98d   :  { %v3803_v11 = vpop.eup %3802 }
 0x98e   :  { %v1522_v12 = vmul.f32 %v3803_v11, %v3799_v9  ;;  %v3805_v13 = vpop.eup %3804 }
 0x98f   :  { %v1521_v53 = vmul.f32 %v3805_v13, %v4896_v41 }
 0x990   :  { %v3807_v46 = vpop.eup %3806 }
 0x991   :  { %v5206_v26 = vpop.f32.mrb[48].mxu1  ;;  %v5208_v29 = vpop.f32.mrb[56].mxu0  ;;  %v1523_v37 = vadd.f32 %v1522_v12, %v1521_v53 }
 0x992   :  { %v5210_v38 = vpop.f32.mrb[49].mxu1  ;;  %v5212_v28 = vpop.f32.mrb[57].mxu0 }
 0x993   :  { %v5214_v4 = vpop.f32.mrb[50].mxu1  ;;  %v5216_v25 = vpop.f32.mrb[58].mxu0  ;;  %3808 = vtanh.f32 %v1523_v37 }
 0x994   :  { %v5218_v43 = vpop.f32.mrb[51].mxu1  ;;  %v5220_v52 = vpop.f32.mrb[59].mxu0 }
 0x999   :  { %v5222_v41 = vpop.f32.mrb[52].mxu1  ;;  %v5224_v27 = vpop.f32.mrb[60].mxu0 }
 0x99a   :  { %5939 = vst [vmem:[#allocation7_spill] sm:$0xff] %v5224_v27  ;;  %v5226_v30 = vpop.f32.mrb[53].mxu1  ;;  %v5228_v31 = vpop.f32.mrb[61].mxu0 }
 0x99b   :  { %5940 = vst [vmem:[#allocation8_spill] sm:$0xff] %v5226_v30  ;;  %5941 = vst [vmem:[#allocation9_spill] sm:$0xff] %v5228_v31  ;;  %v5230_v16 = vpop.f32.mrb[54].mxu1  ;;  %v5232_v32 = vpop.f32.mrb[62].mxu0 }
 0x99c   :  { %5942 = vst [vmem:[#allocation10_spill] sm:$0xff] %v5230_v16  ;;  %5943 = vst [vmem:[#allocation11_spill] sm:$0xff] %v5232_v32  ;;  %v5234_v33 = vpop.f32.mrb[55].mxu1  ;;  %v5236_v35 = vpop.f32.mrb[63].mxu0 }
 0x99d   :  { %5944 = vst [vmem:[#allocation12_spill] sm:$0xff] %v5234_v33  ;;  %5945 = vst [vmem:[#allocation13_spill] sm:$0xff] %v5236_v35  ;;  %v3809_v47 = vpop.eup %3808 }
 0x99e   :  { %v1525_v50 = vmul.f32 %v3809_v47, %v3807_v46 }
 0x9a0   :  { %v1529_v55 = vpack.c.bf16 %v1525_v50, %v4899_v36  ;;  %v1594_v36 = vld [vmem:[%s5875_s8] sm:$0xf] }
 0x9a1   :  { %v5238_v51 = vpop.f32.mrb[56].mxu1  ;;  %v5240_v54 = vpop.f32.mrb[64].mxu0 }
 0x9a2   :  { %5946 = vst [vmem:[#allocation14_spill] sm:$0xff] %v5238_v51  ;;  %5947 = vst [vmem:[#allocation15_spill] sm:$0xff] %v5240_v54  ;;  %v5243_v9 = vpop.f32.mrb[57].mxu1  ;;  %v5245_v10 = vpop.f32.mrb[65].mxu0  ;;  %1839 = vmatmul.mubr.bf16.gmra.mrb[60].mxu1 %v1529_v55  ;;  %1912 = vmatmul.mubr.bf16.gmra.mrb[68].mxu0 %v1529_v55 }
 0x9a3   :  { %5948 = vst [vmem:[#allocation16_spill] sm:$0xff] %v5243_v9  ;;  %5949 = vst [vmem:[#allocation17_spill] sm:$0xff] %v5245_v10  ;;  %v5247_v11 = vpop.f32.mrb[58].mxu1  ;;  %v5249_v12 = vpop.f32.mrb[66].mxu0  ;;  %2114 = vmatprep.mubr.bf16.mxu1 %v5916_v44  ;;  %2155 = vmatprep.mubr.bf16.mxu0 %v5916_v44 }
 0x9a4   :  { %5950 = vst [vmem:[#allocation18_spill] sm:$0xff] %v5247_v11  ;;  %5951 = vst [vmem:[#allocation19_spill] sm:$0xff] %v5249_v12  ;;  %v5251_v13 = vpop.f32.mrb[59].mxu1  ;;  %v5253_v14 = vpop.f32.mrb[67].mxu0  ;;  %v5961_v12 = vld [vmem:[#allocation5_spill] sm:$0xff] }
 0x9a5   :  { %5952 = vst [vmem:[#allocation20_spill] sm:$0xff] %v5251_v13  ;;  %5953 = vst [vmem:[#allocation21_spill] sm:$0xff] %v5253_v14  ;;  %v5960_v14 = vld [vmem:[#allocation6_spill] sm:$0xff]  ;;  %v5962_v11 = vsub.s32 2, %v5961_v12 }
 0x9a6   :  { %v5309_v13 = vrot.slane %v1594_v36, %v5960_v14 }
 0x9a7   :  { %v5313_v10 = vrot.slane %v1594_v36, %v5962_v11 }
 0x9a8   :  { %v1811_v14 = vadd.f32 %v5206_v26, %v5309_v13 }
 0x9aa   :  { %2115 = vmatmul.mubr.bf16.vlgmr.msra.gmra.mrb[64].mxu1 %v5916_v44  ;;  %2156 = vmatmul.mubr.bf16.vlgmr.msra.gmra.mrb[72].mxu0 %v5916_v44 }
 0x9ab   :  { %2194 = vmatpush1.bf16.msra.mxu1 %v5020_v49  ;;  %2235 = vmatpush1.bf16.msra.mxu0 %v5025_v34 }
 0x9ac   :  { %2195 = vmatprep.subr.bf16.mxu1 %v5034_v59  ;;  %2236 = vmatprep.subr.bf16.mxu0 %v5039_v58 }
 0x9ad   :  { %2225 = vmatprep.mubr.bf16.mxu1 %v5916_v44  ;;  %2266 = vmatprep.mubr.bf16.mxu0 %v5916_v44 }
 0x9af   :  { %2196 = vmatpush1.bf16.msra.mxu1 %v5044_v15  ;;  %2237 = vmatpush1.bf16.msra.mxu0 %v5049_v17 }
 0x9b0   :  { %2197 = vmatprep.subr.bf16.mxu1 %v5058_v18  ;;  %2238 = vmatprep.subr.bf16.mxu0 %v5063_v19 }
 0x9b3   :  { %2198 = vmatpush1.bf16.msra.mxu1 %v5068_v20  ;;  %2239 = vmatpush1.bf16.msra.mxu0 %v5073_v21 }
 0x9b4   :  { %2199 = vmatprep.subr.bf16.mxu1 %v5082_v22  ;;  %2240 = vmatprep.subr.bf16.mxu0 %v5092_v56 }
 0x9b7   :  { %2200 = vmatpush1.bf16.msra.mxu1 %v5087_v23  ;;  %2241 = vmatpush1.bf16.msra.mxu0 %v5097_v57 }
 0x9b8   :  { %2201 = vmatprep.subr.bf16.mxu1 %v5106_v60  ;;  %2242 = vmatprep.subr.bf16.mxu0 %v5111_v61 }
 0x9bb   :  { %2202 = vmatpush1.bf16.msra.mxu1 %v5116_v0  ;;  %2243 = vmatpush1.bf16.msra.mxu0 %v5121_v1 }
 0x9bc   :  { %2203 = vmatprep.subr.bf16.mxu1 %v5130_v5  ;;  %2244 = vmatprep.subr.bf16.mxu0 %v5140_v7 }
 0x9bf   :  { %2204 = vmatpush1.bf16.msra.mxu1 %v5135_v6  ;;  %2245 = vmatpush1.bf16.msra.mxu0 %v5145_v8 }
 0x9c0   :  { %2205 = vmatprep.subr.bf16.mxu1 %v5154_v3  ;;  %2246 = vmatprep.subr.bf16.mxu0 %v5159_v42 }
 0x9c3   :  { %2206 = vmatpush1.bf16.msra.mxu1 %v5164_v24  ;;  %2247 = vmatpush1.bf16.msra.mxu0 %v5169_v39 }
 0x9c4   :  { %2207 = vmatprep.subr.bf16.mxu1 %v5178_v40  ;;  %2248 = vmatprep.subr.bf16.mxu0 %v5188_v63 }
 0x9c7   :  { %2208 = vmatpush1.bf16.msra.mxu1 %v5183_v45  ;;  %2249 = vmatpush1.bf16.msra.mxu0 %v5193_v48 }
 0x9c8   :  { %2304 = vmatprep.subr.bf16.mxu1 %v5010_v62  ;;  %2345 = vmatprep.subr.bf16.mxu0 %v5015_v2 }
 0xa75   :  { %v5296_v53 = vpop.f32.mrb[60].mxu1  ;;  %v5298_v37 = vpop.f32.mrb[68].mxu0 }
 0xa76   :  { %5954 = vst [vmem:[#allocation22_spill] sm:$0xff] %v5296_v53  ;;  %5955 = vst [vmem:[#allocation23_spill] sm:$0xff] %v5298_v37  ;;  %v5300_v46 = vpop.f32.mrb[61].mxu1  ;;  %v5302_v47 = vpop.f32.mrb[69].mxu0  ;;  %v5965_v37 = vsub.s32 1, %v5961_v12 }
 0xa77   :  { %5956 = vst [vmem:[#allocation24_spill] sm:$0xff] %v5300_v46  ;;  %5957 = vst [vmem:[#allocation25_spill] sm:$0xff] %v5302_v47  ;;  %v5304_v50 = vpop.f32.mrb[62].mxu1  ;;  %v5306_v55 = vpop.f32.mrb[70].mxu0  ;;  %v5966_v47 = vsub.s32 3, %v5961_v12 }
 0xa78   :  { %5958 = vst [vmem:[#allocation26_spill] sm:$0xff] %v5304_v50  ;;  %5959 = vst [vmem:[#allocation27_spill] sm:$0xff] %v5306_v55  ;;  %v5315_v9 = vpop.f32.mrb[63].mxu1  ;;  %v5317_v53 = vpop.f32.mrb[71].mxu0  ;;  %v5321_v46 = vrot.slane %v1594_v36, %v5965_v37  ;;  %v1884_v55 = vadd.f32 %v5208_v29, %v5313_v10 }
 0xa79   :  { %5963 = vst [vmem:[#allocation28_spill] sm:$0xff] %v5315_v9  ;;  %5964 = vst [vmem:[#allocation29_spill] sm:$0xff] %v5317_v53  ;;  %v5325_v50 = vrot.slane %v1594_v36, %v5966_v47 }
 0xa7a   :  { %v1813_v11 = vadd.f32 %v5210_v38, %v5321_v46 }
 0xa7b   :  { %v1886_v53 = vadd.f32 %v5212_v28, %v5325_v50 }
 0xa7d   :  { %v2116_v9 = vpop.f32.mrb[64].mxu1  ;;  %v2157_v54 = vpop.f32.mrb[72].mxu0 }
 0xa7e   :  { %v2164_v37 = vadd.f32 %v2116_v9, %v1811_v14  ;;  %v2166_v51 = vadd.f32 %v2157_v54, %v1884_v55  ;;  %v2118_v35 = vpop.f32.mrb[65].mxu1  ;;  %v2159_v12 = vpop.f32.mrb[73].mxu0  ;;  %v1815_v55 = vadd.f32 %v5214_v4, %v5309_v13 }
 0xa7f   :  { %v2165_v36 = vadd.f32 %v2118_v35, %v1813_v11  ;;  %v2167_v47 = vadd.f32 %v2159_v12, %v1886_v53  ;;  %v2120_v33 = vpop.f32.mrb[66].mxu1  ;;  %v2161_v32 = vpop.f32.mrb[74].mxu0  ;;  %v1888_v11 = vadd.f32 %v5216_v25, %v5313_v10 }
 0xa80   :  { %v3395_v26 = vmul.f32 -1.442695, %v2164_v37  ;;  %v2121_v16 = vpop.f32.mrb[67].mxu1  ;;  %v2162_v31 = vpop.f32.mrb[75].mxu0  ;;  %v3397_v38 = vmul.f32 -1.442695, %v2166_v51  ;;  %v1817_v37 = vadd.f32 %v5218_v43, %v5321_v46 }
 0xa81   :  { %v3396_v29 = vmul.f32 -1.442695, %v2165_v36  ;;  %v1890_v36 = vadd.f32 %v5220_v52, %v5325_v50 }
 0xa82   :  { %3810 = vpow2.f32 %v3395_v26 }
 0xa83   :  { %3812 = vpow2.f32 %v3396_v29 }
 0xa84   :  { %3814 = vtanh.f32 %v2167_v47 }
 0xa85   :  { %3816 = vpow2.f32 %v3397_v38 }
 0xa8c   :  { %v3811_v30 = vpop.eup %3810 }
 0xa8d   :  { %v2177_v27 = vadd.f32 1.0, %v3811_v30  ;;  %v3813_v28 = vpop.eup %3812 }
 0xa8e   :  { %v2178_v54 = vadd.f32 1.0, %v3813_v28  ;;  %v3815_v9 = vpop.eup %3814 }
 0xa8f   :  { %3818 = vrcp.f32 %v2177_v27  ;;  %v3817_v35 = vpop.eup %3816 }
 0xa90   :  { %3820 = vrcp.f32 %v2178_v54  ;;  %v2179_v14 = vadd.f32 1.0, %v3817_v35 }
 0xa92   :  { %3822 = vrcp.f32 %v2179_v14 }
 0xa99   :  { %v3819_v12 = vpop.eup %3818 }
 0xa9a   :  { %v2188_v33 = vmul.f32 %v3819_v12, %v3815_v9  ;;  %v3821_v32 = vpop.eup %3820 }
 0xa9b   :  { %v2187_v16 = vmul.f32 0.0, %v3821_v32 }
 0xa9c   :  { %v3823_v51 = vpop.eup %3822 }
 0xa9d   :  { %v5335_v31 = vadd.f32 %v2188_v33, %v2187_v16 }
 0xa9f   :  { %3824 = vtanh.f32 %v5335_v31 }
 0xaa9   :  { %v3825_v30 = vpop.eup %3824 }
 0xaaa   :  { %v5338_v53 = vmul.f32 %v3825_v30, %v3823_v51 }
 0xaac   :  { %v2192_v27 = vpack.c.bf16 %v5338_v53, %v5338_v53 }
 0xaae   :  { %2226 = vmatmul.mubr.bf16.vlgmr.msra.gmra.mrb[68].mxu1 %v2192_v27  ;;  %2267 = vmatmul.mubr.bf16.vlgmr.msra.gmra.mrb[76].mxu0 %v2192_v27 }
 0xaaf   :  { %2305 = vmatpush1.bf16.msra.mxu1 %v5020_v49  ;;  %2346 = vmatpush1.bf16.msra.mxu0 %v5025_v34 }
 0xab0   :  { %2306 = vmatprep.subr.bf16.mxu1 %v5034_v59  ;;  %2347 = vmatprep.subr.bf16.mxu0 %v5039_v58 }
 0xab1   :  { %2336 = vmatprep.mubr.bf16.mxu1 %v5916_v44  ;;  %2377 = vmatprep.mubr.bf16.mxu0 %v5916_v44 }
 0xab3   :  { %2307 = vmatpush1.bf16.msra.mxu1 %v5044_v15  ;;  %2348 = vmatpush1.bf16.msra.mxu0 %v5049_v17 }
 0xab4   :  { %2308 = vmatprep.subr.bf16.mxu1 %v5058_v18  ;;  %2349 = vmatprep.subr.bf16.mxu0 %v5063_v19 }
 0xab7   :  { %2309 = vmatpush1.bf16.msra.mxu1 %v5068_v20  ;;  %2350 = vmatpush1.bf16.msra.mxu0 %v5073_v21 }
 0xab8   :  { %2310 = vmatprep.subr.bf16.mxu1 %v5082_v22  ;;  %2351 = vmatprep.subr.bf16.mxu0 %v5092_v56 }
 0xabb   :  { %2311 = vmatpush1.bf16.msra.mxu1 %v5087_v23  ;;  %2352 = vmatpush1.bf16.msra.mxu0 %v5097_v57 }
 0xabc   :  { %2312 = vmatprep.subr.bf16.mxu1 %v5106_v60  ;;  %2353 = vmatprep.subr.bf16.mxu0 %v5111_v61 }
 0xabf   :  { %2313 = vmatpush1.bf16.msra.mxu1 %v5116_v0  ;;  %2354 = vmatpush1.bf16.msra.mxu0 %v5121_v1 }
 0xac0   :  { %2314 = vmatprep.subr.bf16.mxu1 %v5130_v5  ;;  %2355 = vmatprep.subr.bf16.mxu0 %v5140_v7 }
 0xac3   :  { %2315 = vmatpush1.bf16.msra.mxu1 %v5135_v6  ;;  %2356 = vmatpush1.bf16.msra.mxu0 %v5145_v8 }
 0xac4   :  { %2316 = vmatprep.subr.bf16.mxu1 %v5154_v3  ;;  %2357 = vmatprep.subr.bf16.mxu0 %v5159_v42 }
 0xac7   :  { %2317 = vmatpush1.bf16.msra.mxu1 %v5164_v24  ;;  %2358 = vmatpush1.bf16.msra.mxu0 %v5169_v39 }
 0xac8   :  { %2318 = vmatprep.subr.bf16.mxu1 %v5178_v40  ;;  %2359 = vmatprep.subr.bf16.mxu0 %v5188_v63 }
 0xacb   :  { %2319 = vmatpush1.bf16.msra.mxu1 %v5183_v45  ;;  %2360 = vmatpush1.bf16.msra.mxu0 %v5193_v48 }
 0xacc   :  { %2415 = vmatprep.subr.bf16.mxu1 %v5010_v62  ;;  %2456 = vmatprep.subr.bf16.mxu0 %v5015_v2 }
 0xb81   :  { %v2227_v47 = vpop.f32.mrb[68].mxu1  ;;  %v2268_v26 = vpop.f32.mrb[76].mxu0 }
 0xb82   :  { %v2275_v29 = vadd.f32 %v2227_v47, %v1815_v55  ;;  %v2277_v38 = vadd.f32 %v2268_v26, %v1888_v11  ;;  %v2229_v28 = vpop.f32.mrb[69].mxu1  ;;  %v2270_v54 = vpop.f32.mrb[77].mxu0 }
 0xb83   :  { %v2276_v9 = vadd.f32 %v2229_v28, %v1817_v37  ;;  %v2278_v35 = vadd.f32 %v2270_v54, %v1890_v36  ;;  %v2231_v12 = vpop.f32.mrb[70].mxu1  ;;  %v2272_v33 = vpop.f32.mrb[78].mxu0 }
 0xb84   :  { %v3398_v4 = vmul.f32 -1.442695, %v2275_v29  ;;  %v2232_v32 = vpop.f32.mrb[71].mxu1  ;;  %v2273_v14 = vpop.f32.mrb[79].mxu0  ;;  %v3400_v43 = vmul.f32 -1.442695, %v2277_v38 }
 0xb85   :  { %v3399_v25 = vmul.f32 -1.442695, %v2276_v9  ;;  %v5968_v33 = vld [vmem:[#allocation8_spill] sm:$0xff]  ;;  %v5969_v32 = vld [vmem:[#allocation9_spill] sm:$0xff] }
 0xb86   :  { %3826 = vpow2.f32 %v3398_v4  ;;  %v1823_v4 = vadd.f32 %v5968_v33, %v5321_v46  ;;  %v1896_v14 = vadd.f32 %v5969_v32, %v5325_v50 }
 0xb87   :  { %3828 = vpow2.f32 %v3399_v25 }
 0xb88   :  { %3830 = vtanh.f32 %v2278_v35  ;;  %v5967_v35 = vld [vmem:[#allocation7_spill] sm:$0xff] }
 0xb89   :  { %3832 = vpow2.f32 %v3400_v43  ;;  %v1894_v12 = vadd.f32 %v5967_v35, %v5313_v10 }
 0xb90   :  { %v3827_v16 = vpop.eup %3826 }
 0xb91   :  { %v2288_v51 = vadd.f32 1.0, %v3827_v16  ;;  %v3829_v52 = vpop.eup %3828 }
 0xb92   :  { %v2289_v30 = vadd.f32 1.0, %v3829_v52  ;;  %v3831_v27 = vpop.eup %3830 }
 0xb93   :  { %3834 = vrcp.f32 %v2288_v51  ;;  %v3833_v55 = vpop.eup %3832 }
 0xb94   :  { %3836 = vrcp.f32 %v2289_v30  ;;  %v2290_v47 = vadd.f32 1.0, %v3833_v55 }
 0xb96   :  { %3838 = vrcp.f32 %v2290_v47 }
 0xb9d   :  { %v3835_v11 = vpop.eup %3834 }
 0xb9e   :  { %v2299_v37 = vmul.f32 %v3835_v11, %v3831_v27  ;;  %v3837_v36 = vpop.eup %3836 }
 0xb9f   :  { %v2298_v26 = vmul.f32 %v3837_v36, %v5335_v31  ;;  %v1821_v31 = vadd.f32 %v5222_v41, %v5309_v13 }
 0xba0   :  { %v3839_v38 = vpop.eup %3838 }
 0xba1   :  { %v5385_v29 = vadd.f32 %v2299_v37, %v2298_v26 }
 0xba3   :  { %3840 = vtanh.f32 %v5385_v29 }
 0xbad   :  { %v3841_v28 = vpop.eup %3840 }
 0xbae   :  { %v5388_v54 = vmul.f32 %v3841_v28, %v3839_v38 }
 0xbb0   :  { %v2303_v9 = vpack.c.bf16 %v5388_v54, %v5388_v54 }
 0xbb2   :  { %2337 = vmatmul.mubr.bf16.vlgmr.msra.gmra.mrb[72].mxu1 %v2303_v9  ;;  %2378 = vmatmul.mubr.bf16.vlgmr.msra.gmra.mrb[80].mxu0 %v2303_v9 }
 0xbb3   :  { %2416 = vmatpush1.bf16.msra.mxu1 %v5020_v49  ;;  %2457 = vmatpush1.bf16.msra.mxu0 %v5025_v34 }
 0xbb4   :  { %2417 = vmatprep.subr.bf16.mxu1 %v5034_v59  ;;  %2458 = vmatprep.subr.bf16.mxu0 %v5039_v58 }
 0xbb5   :  { %2447 = vmatprep.mubr.bf16.mxu1 %v5916_v44  ;;  %2488 = vmatprep.mubr.bf16.mxu0 %v5916_v44 }
 0xbb7   :  { %2418 = vmatpush1.bf16.msra.mxu1 %v5044_v15  ;;  %2459 = vmatpush1.bf16.msra.mxu0 %v5049_v17 }
 0xbb8   :  { %2419 = vmatprep.subr.bf16.mxu1 %v5058_v18  ;;  %2460 = vmatprep.subr.bf16.mxu0 %v5063_v19 }
 0xbbb   :  { %2420 = vmatpush1.bf16.msra.mxu1 %v5068_v20  ;;  %2461 = vmatpush1.bf16.msra.mxu0 %v5073_v21 }
 0xbbc   :  { %2421 = vmatprep.subr.bf16.mxu1 %v5082_v22  ;;  %2462 = vmatprep.subr.bf16.mxu0 %v5092_v56 }
 0xbbf   :  { %2422 = vmatpush1.bf16.msra.mxu1 %v5087_v23  ;;  %2463 = vmatpush1.bf16.msra.mxu0 %v5097_v57 }
 0xbc0   :  { %2423 = vmatprep.subr.bf16.mxu1 %v5106_v60  ;;  %2464 = vmatprep.subr.bf16.mxu0 %v5111_v61 }
 0xbc3   :  { %2424 = vmatpush1.bf16.msra.mxu1 %v5116_v0  ;;  %2465 = vmatpush1.bf16.msra.mxu0 %v5121_v1 }
 0xbc4   :  { %2425 = vmatprep.subr.bf16.mxu1 %v5130_v5  ;;  %2466 = vmatprep.subr.bf16.mxu0 %v5140_v7 }
 0xbc7   :  { %2426 = vmatpush1.bf16.msra.mxu1 %v5135_v6  ;;  %2467 = vmatpush1.bf16.msra.mxu0 %v5145_v8 }
 0xbc8   :  { %2427 = vmatprep.subr.bf16.mxu1 %v5154_v3  ;;  %2468 = vmatprep.subr.bf16.mxu0 %v5159_v42 }
 0xbcb   :  { %2428 = vmatpush1.bf16.msra.mxu1 %v5164_v24  ;;  %2469 = vmatpush1.bf16.msra.mxu0 %v5169_v39 }
 0xbcc   :  { %2429 = vmatprep.subr.bf16.mxu1 %v5178_v40  ;;  %2470 = vmatprep.subr.bf16.mxu0 %v5188_v63 }
 0xbcf   :  { %2430 = vmatpush1.bf16.msra.mxu1 %v5183_v45  ;;  %2471 = vmatpush1.bf16.msra.mxu0 %v5193_v48 }
 0xbd0   :  { %2526 = vmatprep.subr.bf16.mxu1 %v5010_v62  ;;  %2567 = vmatprep.subr.bf16.mxu0 %v5015_v2 }
 0xc85   :  { %v2338_v25 = vpop.f32.mrb[72].mxu1  ;;  %v2379_v43 = vpop.f32.mrb[80].mxu0 }
 0xc86   :  { %v2386_v16 = vadd.f32 %v2338_v25, %v1821_v31  ;;  %v2388_v51 = vadd.f32 %v2379_v43, %v1894_v12  ;;  %v2340_v52 = vpop.f32.mrb[73].mxu1  ;;  %v2381_v30 = vpop.f32.mrb[81].mxu0 }
 0xc87   :  { %v2387_v27 = vadd.f32 %v2340_v52, %v1823_v4  ;;  %v2389_v55 = vadd.f32 %v2381_v30, %v1896_v14  ;;  %v2342_v11 = vpop.f32.mrb[74].mxu1  ;;  %v2383_v37 = vpop.f32.mrb[82].mxu0 }
 0xc88   :  { %v3401_v41 = vmul.f32 -1.442695, %v2386_v16  ;;  %v2343_v36 = vpop.f32.mrb[75].mxu1  ;;  %v2384_v47 = vpop.f32.mrb[83].mxu0  ;;  %v3403_v38 = vmul.f32 -1.442695, %v2388_v51 }
 0xc89   :  { %v3402_v26 = vmul.f32 -1.442695, %v2387_v27  ;;  %v5971_v11 = vld [vmem:[#allocation11_spill] sm:$0xff]  ;;  %v5973_v47 = vld [vmem:[#allocation13_spill] sm:$0xff] }
 0xc8a   :  { %3842 = vpow2.f32 %v3401_v41  ;;  %v1898_v37 = vadd.f32 %v5971_v11, %v5313_v10  ;;  %v5972_v41 = vld [vmem:[#allocation12_spill] sm:$0xff] }
 0xc8b   :  { %3844 = vpow2.f32 %v3402_v26  ;;  %v1827_v36 = vadd.f32 %v5972_v41, %v5321_v46  ;;  %v1900_v26 = vadd.f32 %v5973_v47, %v5325_v50 }
 0xc8c   :  { %3846 = vtanh.f32 %v2389_v55 }
 0xc8d   :  { %3848 = vpow2.f32 %v3403_v38 }
 0xc94   :  { %v3843_v28 = vpop.eup %3842 }
 0xc95   :  { %v2399_v9 = vadd.f32 1.0, %v3843_v28  ;;  %v3845_v35 = vpop.eup %3844 }
 0xc96   :  { %v2400_v31 = vadd.f32 1.0, %v3845_v35  ;;  %v3847_v12 = vpop.eup %3846 }
 0xc97   :  { %3850 = vrcp.f32 %v2399_v9  ;;  %v3849_v33 = vpop.eup %3848 }
 0xc98   :  { %3852 = vrcp.f32 %v2400_v31  ;;  %v2401_v25 = vadd.f32 1.0, %v3849_v33 }
 0xc9a   :  { %3854 = vrcp.f32 %v2401_v25 }
 0xca1   :  { %v3851_v4 = vpop.eup %3850 }
 0xca2   :  { %v2410_v32 = vmul.f32 %v3851_v4, %v3847_v12  ;;  %v3853_v14 = vpop.eup %3852 }
 0xca3   :  { %v2409_v43 = vmul.f32 %v3853_v14, %v5385_v29  ;;  %v5970_v29 = vld [vmem:[#allocation10_spill] sm:$0xff] }
 0xca4   :  { %v3855_v51 = vpop.eup %3854  ;;  %v1825_v55 = vadd.f32 %v5970_v29, %v5309_v13 }
 0xca5   :  { %v5435_v16 = vadd.f32 %v2410_v32, %v2409_v43 }
 0xca7   :  { %3856 = vtanh.f32 %v5435_v16 }
 0xcb1   :  { %v3857_v52 = vpop.eup %3856 }
 0xcb2   :  { %v5438_v30 = vmul.f32 %v3857_v52, %v3855_v51 }
 0xcb4   :  { %v2414_v27 = vpack.c.bf16 %v5438_v30, %v5438_v30 }
 0xcb6   :  { %2448 = vmatmul.mubr.bf16.vlgmr.msra.gmra.mrb[76].mxu1 %v2414_v27  ;;  %2489 = vmatmul.mubr.bf16.vlgmr.msra.gmra.mrb[84].mxu0 %v2414_v27 }
 0xcb7   :  { %2527 = vmatpush1.bf16.msra.mxu1 %v5020_v49  ;;  %2568 = vmatpush1.bf16.msra.mxu0 %v5025_v34 }
 0xcb8   :  { %2528 = vmatprep.subr.bf16.mxu1 %v5034_v59  ;;  %2569 = vmatprep.subr.bf16.mxu0 %v5039_v58 }
 0xcb9   :  { %2558 = vmatprep.mubr.bf16.mxu1 %v5916_v44  ;;  %2599 = vmatprep.mubr.bf16.mxu0 %v5916_v44 }
 0xcbb   :  { %2529 = vmatpush1.bf16.msra.mxu1 %v5044_v15  ;;  %2570 = vmatpush1.bf16.msra.mxu0 %v5049_v17 }
 0xcbc   :  { %2530 = vmatprep.subr.bf16.mxu1 %v5058_v18  ;;  %2571 = vmatprep.subr.bf16.mxu0 %v5063_v19 }
 0xcbf   :  { %2531 = vmatpush1.bf16.msra.mxu1 %v5068_v20  ;;  %2572 = vmatpush1.bf16.msra.mxu0 %v5073_v21 }
 0xcc0   :  { %2532 = vmatprep.subr.bf16.mxu1 %v5082_v22  ;;  %2573 = vmatprep.subr.bf16.mxu0 %v5092_v56 }
 0xcc3   :  { %2533 = vmatpush1.bf16.msra.mxu1 %v5087_v23  ;;  %2574 = vmatpush1.bf16.msra.mxu0 %v5097_v57 }
 0xcc4   :  { %2534 = vmatprep.subr.bf16.mxu1 %v5106_v60  ;;  %2575 = vmatprep.subr.bf16.mxu0 %v5111_v61 }
 0xcc7   :  { %2535 = vmatpush1.bf16.msra.mxu1 %v5116_v0  ;;  %2576 = vmatpush1.bf16.msra.mxu0 %v5121_v1 }
 0xcc8   :  { %2536 = vmatprep.subr.bf16.mxu1 %v5130_v5  ;;  %2577 = vmatprep.subr.bf16.mxu0 %v5140_v7 }
 0xccb   :  { %2537 = vmatpush1.bf16.msra.mxu1 %v5135_v6  ;;  %2578 = vmatpush1.bf16.msra.mxu0 %v5145_v8 }
 0xccc   :  { %2538 = vmatprep.subr.bf16.mxu1 %v5154_v3  ;;  %2579 = vmatprep.subr.bf16.mxu0 %v5159_v42 }
 0xccf   :  { %2539 = vmatpush1.bf16.msra.mxu1 %v5164_v24  ;;  %2580 = vmatpush1.bf16.msra.mxu0 %v5169_v39 }
 0xcd0   :  { %2540 = vmatprep.subr.bf16.mxu1 %v5178_v40  ;;  %2581 = vmatprep.subr.bf16.mxu0 %v5188_v63 }
 0xcd3   :  { %2541 = vmatpush1.bf16.msra.mxu1 %v5183_v45  ;;  %2582 = vmatpush1.bf16.msra.mxu0 %v5193_v48 }
 0xcd4   :  { %2637 = vmatprep.subr.bf16.mxu1 %v5010_v62  ;;  %2678 = vmatprep.subr.bf16.mxu0 %v5015_v2 }
 0xd89   :  { %v2449_v38 = vpop.f32.mrb[76].mxu1  ;;  %v2490_v28 = vpop.f32.mrb[84].mxu0 }
 0xd8a   :  { %v2497_v9 = vadd.f32 %v2449_v38, %v1825_v55  ;;  %v2499_v35 = vadd.f32 %v2490_v28, %v1898_v37  ;;  %v2451_v31 = vpop.f32.mrb[77].mxu1  ;;  %v2492_v12 = vpop.f32.mrb[85].mxu0 }
 0xd8b   :  { %v2498_v33 = vadd.f32 %v2451_v31, %v1827_v36  ;;  %v2500_v4 = vadd.f32 %v2492_v12, %v1900_v26  ;;  %v2453_v32 = vpop.f32.mrb[78].mxu1  ;;  %v2494_v14 = vpop.f32.mrb[86].mxu0 }
 0xd8c   :  { %v3404_v25 = vmul.f32 -1.442695, %v2497_v9  ;;  %v2454_v43 = vpop.f32.mrb[79].mxu1  ;;  %v2495_v51 = vpop.f32.mrb[87].mxu0  ;;  %v3406_v27 = vmul.f32 -1.442695, %v2499_v35 }
 0xd8d   :  { %v3405_v52 = vmul.f32 -1.442695, %v2498_v33 }
 0xd8e   :  { %3858 = vpow2.f32 %v3404_v25 }
 0xd8f   :  { %3860 = vpow2.f32 %v3405_v52 }
 0xd90   :  { %3862 = vtanh.f32 %v2500_v4 }
 0xd91   :  { %3864 = vpow2.f32 %v3406_v27  ;;  %v5545_v27 = vld [vmem:[%s5874_s7 + $0x8] ss:$16 sps:$4 sm:$0xff]  }
 0xd98   :  { %v3859_v29 = vpop.eup %3858 }
 0xd99   :  { %v2510_v11 = vadd.f32 1.0, %v3859_v29  ;;  %v3861_v41 = vpop.eup %3860  ;;  %v5551_v29 = vld [vmem:[%s5874_s7] ss:$16 sps:$4 sm:$0xff]  }
 0xd9a   :  { %v2511_v55 = vadd.f32 1.0, %v3861_v41  ;;  %v3863_v37 = vpop.eup %3862  ;;  %v5563_v41 = vld [vmem:[%s5874_s7 + $0x24] ss:$16 sps:$4 sm:$0xff]  }
 0xd9b   :  { %3866 = vrcp.f32 %v2510_v11  ;;  %v3865_v36 = vpop.eup %3864  ;;  %v5557_v11 = vld [vmem:[%s5874_s7 + $0x2c] ss:$16 sps:$4 sm:$0xff]  }
 0xd9c   :  { %3868 = vrcp.f32 %v2511_v55  ;;  %v2512_v28 = vadd.f32 1.0, %v3865_v36  ;;  %v5571_v55 = vld [vmem:[%s5874_s7 + $0x28] ss:$16 sps:$4 sm:$0xff]   ;;  %v5583_v36 = vld [vmem:[%s5874_s7 + $0x4c] ss:$16 sps:$4 sm:$0xff]  }
 0xd9e   :  { %3870 = vrcp.f32 %v2512_v28  ;;  %v5607_v28 = vld [vmem:[%s5874_s7 + $0x6c] ss:$16 sps:$4 sm:$0xff]  }
 0xda5   :  { %v3867_v47 = vpop.eup %3866 }
 0xda6   :  { %v2521_v26 = vmul.f32 %v3867_v47, %v3863_v37  ;;  %v3869_v38 = vpop.eup %3868  ;;  %v5577_v37 = vld [vmem:[%s5874_s7 + $0x20] ss:$16 sps:$4 sm:$0xff]   ;;  %v5589_v47 = vld [vmem:[%s5874_s7 + $0x44] ss:$16 sps:$4 sm:$0xff]  }
 0xda7   :  { %v2520_v9 = vmul.f32 %v3869_v38, %v5435_v16  ;;  %v5601_v38 = vld [vmem:[%s5874_s7 + $0x40] ss:$16 sps:$4 sm:$0xff]  }
 0xda8   :  { %v3871_v35 = vpop.eup %3870 }
 0xda9   :  { %v5485_v31 = vadd.f32 %v2521_v26, %v2520_v9  ;;  %v5595_v26 = vld [vmem:[%s5874_s7 + $0x48] ss:$16 sps:$4 sm:$0xff]   ;;  %v5613_v9 = vld [vmem:[%s5874_s7 + $0x64] ss:$16 sps:$4 sm:$0xff]  }
 0xdab   :  { %3872 = vtanh.f32 %v5485_v31 }
 0xdb5   :  { %v3873_v12 = vpop.eup %3872 }
 0xdb6   :  { %v5488_v33 = vmul.f32 %v3873_v12, %v3871_v35  ;;  %v5625_v35 = vld [vmem:[%s5874_s7 + $0x60] ss:$16 sps:$4 sm:$0xff]   ;;  %v5631_v12 = vld [vmem:[%s5874_s7 + $0x8c] ss:$16 sps:$4 sm:$0xff]  }
 0xdb8   :  { %v2525_v4 = vpack.c.bf16 %v5488_v33, %v5488_v33 }
 0xdba   :  { %2559 = vmatmul.mubr.bf16.vlgmr.msra.gmra.mrb[80].mxu1 %v2525_v4  ;;  %2600 = vmatmul.mubr.bf16.vlgmr.msra.gmra.mrb[88].mxu0 %v2525_v4  ;;  %v5637_v4 = vld [vmem:[%s5874_s7 + $0x84] ss:$16 sps:$4 sm:$0xff]  }
 0xdbb   :  { %2638 = vmatpush1.bf16.msra.mxu1 %v5020_v49  ;;  %2679 = vmatpush1.bf16.msra.mxu0 %v5025_v34  ;;  %v5974_v49 = vld [vmem:[#allocation14_spill] sm:$0xff] }
 0xdbc   :  { %2639 = vmatprep.subr.bf16.mxu1 %v5034_v59  ;;  %2680 = vmatprep.subr.bf16.mxu0 %v5039_v58  ;;  %v1831_v34 = vadd.f32 %v5974_v49, %v5309_v13  ;;  %v5975_v59 = vld [vmem:[#allocation15_spill] sm:$0xff] }
 0xdbd   :  { %2669 = vmatprep.mubr.bf16.mxu1 %v5916_v44  ;;  %2710 = vmatprep.mubr.bf16.mxu0 %v5916_v44  ;;  %v1904_v58 = vadd.f32 %v5975_v59, %v5313_v10  ;;  %v5643_v49 = vld [vmem:[%s5874_s7 + $0x88] ss:$16 sps:$4 sm:$0xff]   ;;  %v5655_v59 = vld [vmem:[%s5874_s7 + $0xac] ss:$16 sps:$4 sm:$0xff]  }
 0xdbf   :  { %2640 = vmatpush1.bf16.msra.mxu1 %v5044_v15  ;;  %2681 = vmatpush1.bf16.msra.mxu0 %v5049_v17  ;;  %v5976_v15 = vld [vmem:[#allocation16_spill] sm:$0xff] }
 0xdc0   :  { %2641 = vmatprep.subr.bf16.mxu1 %v5058_v18  ;;  %2682 = vmatprep.subr.bf16.mxu0 %v5063_v19  ;;  %v1833_v17 = vadd.f32 %v5976_v15, %v5321_v46  ;;  %v5977_v18 = vld [vmem:[#allocation17_spill] sm:$0xff] }
 0xdc1   :  { %v1906_v19 = vadd.f32 %v5977_v18, %v5325_v50  ;;  %v5667_v15 = vld [vmem:[%s5874_s7 + $0xa8] ss:$16 sps:$4 sm:$0xff]   ;;  %v5679_v18 = vld [vmem:[%s5874_s7 + $0xcc] ss:$16 sps:$4 sm:$0xff]  }
 0xdc3   :  { %2642 = vmatpush1.bf16.msra.mxu1 %v5068_v20  ;;  %2683 = vmatpush1.bf16.msra.mxu0 %v5073_v21 }
 0xdc4   :  { %2643 = vmatprep.subr.bf16.mxu1 %v5082_v22  ;;  %2684 = vmatprep.subr.bf16.mxu0 %v5092_v56 }
 0xdc7   :  { %2644 = vmatpush1.bf16.msra.mxu1 %v5087_v23  ;;  %2685 = vmatpush1.bf16.msra.mxu0 %v5097_v57 }
 0xdc8   :  { %2645 = vmatprep.subr.bf16.mxu1 %v5106_v60  ;;  %2686 = vmatprep.subr.bf16.mxu0 %v5111_v61 }
 0xdcb   :  { %2646 = vmatpush1.bf16.msra.mxu1 %v5116_v0  ;;  %2687 = vmatpush1.bf16.msra.mxu0 %v5121_v1 }
 0xdcc   :  { %2647 = vmatprep.subr.bf16.mxu1 %v5130_v5  ;;  %2688 = vmatprep.subr.bf16.mxu0 %v5140_v7 }
 0xdcf   :  { %2648 = vmatpush1.bf16.msra.mxu1 %v5135_v6  ;;  %2689 = vmatpush1.bf16.msra.mxu0 %v5145_v8 }
 0xdd0   :  { %2649 = vmatprep.subr.bf16.mxu1 %v5154_v3  ;;  %2690 = vmatprep.subr.bf16.mxu0 %v5159_v42 }
 0xdd3   :  { %2650 = vmatpush1.bf16.msra.mxu1 %v5164_v24  ;;  %2691 = vmatpush1.bf16.msra.mxu0 %v5169_v39 }
 0xdd4   :  { %2651 = vmatprep.subr.bf16.mxu1 %v5178_v40  ;;  %2692 = vmatprep.subr.bf16.mxu0 %v5188_v63 }
 0xdd7   :  { %2652 = vmatpush1.bf16.msra.mxu1 %v5183_v45  ;;  %2693 = vmatpush1.bf16.msra.mxu0 %v5193_v48 }
 0xdd8   :  { %2789 = vmatprep.subr.bf16.mxu0 %v5015_v2  ;;  %2748 = vmatprep.subr.bf16.mxu1 %v5010_v62 }
 0xe8d   :  { %v2560_v20 = vpop.f32.mrb[80].mxu1  ;;  %v2601_v21 = vpop.f32.mrb[88].mxu0 }
 0xe8e   :  { %v2608_v22 = vadd.f32 %v2560_v20, %v1831_v34  ;;  %v2610_v23 = vadd.f32 %v2601_v21, %v1904_v58  ;;  %v2562_v56 = vpop.f32.mrb[81].mxu1  ;;  %v2603_v2 = vpop.f32.mrb[89].mxu0  ;;  %v5649_v34 = vld [vmem:[%s5874_s7 + $0x80] ss:$16 sps:$4 sm:$0xff]   ;;  %v5661_v58 = vld [vmem:[%s5874_s7 + $0xa4] ss:$16 sps:$4 sm:$0xff]  }
 0xe8f   :  { %v2609_v57 = vadd.f32 %v2562_v56, %v1833_v17  ;;  %v2611_v62 = vadd.f32 %v2603_v2, %v1906_v19  ;;  %v2564_v60 = vpop.f32.mrb[82].mxu1  ;;  %v2605_v61 = vpop.f32.mrb[90].mxu0  ;;  %v5673_v17 = vld [vmem:[%s5874_s7 + $0xa0] ss:$16 sps:$4 sm:$0xff]   ;;  %v5685_v19 = vld [vmem:[%s5874_s7 + $0xc4] ss:$16 sps:$4 sm:$0xff]  }
 0xe90   :  { %v3407_v0 = vmul.f32 -1.442695, %v2608_v22  ;;  %v2565_v1 = vpop.f32.mrb[83].mxu1  ;;  %v2606_v5 = vpop.f32.mrb[91].mxu0  ;;  %v3409_v7 = vmul.f32 -1.442695, %v2610_v23 }
 0xe91   :  { %v3408_v6 = vmul.f32 -1.442695, %v2609_v57  ;;  %v5691_v20 = vld [vmem:[%s5874_s7 + $0xc8] ss:$16 sps:$4 sm:$0xff]   ;;  %v5697_v21 = vld [vmem:[%s5874_s7 + $0xc0] ss:$16 sps:$4 sm:$0xff]  }
 0xe92   :  { %3874 = vpow2.f32 %v3407_v0  ;;  %v5703_v22 = vld [vmem:[%s5874_s7 + $0xec] ss:$16 sps:$4 sm:$0xff]   ;;  %v5709_v23 = vld [vmem:[%s5874_s7 + $0xe4] ss:$16 sps:$4 sm:$0xff]   ;;  %v5715_v56 = vld [vmem:[%s5874_s7 + $0xe8] ss:$16 sps:$4 sm:$0xff]  }
 0xe93   :  { %3876 = vpow2.f32 %v3408_v6  ;;  %v5721_v2 = vld [vmem:[%s5874_s7 + $0xe0] ss:$16 sps:$4 sm:$0xff]   ;;  %v4002_v57 = vld [vmem:[%s5874_s7 + $0xc] ss:$16 sps:$4 sm:$0xff]  }
 0xe94   :  { %3878 = vtanh.f32 %v2611_v62  ;;  %v4003_v62 = vld [vmem:[%s5874_s7 + $0x4] ss:$16 sps:$4 sm:$0xff]   ;;  %v5979_v0 = vld [vmem:[#allocation19_spill] sm:$0xff] }
 0xe95   :  { %3880 = vpow2.f32 %v3409_v7  ;;  %v5978_v60 = vld [vmem:[#allocation18_spill] sm:$0xff]  ;;  %v1908_v1 = vadd.f32 %v5979_v0, %v5313_v10  ;;  %v5980_v5 = vld [vmem:[#allocation20_spill] sm:$0xff]  ;;  %v5981_v7 = vld [vmem:[#allocation21_spill] sm:$0xff] }
 0xe96   :  { %v1835_v61 = vadd.f32 %v5978_v60, %v5309_v13  ;;  %v1837_v6 = vadd.f32 %v5980_v5, %v5321_v46 }
 0xe9c   :  { %v3875_v8 = vpop.eup %3874 }
 0xe9d   :  { %v2621_v3 = vadd.f32 1.0, %v3875_v8  ;;  %v3877_v42 = vpop.eup %3876  ;;  %v1910_v8 = vadd.f32 %v5981_v7, %v5325_v50 }
 0xe9e   :  { %v2622_v24 = vadd.f32 1.0, %v3877_v42  ;;  %v3879_v39 = vpop.eup %3878 }
 0xe9f   :  { %3882 = vrcp.f32 %v2621_v3  ;;  %v3881_v40 = vpop.eup %3880 }
 0xea0   :  { %3884 = vrcp.f32 %v2622_v24  ;;  %v2623_v16 = vadd.f32 1.0, %v3881_v40 }
 0xea2   :  { %3886 = vrcp.f32 %v2623_v16 }
 0xea9   :  { %v3883_v45 = vpop.eup %3882 }
 0xeaa   :  { %v2632_v63 = vmul.f32 %v3883_v45, %v3879_v39  ;;  %v3885_v48 = vpop.eup %3884 }
 0xeab   :  { %v2631_v32 = vmul.f32 %v3885_v48, %v5485_v31  ;;  %v5619_v31 = vld [vmem:[%s5874_s7 + $0x68] ss:$16 sps:$4 sm:$0xff]  }
 0xeac   :  { %v3887_v25 = vpop.eup %3886 }
 0xead   :  { %v5535_v14 = vadd.f32 %v2632_v63, %v2631_v32 }
 0xeaf   :  { %3888 = vtanh.f32 %v5535_v14 }
 0xeb9   :  { %v3889_v43 = vpop.eup %3888 }
 0xeba   :  { %v5538_v51 = vmul.f32 %v3889_v43, %v3887_v25 }
 0xebc   :  { %v2636_v52 = vpack.c.bf16 %v5538_v51, %v5538_v51 }
 0xebe   :  { %2670 = vmatmul.mubr.bf16.vlgmr.msra.gmra.mrb[84].mxu1 %v2636_v52  ;;  %2711 = vmatmul.mubr.bf16.vlgmr.msra.gmra.mrb[92].mxu0 %v2636_v52 }
 0xebf   :  { %2790 = vmatpush1.bf16.msra.mxu0 %v5545_v27  ;;  %2749 = vmatpush1.bf16.msra.mxu1 %v5551_v29 }
 0xec0   :  { %2791 = vmatprep.subr.bf16.mxu0 %v5557_v11  ;;  %2750 = vmatprep.subr.bf16.mxu1 %v5563_v41 }
 0xec1   :  { %2780 = vmatprep.mubr.bf16.mxu1 %v5916_v44  ;;  %2821 = vmatprep.mubr.bf16.mxu0 %v5916_v44 }
 0xec3   :  { %2792 = vmatpush1.bf16.msra.mxu0 %v5571_v55  ;;  %2751 = vmatpush1.bf16.msra.mxu1 %v5577_v37 }
 0xec4   :  { %2793 = vmatprep.subr.bf16.mxu0 %v5583_v36  ;;  %2752 = vmatprep.subr.bf16.mxu1 %v5589_v47 }
 0xec7   :  { %2794 = vmatpush1.bf16.msra.mxu0 %v5595_v26  ;;  %2753 = vmatpush1.bf16.msra.mxu1 %v5601_v38 }
 0xec8   :  { %2795 = vmatprep.subr.bf16.mxu0 %v5607_v28  ;;  %2754 = vmatprep.subr.bf16.mxu1 %v5613_v9 }
 0xecb   :  { %2796 = vmatpush1.bf16.msra.mxu0 %v5619_v31  ;;  %2755 = vmatpush1.bf16.msra.mxu1 %v5625_v35 }
 0xecc   :  { %2797 = vmatprep.subr.bf16.mxu0 %v5631_v12  ;;  %2756 = vmatprep.subr.bf16.mxu1 %v5637_v4 }
 0xecf   :  { %2798 = vmatpush1.bf16.msra.mxu0 %v5643_v49  ;;  %2757 = vmatpush1.bf16.msra.mxu1 %v5649_v34 }
 0xed0   :  { %2799 = vmatprep.subr.bf16.mxu0 %v5655_v59  ;;  %2758 = vmatprep.subr.bf16.mxu1 %v5661_v58 }
 0xed3   :  { %2800 = vmatpush1.bf16.msra.mxu0 %v5667_v15  ;;  %2759 = vmatpush1.bf16.msra.mxu1 %v5673_v17 }
 0xed4   :  { %2801 = vmatprep.subr.bf16.mxu0 %v5679_v18  ;;  %2760 = vmatprep.subr.bf16.mxu1 %v5685_v19 }
 0xed7   :  { %2802 = vmatpush1.bf16.msra.mxu0 %v5691_v20  ;;  %2761 = vmatpush1.bf16.msra.mxu1 %v5697_v21 }
 0xed8   :  { %2803 = vmatprep.subr.bf16.mxu0 %v5703_v22  ;;  %2762 = vmatprep.subr.bf16.mxu1 %v5709_v23 }
 0xedb   :  { %2804 = vmatpush1.bf16.msra.mxu0 %v5715_v56  ;;  %2763 = vmatpush1.bf16.msra.mxu1 %v5721_v2 }
 0xedc   :  { %2900 = vmatprep.subr.bf16.mxu0 %v4002_v57  ;;  %2859 = vmatprep.subr.bf16.mxu1 %v4003_v62 }
 0xf91   :  { %v2671_v3 = vpop.f32.mrb[84].mxu1  ;;  %v2712_v42 = vpop.f32.mrb[92].mxu0 }
 0xf92   :  { %v2719_v24 = vadd.f32 %v2671_v3, %v1835_v61  ;;  %v2721_v39 = vadd.f32 %v2712_v42, %v1908_v1  ;;  %v2673_v40 = vpop.f32.mrb[85].mxu1  ;;  %v2714_v45 = vpop.f32.mrb[93].mxu0 }
 0xf93   :  { %v2720_v63 = vadd.f32 %v2673_v40, %v1837_v6  ;;  %v2722_v48 = vadd.f32 %v2714_v45, %v1910_v8  ;;  %v2675_v16 = vpop.f32.mrb[86].mxu1  ;;  %v2716_v32 = vpop.f32.mrb[94].mxu0 }
 0xf94   :  { %v3410_v25 = vmul.f32 -1.442695, %v2719_v24  ;;  %v2676_v43 = vpop.f32.mrb[87].mxu1  ;;  %v2717_v52 = vpop.f32.mrb[95].mxu0  ;;  %v3412_v62 = vmul.f32 -1.442695, %v2721_v39 }
 0xf95   :  { %v3411_v57 = vmul.f32 -1.442695, %v2720_v63 }
 0xf96   :  { %3890 = vpow2.f32 %v3410_v25 }
 0xf97   :  { %3892 = vpow2.f32 %v3411_v57 }
 0xf98   :  { %3894 = vtanh.f32 %v2722_v48 }
 0xf99   :  { %3896 = vpow2.f32 %v3412_v62  ;;  %v2970_v62 = vpack.c.bf16 %v5488_v33, %v5438_v30  ;;  %v3675_v30 = vld [vmem:[%s5877_s10 + $0x8] sm:$0xff]   ;;  %v3676_v33 = vld [vmem:[%s5877_s10 + $0x10] sm:$0xff]  }
 0xfa0   :  { %v3891_v60 = vpop.eup %3890 }
 0xfa1   :  { %v2732_v0 = vadd.f32 1.0, %v3891_v60  ;;  %v3893_v5 = vpop.eup %3892 }
 0xfa2   :  { %v2733_v61 = vadd.f32 1.0, %v3893_v5  ;;  %v3895_v1 = vpop.eup %3894  ;;  %v3674_v5 = vld [vmem:[%s5877_s10] sm:$0xff]  }
 0xfa3   :  { %3898 = vrcp.f32 %v2732_v0  ;;  %v3897_v6 = vpop.eup %3896  ;;  %v3672_v0 = vld [vmem:[%s5876_s9] sm:$0xff]  }
 0xfa4   :  { %3900 = vrcp.f32 %v2733_v61  ;;  %v2734_v42 = vadd.f32 1.0, %v3897_v6  ;;  %v3678_v61 = vld [vmem:[%s5877_s10 + $0x20] sm:$0xff]   ;;  %v3680_v6 = vld [vmem:[%s5877_s10 + $0x30] sm:$0xff]  }
 0xfa6   :  { %3902 = vrcp.f32 %v2734_v42 }
 0xfad   :  { %v3899_v7 = vpop.eup %3898 }
 0xfae   :  { %v2743_v8 = vmul.f32 %v3899_v7, %v3895_v1  ;;  %v3901_v3 = vpop.eup %3900  ;;  %v3679_v1 = vld [vmem:[%s5877_s10 + $0x28] sm:$0xff]   ;;  %v5986_v7 = vld [vmem:[#allocation26_spill] sm:$0xff] }
 0xfaf   :  { %v2742_v24 = vmul.f32 %v3901_v3, %v5535_v14  ;;  %v5982_v14 = vld [vmem:[#allocation22_spill] sm:$0xff]  ;;  %v5987_v3 = vld [vmem:[#allocation27_spill] sm:$0xff] }
 0xfb0   :  { %v3903_v39 = vpop.eup %3902  ;;  %v1918_v42 = vadd.f32 %v5987_v3, %v5313_v10 }
 0xfb1   :  { %v5739_v40 = vadd.f32 %v2743_v8, %v2742_v24  ;;  %v1845_v8 = vadd.f32 %v5986_v7, %v5309_v13  ;;  %v5988_v24 = vld [vmem:[#allocation28_spill] sm:$0xff] }
 0xfb3   :  { %3904 = vtanh.f32 %v5739_v40 }
 0xfbd   :  { %v3905_v45 = vpop.eup %3904 }
 0xfbe   :  { %v5742_v63 = vmul.f32 %v3905_v45, %v3903_v39  ;;  %v5989_v39 = vld [vmem:[#allocation29_spill] sm:$0xff] }
 0xfbf   :  { %v1920_v45 = vadd.f32 %v5989_v39, %v5325_v50 }
 0xfc0   :  { %v2747_v48 = vpack.c.bf16 %v5742_v63, %v5742_v63  ;;  %v2971_v60 = vpack.c.bf16 %v5742_v63, %v5538_v51  ;;  %v3677_v51 = vld [vmem:[%s5877_s10 + $0x18] sm:$0xff]  }
 0xfc2   :  { %2781 = vmatmul.mubr.bf16.vlgmr.msra.gmra.mrb[88].mxu1 %v2747_v48  ;;  %2822 = vmatmul.mubr.bf16.vlgmr.msra.gmra.mrb[96].mxu0 %v2747_v48 }
 0xfc3   :  { %2901 = vmatpush1.bf16.msra.mxu0 %v5545_v27  ;;  %2860 = vmatpush1.bf16.msra.mxu1 %v5551_v29  ;;  %v1841_v27 = vadd.f32 %v5982_v14, %v5309_v13  ;;  %v5983_v29 = vld [vmem:[#allocation23_spill] sm:$0xff] }
 0xfc4   :  { %2902 = vmatprep.subr.bf16.mxu0 %v5557_v11  ;;  %2861 = vmatprep.subr.bf16.mxu1 %v5563_v41  ;;  %v1914_v11 = vadd.f32 %v5983_v29, %v5313_v10  ;;  %v5984_v41 = vld [vmem:[#allocation24_spill] sm:$0xff] }
 0xfc5   :  { %2891 = vmatprep.mubr.bf16.mxu1 %v5916_v44  ;;  %2932 = vmatprep.mubr.bf16.mxu0 %v5916_v44  ;;  %v2969_v44 = vpack.c.bf16 %v5388_v54, %v5338_v53 }
 0xfc7   :  { %2903 = vmatpush1.bf16.msra.mxu0 %v5571_v55  ;;  %2862 = vmatpush1.bf16.msra.mxu1 %v5577_v37  ;;  %v1843_v55 = vadd.f32 %v5984_v41, %v5321_v46  ;;  %v5985_v37 = vld [vmem:[#allocation25_spill] sm:$0xff] }
 0xfc8   :  { %2904 = vmatprep.subr.bf16.mxu0 %v5583_v36  ;;  %2863 = vmatprep.subr.bf16.mxu1 %v5589_v47  ;;  %v1916_v36 = vadd.f32 %v5985_v37, %v5325_v50 }
 0xfcb   :  { %2905 = vmatpush1.bf16.msra.mxu0 %v5595_v26  ;;  %2864 = vmatpush1.bf16.msra.mxu1 %v5601_v38 }
 0xfcc   :  { %2906 = vmatprep.subr.bf16.mxu0 %v5607_v28  ;;  %2865 = vmatprep.subr.bf16.mxu1 %v5613_v9 }
 0xfcf   :  { %2907 = vmatpush1.bf16.msra.mxu0 %v5619_v31  ;;  %2866 = vmatpush1.bf16.msra.mxu1 %v5625_v35 }
 0xfd0   :  { %2908 = vmatprep.subr.bf16.mxu0 %v5631_v12  ;;  %2867 = vmatprep.subr.bf16.mxu1 %v5637_v4 }
 0xfd3   :  { %2909 = vmatpush1.bf16.msra.mxu0 %v5643_v49  ;;  %2868 = vmatpush1.bf16.msra.mxu1 %v5649_v34 }
 0xfd4   :  { %2910 = vmatprep.subr.bf16.mxu0 %v5655_v59  ;;  %2869 = vmatprep.subr.bf16.mxu1 %v5661_v58 }
 0xfd7   :  { %2911 = vmatpush1.bf16.msra.mxu0 %v5667_v15  ;;  %2870 = vmatpush1.bf16.msra.mxu1 %v5673_v17 }
 0xfd8   :  { %2912 = vmatprep.subr.bf16.mxu0 %v5679_v18  ;;  %2871 = vmatprep.subr.bf16.mxu1 %v5685_v19 }
 0xfdb   :  { %2913 = vmatpush1.bf16.msra.mxu0 %v5691_v20  ;;  %2872 = vmatpush1.bf16.msra.mxu1 %v5697_v21 }
 0xfdc   :  { %2914 = vmatprep.subr.bf16.mxu0 %v5703_v22  ;;  %2873 = vmatprep.subr.bf16.mxu1 %v5709_v23 }
 0xfdf   :  { %2915 = vmatpush1.bf16.msra.mxu0 %v5715_v56  ;;  %2874 = vmatpush1.bf16.msra.mxu1 %v5721_v2 }
 0xfe0   :  { %3473 = vmatprep.subr.bf16.mxu0 %v2969_v44  ;;  %3485 = vmatprep.subr.bf16.mxu1 %v3674_v5 }
0x1095   :  { %v2782_v47 = vpop.f32.mrb[88].mxu1  ;;  %v2823_v26 = vpop.f32.mrb[96].mxu0 }
0x1096   :  { %v2830_v53 = vadd.f32 %v2782_v47, %v1841_v27  ;;  %v2832_v54 = vadd.f32 %v2823_v26, %v1914_v11  ;;  %v2784_v38 = vpop.f32.mrb[89].mxu1  ;;  %v2825_v28 = vpop.f32.mrb[97].mxu0 }
0x1097   :  { %v2831_v9 = vadd.f32 %v2784_v38, %v1843_v55  ;;  %v2833_v31 = vadd.f32 %v2825_v28, %v1916_v36  ;;  %v2786_v35 = vpop.f32.mrb[90].mxu1  ;;  %v2827_v12 = vpop.f32.mrb[98].mxu0 }
0x1098   :  { %v3413_v4 = vmul.f32 -1.442695, %v2830_v53  ;;  %v2787_v49 = vpop.f32.mrb[91].mxu1  ;;  %v2828_v34 = vpop.f32.mrb[99].mxu0  ;;  %v3415_v58 = vmul.f32 -1.442695, %v2832_v54 }
0x1099   :  { %v3414_v59 = vmul.f32 -1.442695, %v2831_v9 }
0x109a   :  { %3906 = vpow2.f32 %v3413_v4 }
0x109b   :  { %3908 = vpow2.f32 %v3414_v59 }
0x109c   :  { %3910 = vtanh.f32 %v2833_v31 }
0x109d   :  { %3912 = vpow2.f32 %v3415_v58 }
0x10a4   :  { %v3907_v15 = vpop.eup %3906 }
0x10a5   :  { %v2843_v17 = vadd.f32 1.0, %v3907_v15  ;;  %v3909_v18 = vpop.eup %3908 }
0x10a6   :  { %v2844_v19 = vadd.f32 1.0, %v3909_v18  ;;  %v3911_v20 = vpop.eup %3910  ;;  %v3681_v18 = vld [vmem:[%s5877_s10 + $0x38] sm:$0xff]  }
0x10a7   :  { %3914 = vrcp.f32 %v2843_v17  ;;  %v3913_v21 = vpop.eup %3912  ;;  %v3673_v17 = vld [vmem:[%s5876_s9 + $0x8] ss:$0 sps:$4 sm:$0xff]  }
0x10a8   :  { %3916 = vrcp.f32 %v2844_v19  ;;  %v2845_v2 = vadd.f32 1.0, %v3913_v21 }
0x10aa   :  { %3918 = vrcp.f32 %v2845_v2 }
0x10b1   :  { %v3915_v22 = vpop.eup %3914 }
0x10b2   :  { %v2854_v23 = vmul.f32 %v3915_v22, %v3911_v20  ;;  %v3917_v56 = vpop.eup %3916 }
0x10b3   :  { %v2853_v16 = vmul.f32 %v3917_v56, %v5739_v40  ;;  %v1847_v40 = vadd.f32 %v5988_v24, %v5321_v46 }
0x10b4   :  { %v3919_v25 = vpop.eup %3918 }
0x10b5   :  { %v5789_v32 = vadd.f32 %v2854_v23, %v2853_v16  ;;  %v3423_v16 = vld [vmem:[%s5878_s11] ss:$0 sm:$0xff] }
0x10b7   :  { %3920 = vtanh.f32 %v5789_v32 }
0x10c1   :  { %v3921_v43 = vpop.eup %3920 }
0x10c2   :  { %v5792_v52 = vmul.f32 %v3921_v43, %v3919_v25 }
0x10c4   :  { %v2858_v57 = vpack.c.bf16 %v5792_v52, %v5792_v52 }
0x10c6   :  { %2892 = vmatmul.mubr.bf16.vlgmr.msra.gmra.mrb[92].mxu1 %v2858_v57  ;;  %2933 = vmatmul.mubr.bf16.vlgmr.msra.gmra.mrb[100].mxu0 %v2858_v57 }
0x10c7   :  { %3474 = vmatpush3.bf16.msra.mxu0 %v2969_v44  ;;  %3481 = vmatprep.mubr.msk.bf16.mxu0 %vm136_vm4, %v3672_v0 }
0x10c8   :  { %3475 = vmatprep.subr.bf16.mxu0 %v2970_v62  ;;  %3486 = vmatpush3.bf16.msra.mxu1 %v3674_v5 }
0x10c9   :  { %3487 = vmatprep.subr.bf16.mxu1 %v3675_v30 }
0x10cb   :  { %3476 = vmatpush3.bf16.msra.mxu0 %v2970_v62 }
0x10cc   :  { %3477 = vmatprep.subr.bf16.mxu0 %v2971_v60  ;;  %3488 = vmatpush3.bf16.msra.mxu1 %v3675_v30 }
0x10cd   :  { %3489 = vmatprep.subr.bf16.mxu1 %v3676_v33 }
0x10cf   :  { %3478 = vmatpush3.bf16.msra.mxu0 %v2971_v60 }
0x10d0   :  { %3490 = vmatpush3.bf16.msra.mxu1 %v3676_v33 }
0x10d1   :  { %3491 = vmatprep.subr.bf16.mxu1 %v3677_v51 }
0x10d4   :  { %3492 = vmatpush3.bf16.msra.mxu1 %v3677_v51 }
0x10d5   :  { %3493 = vmatprep.subr.bf16.mxu1 %v3678_v61 }
0x10d8   :  { %3494 = vmatpush3.bf16.msra.mxu1 %v3678_v61 }
0x10d9   :  { %3495 = vmatprep.subr.bf16.mxu1 %v3679_v1 }
0x10dc   :  { %3496 = vmatpush3.bf16.msra.mxu1 %v3679_v1 }
0x10dd   :  { %3497 = vmatprep.subr.bf16.mxu1 %v3680_v6 }
0x10e0   :  { %3498 = vmatpush3.bf16.msra.mxu1 %v3680_v6 }
0x10e1   :  { %3499 = vmatprep.subr.bf16.mxu1 %v3681_v18 }
0x10e4   :  { %3500 = vmatpush3.bf16.msra.mxu1 %v3681_v18 }
0x1199   :  { %v2893_v63 = vpop.f32.mrb[92].mxu1  ;;  %v2934_v48 = vpop.f32.mrb[100].mxu0 }
0x119a   :  { %v2941_v44 = vadd.f32 %v2893_v63, %v1845_v8  ;;  %v2943_v14 = vadd.f32 %v2934_v48, %v1918_v42  ;;  %v2895_v27 = vpop.f32.mrb[93].mxu1  ;;  %v2936_v29 = vpop.f32.mrb[101].mxu0 }
0x119b   :  { %v2942_v11 = vadd.f32 %v2895_v27, %v1847_v40  ;;  %v2944_v41 = vadd.f32 %v2936_v29, %v1920_v45  ;;  %v2897_v55 = vpop.f32.mrb[94].mxu1  ;;  %v2938_v37 = vpop.f32.mrb[102].mxu0 }
0x119c   :  { %v3416_v13 = vmul.f32 -1.442695, %v2941_v44  ;;  %v2898_v36 = vpop.f32.mrb[95].mxu1  ;;  %v2939_v47 = vpop.f32.mrb[103].mxu0  ;;  %v3418_v46 = vmul.f32 -1.442695, %v2943_v14 }
0x119d   :  { %v3417_v10 = vmul.f32 -1.442695, %v2942_v11  ;;  %v3202_v47 = vld [vmem:[%s5879_s12] sm:$0x1]  ;;  %s4004_s12 = scalar_lea.vmem %s3234_s26, 384 }
0x119e   :  { %3922 = vpow2.f32 %v3416_v13  ;;  %p4005_p0 = scmp.ne.s32.totalorder %s3234_s26, %s4004_s12  ;;  %p4010_p2 = scmp.lt.s32.totalorder %s4004_s12, %s4004_s12 }
0x119f   :  { %3924 = vpow2.f32 %v3417_v10 }
0x11a0   :  { %3926 = vtanh.f32 %v2944_v41  ;;  %p4011_p3 = por %p4010_p2, %p4009_p1 }
0x11a1   :  { %3928 = vpow2.f32 %v3418_v46 }
0x11a2   :  { %p4012_p4 = pnand %p4011_p3, %p4005_p0 }
0x11a8   :  { %v3923_v26 = vpop.eup %3922 }
0x11a9   :  { %v2954_v53 = vadd.f32 1.0, %v3923_v26  ;;  %v3925_v50 = vpop.eup %3924  ;;  %v5991_v26 = vld [vmem:[#allocation6_spill] sm:$0xff] }
0x11aa   :  { %v2955_v54 = vadd.f32 1.0, %v3925_v50  ;;  %v3927_v38 = vpop.eup %3926  ;;  %v3432_v50 = vld [vmem:[%s5880_s13] ss:$0 sm:$0xff] }
0x11ab   :  { %3930 = vrcp.f32 %v2954_v53  ;;  %v3929_v28 = vpop.eup %3928 }
0x11ac   :  { %3932 = vrcp.f32 %v2955_v54  ;;  %v2956_v12 = vadd.f32 1.0, %v3929_v28 }
0x11ae   :  { %3934 = vrcp.f32 %v2956_v12 }
0x11b5   :  { %v3931_v9 = vpop.eup %3930 }
0x11b6   :  { %v2965_v31 = vmul.f32 %v3931_v9, %v3927_v38  ;;  %v3933_v35 = vpop.eup %3932 }
0x11b7   :  { %v2964_v4 = vmul.f32 %v3933_v35, %v5789_v32  ;;  %v5990_v32 = vld [vmem:[#allocation5_spill] sm:$0xff] }
0x11b8   :  { %v3935_v34 = vpop.eup %3934  ;;  %v3162_v25 = vadd.s32 16, %v5990_v32 }
0x11b9   :  { %v2966_v49 = vadd.f32 %v2965_v31, %v2964_v4 }
0x11ba   :  { %vm3165_vm9 = vcmp.lt.s32.totalorder %v3162_v25, 22 }
0x11bb   :  { %3936 = vtanh.f32 %v2966_v49 }
0x11c5   :  { %v3937_v59 = vpop.eup %3936 }
0x11c6   :  { %v2968_v58 = vmul.f32 %v3937_v59, %v3935_v34 }
0x11c8   :  { %v2972_v15 = vpack.c.bf16 %v2968_v58, %v5792_v52 }
0x11ca   :  { %3479 = vmatprep.subr.bf16.mxu0 %v2972_v15 }
0x11cb   :  { %3480 = vmatpush3.bf16.msra.mxu0 %v2972_v15 }
0x11ce   :  { %3482 = vmatmul.mubr.msk.bf16.vlgmr.msra.gmra.mrb[104].mxu0 %vm136_vm4, %v3673_v17 }
0x12a1   :  { %v3483_v19 = vpop.f32.mrb[104].mxu0 }
0x12a2   :  { %v3024_v20 = vpop.f32.mrb[105].mxu0  ;;  %v3039_v56 = vpack.c.bf16 %v3483_v19, %v3483_v19 }
0x12a3   :  { %v3484_v21 = vpop.f32.mrb[106].mxu0 }
0x12a4   :  { %v3027_v22 = vpop.f32.mrb[107].mxu0 }
0x12a5   :  { %v3038_v23 = vpack.c.bf16 %v3027_v22, %v3024_v20 }
0x12a7   :  { %3501 = vmatprep.mubr.bf16.mxu1 %v3038_v23 }
0x12a8   :  { %3502 = vmatmul.mubr.bf16.vlgmr.msra.gmra.mrb[96].mxu1 %v3039_v56 }
0x137b   :  { %v3503_v2 = vpop.f32.mrb[96].mxu1 }
0x137c   :  { %v3145_v43 = vpop.f32.mrb[97].mxu1  ;;  %v3154_v57 = vadd.f32 %v3503_v2, %v3423_v16 }
0x137d   :  { %v3504_v52 = vpop.f32.mrb[98].mxu1  ;;  %v3146_v60 = vadd.f32 %v3423_v16, %v3145_v43 }
0x137e   :  { %v3148_v62 = vpop.f32.mrb[99].mxu1  ;;  %v3174_v30 = vsel %vm3165_vm9, %v3154_v57, 0.0 }
0x137f   :  { %v3149_v0 = vadd.f32 %v3423_v16, %v3148_v62 }
0x1381   :  { %v3175_v5 = vadd.f32 %v3149_v0, %v3146_v60 }
0x1383   :  { %v3176_v33 = vadd.f32 %v3175_v5, %v3174_v30 }
0x1385   :  { %v3177_v51 = vrot.slane %v3176_v33, 4 }
0x1387   :  { %v3178_v61 = vadd.f32 %v3177_v51, %v3176_v33 }
0x1389   :  { %v3179_v1 = vrot.slane %v3178_v61, 2 }
0x138b   :  { %v3180_v6 = vadd.f32 %v3179_v1, %v3178_v61 }
0x138d   :  { %v3181_v7 = vrot.slane %v3180_v6, 1 }
0x138f   :  { %v3182_v8 = vadd.f32 %v3181_v7, %v3180_v6 }
0x1391   :  { %v3183_v3 = vmul.f32 0.045454547, %v3182_v8 }
0x1393   :  { %v3184_v42 = vsub.f32 %v3146_v60, %v3183_v3  ;;  %v3185_v24 = vsub.f32 %v3149_v0, %v3183_v3  ;;  %v3186_v40 = vsub.f32 %v3154_v57, %v3183_v3 }
0x1395   :  { %v3187_v39 = vmul.f32 %v3184_v42, %v3184_v42  ;;  %v3188_v45 = vmul.f32 %v3185_v24, %v3185_v24  ;;  %v3189_v63 = vmul.f32 %v3186_v40, %v3186_v40 }
0x1397   :  { %v3192_v48 = vsel %vm3165_vm9, %v3189_v63, 0.0  ;;  %v3193_v44 = vadd.f32 %v3188_v45, %v3187_v39 }
0x1399   :  { %v3194_v14 = vadd.f32 %v3193_v44, %v3192_v48 }
0x139b   :  { %v3195_v27 = vrot.slane %v3194_v14, 4 }
0x139d   :  { %v3196_v29 = vadd.f32 %v3195_v27, %v3194_v14 }
0x139f   :  { %v3197_v11 = vrot.slane %v3196_v29, 2 }
0x13a1   :  { %v3198_v41 = vadd.f32 %v3197_v11, %v3196_v29 }
0x13a3   :  { %v3199_v55 = vrot.slane %v3198_v41, 1 }
0x13a5   :  { %v3200_v37 = vadd.f32 %v3199_v55, %v3198_v41 }
0x13a7   :  { %v3201_v13 = vmul.f32 0.045454547, %v3200_v37 }
0x13a9   :  { %v3203_v36 = vadd.f32 1e-05, %v3201_v13 }
0x13ab   :  { %3938 = vrsqrt.f32 %v3203_v36 }
0x13b5   :  { %v3939_v10 = vpop.eup %3938 }
0x13b6   :  { %v3205_v46 = vmul.f32 %v3939_v10, %v3202_v47 }
0x13b8   :  { %v3210_v53 = vrot.slane %v3205_v46, %v5991_v26 }
0x13ba   :  { %v3212_v54 = vmul.f32 %v3210_v53, %v3184_v42  ;;  %v3213_v38 = vmul.f32 %v3210_v53, %v3185_v24  ;;  %v3214_v28 = vmul.f32 %v3210_v53, %v3186_v40 }
0x13bc   :  { %v3222_v9 = vadd.f32 %v3432_v50, %v3212_v54  ;;  %v3223_v31 = vadd.f32 %v3432_v50, %v3213_v38  ;;  %v3224_v35 = vadd.f32 %v3432_v50, %v3214_v28 }
0x13be   :  { %3225 = vst [vmem:[#allocation2] sm:$0xff] %v3222_v9  ;;  %3226 = vst [vmem:[#allocation2 + $0x8] sm:$0xff] %v3223_v31 }
0x13bf   :  { %3227 = vst [vmem:[#allocation2 + $0x10] sm:$0xff] %v3224_v35 }
0x13c0   :  { %4015 = shalt.err (!%p4012_p4)
}
0x13c1   :  { %s4016_s13 = scalar_lea.hbm %s5881_s14, 384 }
0x13c2   :  { %p4017_p5 = scmp.ne.s32.totalorder %s5881_s14, %s4016_s13  ;;  %p4020_p6 = scmp.lt.u32.totalorder %s4016_s13, %s5881_s14 }
0x13c4   :  { %p4022_p7 = pnand %p4020_p6, %p4017_p5 }
0x13c6   :  { %4025 = shalt.err (!%p4022_p7)
}
0x13c7   :  { %s4031_s18 = smov 128   ;;  %s4032_s19 = smov 8  }
0x13c8   :  { %3239 = dma.vmem_to_hbm [thread:$0]  %s3234_s26, 384, %s5881_s14, [#allocation3], %s4031_s18, %s4031_s18, %s4032_s19  }
0x13c9   :  { %4026 = dma.done.wait [#allocation3], 384  }
0x13ca   :  { %4027 = vsyncadd [#allocation3], 4294966912 }
0x13cb   :  { %3243 = vsyncpa [#allocation3], 1 }

</bundles_post_ra>
